<compile_context>
chip_gen: v6e
topology: v6e:2x2x1
jax: 0.10.0
libtpu: 0.0.40
codegen_flags: <defaults>
</compile_context>

<pallas_src>
import functools
import math

import jax
import jax.numpy as jnp
from jax import lax
from jax.experimental import pallas as pl
from jax.experimental.pallas import tpu as pltpu

NEG_INF = -1e9
VMEM_LIMIT_BYTES = 64 * 1024 * 1024   # <= v7x physical; v5e/v6e have 128 MiB physical


def _pick_tile(dim, candidates):
    """Largest candidate tile that evenly divides `dim`, else the full dim."""
    for c in candidates:
        if dim >= c and dim % c == 0:
            return c
    return dim


# ----------------------------------------------------------------------------
# Linear (matmul + bias + activation + residual) kernel
# ----------------------------------------------------------------------------
def _linear_kernel(*refs, activation, has_bias, has_res, multi_k):
    it = iter(refs)
    x_ref = next(it)
    w_ref = next(it)
    b_ref = next(it) if has_bias else None
    r_ref = next(it) if has_res else None
    o_ref = next(it)
    acc_ref = next(it) if multi_k else None

    def finalize(y):
        if has_bias:
            y = y + b_ref[...].astype(jnp.float32)
        if activation == "relu":
            y = jnp.maximum(y, 0.0)
        elif activation == "gelu":
            y = jax.nn.gelu(y)
        if has_res:
            y = y + r_ref[...].astype(jnp.float32)
        o_ref[...] = y.astype(o_ref.dtype)

    x = x_ref[...]
    w = w_ref[...]
    if x.dtype != w.dtype:
        x = x.astype(w.dtype)   # keep MXU operands narrow (bf16); f32 MXU is emulated
    part = jnp.dot(x, w, preferred_element_type=jnp.float32)

    if multi_k:
        @pl.when(pl.program_id(2) == 0)
        def _init():
            acc_ref[...] = jnp.zeros_like(acc_ref)

        acc_ref[...] += part

        @pl.when(pl.program_id(2) == pl.num_programs(2) - 1)
        def _fin():
            finalize(acc_ref[...])
    else:
        finalize(part)


def linear(x, w, b=None, activation=None, residual=None, out_dtype=None):
    """x: (..., K); w: (K, N); b: (N,) f32 or None; residual: (..., N) or None."""
    orig_shape = x.shape
    K = orig_shape[-1]
    x2 = x.reshape(-1, K)
    M = x2.shape[0]
    N = w.shape[1]
    out_dtype = out_dtype or x.dtype

    tm = _pick_tile(M, (2048, 1024, 512, 256, 128))
    tn = _pick_tile(N, (512, 256, 128))
    tk = _pick_tile(K, (512, 256, 128))
    grid = (M // tm, N // tn, K // tk)
    multi_k = grid[2] > 1

    has_bias = b is not None
    has_res = residual is not None

    in_specs = [
        pl.BlockSpec((tm, tk), lambda i, j, k: (i, k)),
        pl.BlockSpec((tk, tn), lambda i, j, k: (k, j)),
    ]
    args = [x2, w]
    if has_bias:
        in_specs.append(pl.BlockSpec((1, tn), lambda i, j, k: (0, j)))
        args.append(b.reshape(1, N).astype(jnp.float32))
    if has_res:
        in_specs.append(pl.BlockSpec((tm, tn), lambda i, j, k: (i, j)))
        args.append(residual.reshape(M, N))

    x_item = jnp.dtype(x2.dtype).itemsize
    w_item = jnp.dtype(w.dtype).itemsize
    bytes_accessed = (M * K * grid[1] * x_item          # x re-streamed per N tile
                      + N * K * grid[0] * w_item        # w re-streamed per M tile
                      + M * N * jnp.dtype(out_dtype).itemsize)
    if has_res:
        bytes_accessed += M * N * jnp.dtype(residual.dtype).itemsize
    cost = pl.CostEstimate(flops=int(2 * M * N * K), transcendentals=0,
                           bytes_accessed=int(bytes_accessed))

    scratch_shapes = [pltpu.VMEM((tm, tn), jnp.float32)] if multi_k else []

    out = pl.pallas_call(
        functools.partial(_linear_kernel, activation=activation, has_bias=has_bias,
                          has_res=has_res, multi_k=multi_k),
        grid=grid,
        in_specs=in_specs,
        out_specs=pl.BlockSpec((tm, tn), lambda i, j, k: (i, j)),
        out_shape=jax.ShapeDtypeStruct((M, N), out_dtype),
        scratch_shapes=scratch_shapes,
        compiler_params=pltpu.CompilerParams(
            dimension_semantics=("parallel", "parallel", "arbitrary"),
            vmem_limit_bytes=VMEM_LIMIT_BYTES),
        cost_estimate=cost,
    )(*args)
    return out.reshape(orig_shape[:-1] + (N,))


# ----------------------------------------------------------------------------
# LayerNorm kernel
# ----------------------------------------------------------------------------
def _layernorm_kernel(x_ref, g_ref, b_ref, o_ref, *, eps):
    x = x_ref[...].astype(jnp.float32)
    mean = jnp.mean(x, axis=-1, keepdims=True)
    var = jnp.mean(jnp.square(x - mean), axis=-1, keepdims=True)
    y = (x - mean) * lax.rsqrt(var + eps)
    y = y * g_ref[...].astype(jnp.float32) + b_ref[...].astype(jnp.float32)
    o_ref[...] = y.astype(o_ref.dtype)


def layer_norm(x, gamma, beta, eps=1e-5, out_dtype=None):
    shape = x.shape
    H = shape[-1]
    x2 = x.reshape(-1, H)
    M = x2.shape[0]
    out_dtype = out_dtype or x.dtype
    tm = _pick_tile(M, (1024, 512, 256, 128))
    out = pl.pallas_call(
        functools.partial(_layernorm_kernel, eps=eps),
        grid=(M // tm,),
        in_specs=[
            pl.BlockSpec((tm, H), lambda i: (i, 0)),
            pl.BlockSpec((1, H), lambda i: (0, 0)),
            pl.BlockSpec((1, H), lambda i: (0, 0)),
        ],
        out_specs=pl.BlockSpec((tm, H), lambda i: (i, 0)),
        out_shape=jax.ShapeDtypeStruct((M, H), out_dtype),
        compiler_params=pltpu.CompilerParams(
            dimension_semantics=("parallel",),
            vmem_limit_bytes=VMEM_LIMIT_BYTES),
    )(x2, gamma.reshape(1, H), beta.reshape(1, H))
    return out.reshape(shape[:-1] + (H,))


# ----------------------------------------------------------------------------
# Flash-style multi-head attention kernel (fused QKV inputs, Tk grid axis)
# ----------------------------------------------------------------------------
def _mha_kernel(q_ref, kv_ref, pad_ref, o_ref, acc_ref, m_ref, l_ref, *,
                nhead, hidden, dh, scale, causal, q_off, k_off, v_off,
                q_block, k_block):
    i = pl.program_id(1)
    j = pl.program_id(2)
    tq, tk, H, Dh = q_block, k_block, hidden, dh

    @pl.when(j == 0)
    def _init():
        acc_ref[...] = jnp.zeros_like(acc_ref)
        m_ref[...] = jnp.full(m_ref.shape, NEG_INF, dtype=m_ref.dtype)
        l_ref[...] = jnp.zeros_like(l_ref)

    def compute():
        q_full = q_ref[0]                                    # (tq, QW)
        kv = kv_ref[0]                                       # (tk, KVW)
        q = q_full[:, q_off:q_off + H] * scale               # scale folded into q
        k = kv[:, k_off:k_off + H]
        v = kv[:, v_off:v_off + H]
        # additive bias (key padding + optional causal), hoisted out of head loop
        bias = jnp.broadcast_to(pad_ref[0].astype(jnp.float32), (tq, tk))
        if causal:
            qi = i * tq + lax.broadcasted_iota(jnp.int32, (tq, tk), 0)
            ki = j * tk + lax.broadcasted_iota(jnp.int32, (tq, tk), 1)
            bias = jnp.where(ki > qi, NEG_INF, bias)

        for h in range(nhead):                               # static unroll over heads
            sl = slice(h * Dh, (h + 1) * Dh)
            s = lax.dot_general(q[:, sl], k[:, sl], (((1,), (1,)), ((), ())),
                                preferred_element_type=jnp.float32) + bias
            m_prev = m_ref[:, h:h + 1]                       # (tq, 1)
            m_new = jnp.maximum(m_prev, jnp.max(s, axis=-1, keepdims=True))
            alpha = jnp.exp(m_prev - m_new)
            p = jnp.exp(s - m_new)
            l_ref[:, h:h + 1] = alpha * l_ref[:, h:h + 1] + jnp.sum(
                p, axis=-1, keepdims=True)
            m_ref[:, h:h + 1] = m_new
            acc_ref[:, sl] = alpha * acc_ref[:, sl] + jnp.dot(
                p.astype(v.dtype), v[:, sl], preferred_element_type=jnp.float32)

    if causal:
        # skip KV blocks that are entirely above the diagonal
        @pl.when(j * tk <= i * tq + tq - 1)
        def _():
            compute()
    else:
        compute()

    @pl.when(j == pl.num_programs(2) - 1)
    def _fin():
        # exact normalization (no approx reciprocal), then one lane-dense store
        for h in range(nhead):
            sl = slice(h * Dh, (h + 1) * Dh)
            acc_ref[:, sl] = acc_ref[:, sl] / l_ref[:, h:h + 1]
        o_ref[0] = acc_ref[...].astype(o_ref.dtype)


def multihead_attention(q_arr, kv_arr, key_pad_add, nhead, hidden, *,
                        q_off, k_off, v_off, causal=False):
    """q_arr: (B, Tq, QW) holding Q at lane offset q_off;
       kv_arr: (B, Tk, KVW) holding K/V at lane offsets k_off / v_off;
       key_pad_add: (B, 1, Tk) additive f32 key padding mask.
       Returns (B, Tq, hidden)."""
    B, Tq, QW = q_arr.shape
    _, Tk, KVW = kv_arr.shape
    H = hidden
    Dh = H // nhead

    tq = _pick_tile(Tq, (256, 128))
    tk = _pick_tile(Tk, (512, 256, 128))
    grid = (B, Tq // tq, Tk // tk)

    itemsize = jnp.dtype(q_arr.dtype).itemsize
    cost = pl.CostEstimate(
        flops=int(4 * B * Tq * Tk * H),
        transcendentals=int(B * nhead * Tq * Tk),
        bytes_accessed=int((B * Tq * QW + B * (Tq // tq) * Tk * KVW
                            + B * Tq * H) * itemsize),
    )

    kernel = functools.partial(
        _mha_kernel, nhead=nhead, hidden=H, dh=Dh, scale=1.0 / math.sqrt(Dh),
        causal=causal, q_off=q_off, k_off=k_off, v_off=v_off,
        q_block=tq, k_block=tk)

    return pl.pallas_call(
        kernel,
        grid=grid,
        in_specs=[
            pl.BlockSpec((1, tq, QW), lambda b, i, j: (b, i, 0)),
            pl.BlockSpec((1, tk, KVW), lambda b, i, j: (b, j, 0)),
            pl.BlockSpec((1, 1, tk), lambda b, i, j: (b, 0, j)),
        ],
        out_specs=pl.BlockSpec((1, tq, H), lambda b, i, j: (b, i, 0)),
        out_shape=jax.ShapeDtypeStruct((B, Tq, H), q_arr.dtype),
        scratch_shapes=[
            pltpu.VMEM((tq, H), jnp.float32),      # unnormalized output accumulator
            pltpu.VMEM((tq, nhead), jnp.float32),  # running max per head
            pltpu.VMEM((tq, nhead), jnp.float32),  # running denom per head
        ],
        compiler_params=pltpu.CompilerParams(
            dimension_semantics=("parallel", "parallel", "arbitrary"),
            vmem_limit_bytes=VMEM_LIMIT_BYTES),
        cost_estimate=cost,
    )(q_arr, kv_arr, key_pad_add)


# ----------------------------------------------------------------------------
# Model glue (plain JAX around the Pallas kernels)
# ----------------------------------------------------------------------------
def sinusoidal_pos_emb(max_len, dim):
    half = dim // 2
    freq = jnp.exp(jnp.arange(half, dtype=jnp.float32)
                   * (-math.log(10000.0) / max(half - 1, 1)))
    pos = jnp.arange(max_len, dtype=jnp.float32)[:, None] * freq[None, :]
    return jnp.concatenate([jnp.sin(pos), jnp.cos(pos)], axis=1)


def embed_tokens(tokens, emb, pos_emb, padding_idx):
    """LightSeq embedding: lookup * sqrt(H) + sinusoidal pos, padding rows zeroed."""
    H = emb.shape[1]
    T = tokens.shape[1]
    x = emb[tokens].astype(jnp.float32) * math.sqrt(H) + pos_emb[None, :T, :]
    x = jnp.where((tokens == padding_idx)[..., None], 0.0, x)
    return x.astype(jnp.bfloat16)


def encoder_layer(x, p, enc_pad_add, nhead, act):
    # pre_layer_norm = True
    H = x.shape[-1]
    residual = x
    y = layer_norm(x, p["ln1_g"], p["ln1_b"])
    qkv = linear(y, p["attn_qkvw"], p["attn_qkvb"])              # (B, S, 3H), no split
    attn = multihead_attention(qkv, qkv, enc_pad_add, nhead, H,
                               q_off=0, k_off=H, v_off=2 * H, causal=False)
    x = linear(attn, p["attn_ow"], p["attn_ob"], residual=residual)

    residual = x
    y = layer_norm(x, p["ln2_g"], p["ln2_b"])
    y = linear(y, p["inter_w"], p["inter_b"], activation=act)
    x = linear(y, p["output_w"], p["output_b"], residual=residual)
    return x


def decoder_layer(x, enc_out_bsh, p, self_pad_add, cross_pad_add, nhead, act):
    # pre_layer_norm = True
    H = x.shape[-1]
    residual = x
    y = layer_norm(x, p["ln1_g"], p["ln1_b"])
    qkv = linear(y, p["self_qkvw"], p["self_qkvb"])              # (B, T, 3H), no split
    attn = multihead_attention(qkv, qkv, self_pad_add, nhead, H,
                               q_off=0, k_off=H, v_off=2 * H, causal=True)
    x = linear(attn, p["self_ow"], p["self_ob"], residual=residual)

    residual = x
    y = layer_norm(x, p["ln2_g"], p["ln2_b"])
    q = linear(y, p["encdec_qw"], p["encdec_qb"])                # (B, T, H)
    kv = linear(enc_out_bsh, p["encdec_kvw"], p["encdec_kvb"])   # (B, S, 2H), no split
    attn = multihead_attention(q, kv, cross_pad_add, nhead, H,
                               q_off=0, k_off=0, v_off=H, causal=False)
    x = linear(attn, p["encdec_ow"], p["encdec_ob"], residual=residual)

    residual = x
    y = layer_norm(x, p["ln3_g"], p["ln3_b"])
    y = linear(y, p["inter_w"], p["inter_b"], activation=act)
    x = linear(y, p["output_w"], p["output_b"], residual=residual)
    return x


def transformer_forward(params, src_tokens, trg_tokens, cfg):
    nhead = cfg["nhead"]
    act = cfg["activation_fn"]
    pad = cfg["padding_idx"]
    B, S = src_tokens.shape
    T = trg_tokens.shape[1]

    # ---------------- Encoder ----------------
    x = embed_tokens(src_tokens, params["enc_emb"], params["pos_emb"], pad)
    enc_pad = src_tokens == pad                                           # (B, S) bool
    enc_pad_add = jnp.where(enc_pad, NEG_INF, 0.0).astype(jnp.float32)[:, None, :]
    for p in params["enc_layers"]:
        x = encoder_layer(x, p, enc_pad_add, nhead, act)
    x = layer_norm(x, params["enc_ln_g"], params["enc_ln_b"])
    # reference returns encoder_out as (S, B, H); kept (B, S, H) internally — the
    # layout is an interface detail that cancels out inside the decoder.
    enc_out_bsh = x

    # ---------------- Decoder ----------------
    y = embed_tokens(trg_tokens, params["dec_emb"], params["pos_emb"], pad)
    self_pad_add = jnp.zeros((B, 1, T), jnp.float32)   # causal mask built in-kernel
    cross_pad_add = enc_pad_add                        # (B, 1, S)
    for p in params["dec_layers"]:
        y = decoder_layer(y, enc_out_bsh, p, self_pad_add, cross_pad_add, nhead, act)
    y = layer_norm(y, params["dec_ln_g"], params["dec_ln_b"])
    # output projection tied to decoder embedding weight (transposed copy, see init)
    logits = linear(y, params["dec_emb_t"], None, out_dtype=jnp.float32)
    return logits


# ----------------------------------------------------------------------------
# Deterministic parameter init.
# Weights are stored pre-transposed as (in_features, out_features) = (K, N) so the
# in-kernel contraction is a plain (tm,tk)@(tk,tn) with no per-tile transpose.
# Biases / LN params / pos emb stay f32; matmul weights are bf16.
# ----------------------------------------------------------------------------
def init_params(key, cfg):
    H, I, V = cfg["hidden_size"], cfg["intermediate_size"], cfg["vocab_size"]
    n_keys = 8 + 10 * (cfg["num_encoder_layer"] + cfg["num_decoder_layer"])
    keys = iter(jax.random.split(key, n_keys))

    def nrm(shape, std=0.02):
        return (jax.random.normal(next(keys), shape, jnp.float32) * std).astype(jnp.bfloat16)

    def zeros(shape):
        return jnp.zeros(shape, jnp.float32)

    def ones(shape):
        return jnp.ones(shape, jnp.float32)

    def enc_layer_params():
        return dict(
            attn_qkvw=nrm((H, 3 * H)), attn_qkvb=zeros((3 * H,)),
            attn_ow=nrm((H, H)), attn_ob=zeros((H,)),
            ln1_g=ones((H,)), ln1_b=zeros((H,)),
            inter_w=nrm((H, I)), inter_b=zeros((I,)),
            output_w=nrm((I, H)), output_b=zeros((H,)),
            ln2_g=ones((H,)), ln2_b=zeros((H,)),
        )

    def dec_layer_params():
        return dict(
            self_qkvw=nrm((H, 3 * H)), self_qkvb=zeros((3 * H,)),
            self_ow=nrm((H, H)), self_ob=zeros((H,)),
            ln1_g=ones((H,)), ln1_b=zeros((H,)),
            encdec_qw=nrm((H, H)), encdec_qb=zeros((H,)),
            encdec_kvw=nrm((H, 2 * H)), encdec_kvb=zeros((2 * H,)),
            encdec_ow=nrm((H, H)), encdec_ob=zeros((H,)),
            ln2_g=ones((H,)), ln2_b=zeros((H,)),
            inter_w=nrm((H, I)), inter_b=zeros((I,)),
            output_w=nrm((I, H)), output_b=zeros((H,)),
            ln3_g=ones((H,)), ln3_b=zeros((H,)),
        )

    dec_emb = nrm((V, H))
    params = dict(
        enc_emb=nrm((V, H)),
        dec_emb=dec_emb,                       # (V, H) for the lookup
        dec_emb_t=jnp.transpose(dec_emb),      # (H, V) tied weight for the vocab proj
        pos_emb=sinusoidal_pos_emb(cfg["max_seq_len"], H),
        enc_layers=[enc_layer_params() for _ in range(cfg["num_encoder_layer"])],
        dec_layers=[dec_layer_params() for _ in range(cfg["num_decoder_layer"])],
        enc_ln_g=ones((H,)), enc_ln_b=zeros((H,)),
        dec_ln_g=ones((H,)), dec_ln_b=zeros((H,)),
    )
    return params


# ----------------------------------------------------------------------------
if __name__ == "__main__":
    cfg = dict(
        max_batch_tokens=256,
        max_seq_len=16,
        vocab_size=64,
        padding_idx=0,
        num_encoder_layer=2,
        num_decoder_layer=2,
        hidden_size=32,
        intermediate_size=64,
        nhead=4,
        attn_prob_dropout_ratio=0.0,
        activation_dropout_ratio=0.0,
        hidden_dropout_ratio=0.0,
        pre_layer_norm=True,
        activation_fn="relu",
        fp16=False,
        local_rank=-1,
    )

    key = jax.random.PRNGKey(0)
    pkey, skey, tkey = jax.random.split(key, 3)
    params = init_params(pkey, cfg)

    B, S, T = 2, 8, 8
    src_tokens = jax.random.randint(skey, (B, S), 1, cfg["vocab_size"], dtype=jnp.int32)
    trg_tokens = jax.random.randint(tkey, (B, T), 1, cfg["vocab_size"], dtype=jnp.int32)
    # add some padding on the source side to exercise the padding mask
    src_tokens = src_tokens.at[1, -2:].set(cfg["padding_idx"])

    fwd = jax.jit(functools.partial(transformer_forward, cfg=cfg))
    logits = fwd(params, src_tokens, trg_tokens)
    logits = jax.block_until_ready(logits)

    assert logits.shape == (B, T, cfg["vocab_size"]), logits.shape
    assert logits.dtype == jnp.float32
    assert bool(jnp.all(jnp.isfinite(logits)))
    print("KERNEL_OK")
</pallas_src>

<mosaic_0001>
module attributes {stable_mosaic.version = 11 : i64} {
  func.func @_layernorm_kernel(%arg0: i32, %arg1: memref<16x32xbf16, #tpu.memory_space<vmem>>, %arg2: memref<1x32xf32, #tpu.memory_space<vmem>>, %arg3: memref<1x32xf32, #tpu.memory_space<vmem>>, %arg4: memref<16x32xbf16, #tpu.memory_space<vmem>>) attributes {dimension_semantics = [#tpu.dimension_semantics<parallel>], iteration_bounds = array<i64: 1>, scalar_prefetch = 0 : i64, scratch_operands = 0 : i64, tpu.core_type = #tpu.core_type<tc>, window_params = [{transform_indices = @transform_0, window_bounds = array<i64: 16, 32>}, {pipeline_mode = #tpu.pipeline_mode<synchronous>, transform_indices = @transform_1, window_bounds = array<i64: 1, 32>}, {pipeline_mode = #tpu.pipeline_mode<synchronous>, transform_indices = @transform_2, window_bounds = array<i64: 1, 32>}, {transform_indices = @transform_3, window_bounds = array<i64: 16, 32>}]} {
    %c0 = arith.constant 0 : index
    %c0_0 = arith.constant 0 : index
    %0 = vector.load %arg1[%c0, %c0_0] : memref<16x32xbf16, #tpu.memory_space<vmem>>, vector<16x32xbf16>
    %1 = arith.extf %0 : vector<16x32xbf16> to vector<16x32xf32>
    %cst = arith.constant dense<0.000000e+00> : vector<16xf32>
    %2 = vector.multi_reduction <add>, %1, %cst [1] : vector<16x32xf32> to vector<16xf32>
    %3 = vector.shape_cast %2 : vector<16xf32> to vector<16x1xf32>
    %cst_1 = arith.constant 3.200000e+01 : f32
    %4 = vector.broadcast %cst_1 : f32 to vector<16x1xf32>
    %5 = arith.divf %3, %4 : vector<16x1xf32>
    %6 = vector.broadcast %5 : vector<16x1xf32> to vector<16x32xf32>
    %7 = arith.subf %1, %6 : vector<16x32xf32>
    %8 = arith.mulf %7, %7 : vector<16x32xf32>
    %cst_2 = arith.constant dense<0.000000e+00> : vector<16xf32>
    %9 = vector.multi_reduction <add>, %8, %cst_2 [1] : vector<16x32xf32> to vector<16xf32>
    %10 = vector.shape_cast %9 : vector<16xf32> to vector<16x1xf32>
    %cst_3 = arith.constant 3.200000e+01 : f32
    %11 = vector.broadcast %cst_3 : f32 to vector<16x1xf32>
    %12 = arith.divf %10, %11 : vector<16x1xf32>
    %13 = vector.broadcast %5 : vector<16x1xf32> to vector<16x32xf32>
    %14 = arith.subf %1, %13 : vector<16x32xf32>
    %cst_4 = arith.constant 9.99999974E-6 : f32
    %15 = vector.broadcast %cst_4 : f32 to vector<16x1xf32>
    %16 = arith.addf %12, %15 : vector<16x1xf32>
    %17 = math.rsqrt %16 : vector<16x1xf32>
    %18 = vector.broadcast %17 : vector<16x1xf32> to vector<16x32xf32>
    %19 = arith.mulf %14, %18 : vector<16x32xf32>
    %c0_5 = arith.constant 0 : index
    %c0_6 = arith.constant 0 : index
    %20 = vector.load %arg2[%c0_5, %c0_6] : memref<1x32xf32, #tpu.memory_space<vmem>>, vector<1x32xf32>
    %21 = vector.broadcast %20 : vector<1x32xf32> to vector<16x32xf32>
    %22 = arith.mulf %19, %21 : vector<16x32xf32>
    %c0_7 = arith.constant 0 : index
    %c0_8 = arith.constant 0 : index
    %23 = vector.load %arg3[%c0_7, %c0_8] : memref<1x32xf32, #tpu.memory_space<vmem>>, vector<1x32xf32>
    %24 = vector.broadcast %23 : vector<1x32xf32> to vector<16x32xf32>
    %25 = arith.addf %22, %24 : vector<16x32xf32>
    %26 = arith.truncf %25 : vector<16x32xf32> to vector<16x32xbf16>
    %c0_9 = arith.constant 0 : index
    %c0_10 = arith.constant 0 : index
    %27 = vector.load %arg4[%c0_9, %c0_10] : memref<16x32xbf16, #tpu.memory_space<vmem>>, vector<16x32xbf16>
    tpu.vector_store %arg4[%c0_9, %c0_10], %26 {strides = array<i32>} : memref<16x32xbf16, #tpu.memory_space<vmem>>, vector<16x32xbf16>,
    return
  }
  func.func @transform_0(%arg0: i32) -> (i32, i32) {
    %c0_i32 = arith.constant 0 : i32
    %c0_i32_0 = arith.constant 0 : i32
    return %arg0, %c0_i32 : i32, i32
  }
  func.func @transform_1(%arg0: i32) -> (i32, i32) {
    %c0_i32 = arith.constant 0 : i32
    %c0_i32_0 = arith.constant 0 : i32
    %c0_i32_1 = arith.constant 0 : i32
    return %c0_i32, %c0_i32_0 : i32, i32
  }
  func.func @transform_2(%arg0: i32) -> (i32, i32) {
    %c0_i32 = arith.constant 0 : i32
    %c0_i32_0 = arith.constant 0 : i32
    %c0_i32_1 = arith.constant 0 : i32
    return %c0_i32, %c0_i32_0 : i32, i32
  }
  func.func @transform_3(%arg0: i32) -> (i32, i32) {
    %c0_i32 = arith.constant 0 : i32
    %c0_i32_0 = arith.constant 0 : i32
    return %arg0, %c0_i32 : i32, i32
  }
}

module attributes {stable_mosaic.version = 11 : i64} {
  func.func @_linear_kernel(%arg0: i32, %arg1: i32, %arg2: i32, %arg3: memref<16x32xbf16, #tpu.memory_space<vmem>>, %arg4: memref<32x96xbf16, #tpu.memory_space<vmem>>, %arg5: memref<1x96xf32, #tpu.memory_space<vmem>>, %arg6: memref<16x96xbf16, #tpu.memory_space<vmem>>) attributes {dimension_semantics = [#tpu.dimension_semantics<parallel>, #tpu.dimension_semantics<parallel>, #tpu.dimension_semantics<arbitrary>], iteration_bounds = array<i64: 1, 1, 1>, scalar_prefetch = 0 : i64, scratch_operands = 0 : i64, tpu.core_type = #tpu.core_type<tc>, window_params = [{transform_indices = @transform_0, window_bounds = array<i64: 16, 32>}, {transform_indices = @transform_1, window_bounds = array<i64: 32, 96>}, {transform_indices = @transform_2, window_bounds = array<i64: 1, 96>}, {transform_indices = @transform_3, window_bounds = array<i64: 16, 96>}]} {
    %c0 = arith.constant 0 : index
    %c0_0 = arith.constant 0 : index
    %0 = vector.load %arg3[%c0, %c0_0] : memref<16x32xbf16, #tpu.memory_space<vmem>>, vector<16x32xbf16>
    %c0_1 = arith.constant 0 : index
    %c0_2 = arith.constant 0 : index
    %1 = vector.load %arg4[%c0_1, %c0_2] : memref<32x96xbf16, #tpu.memory_space<vmem>>, vector<32x96xbf16>
    %cst = arith.constant dense<0.000000e+00> : vector<16x96xf32>
    %2 = tpu.matmul %0, %1, %cst {dimension_numbers = #tpu.dot_dimension_numbers<[1], [0], [0], [1], [0, 0, 1, 1], [], []>} : vector<16x32xbf16>, vector<32x96xbf16>, vector<16x96xf32> -> vector<16x96xf32>
    %c0_3 = arith.constant 0 : index
    %c0_4 = arith.constant 0 : index
    %3 = vector.load %arg5[%c0_3, %c0_4] : memref<1x96xf32, #tpu.memory_space<vmem>>, vector<1x96xf32>
    %4 = vector.broadcast %3 : vector<1x96xf32> to vector<16x96xf32>
    %5 = arith.addf %2, %4 : vector<16x96xf32>
    %6 = arith.truncf %5 : vector<16x96xf32> to vector<16x96xbf16>
    %c0_5 = arith.constant 0 : index
    %c0_6 = arith.constant 0 : index
    %7 = vector.load %arg6[%c0_5, %c0_6] : memref<16x96xbf16, #tpu.memory_space<vmem>>, vector<16x96xbf16>
    tpu.vector_store %arg6[%c0_5, %c0_6], %6 {strides = array<i32>} : memref<16x96xbf16, #tpu.memory_space<vmem>>, vector<16x96xbf16>,
    return
  }
  func.func @transform_0(%arg0: i32, %arg1: i32, %arg2: i32) -> (i32, i32) {
    %c0_i32 = arith.constant 0 : i32
    return %arg0, %arg2 : i32, i32
  }
  func.func @transform_1(%arg0: i32, %arg1: i32, %arg2: i32) -> (i32, i32) {
    %c0_i32 = arith.constant 0 : i32
    return %arg2, %arg1 : i32, i32
  }
  func.func @transform_2(%arg0: i32, %arg1: i32, %arg2: i32) -> (i32, i32) {
    %c0_i32 = arith.constant 0 : i32
    %c0_i32_0 = arith.constant 0 : i32
    return %c0_i32, %arg1 : i32, i32
  }
  func.func @transform_3(%arg0: i32, %arg1: i32, %arg2: i32) -> (i32, i32) {
    %c0_i32 = arith.constant 0 : i32
    return %arg0, %arg1 : i32, i32
  }
}

module attributes {stable_mosaic.version = 11 : i64} {
  func.func @_linear_kernel(%arg0: i32, %arg1: i32, %arg2: i32, %arg3: memref<16x32xbf16, #tpu.memory_space<vmem>>, %arg4: memref<32x32xbf16, #tpu.memory_space<vmem>>, %arg5: memref<1x32xf32, #tpu.memory_space<vmem>>, %arg6: memref<16x32xbf16, #tpu.memory_space<vmem>>, %arg7: memref<16x32xbf16, #tpu.memory_space<vmem>>) attributes {dimension_semantics = [#tpu.dimension_semantics<parallel>, #tpu.dimension_semantics<parallel>, #tpu.dimension_semantics<arbitrary>], iteration_bounds = array<i64: 1, 1, 1>, scalar_prefetch = 0 : i64, scratch_operands = 0 : i64, tpu.core_type = #tpu.core_type<tc>, window_params = [{transform_indices = @transform_0, window_bounds = array<i64: 16, 32>}, {transform_indices = @transform_1, window_bounds = array<i64: 32, 32>}, {transform_indices = @transform_2, window_bounds = array<i64: 1, 32>}, {transform_indices = @transform_3, window_bounds = array<i64: 16, 32>}, {transform_indices = @transform_4, window_bounds = array<i64: 16, 32>}]} {
    %c0 = arith.constant 0 : index
    %c0_0 = arith.constant 0 : index
    %0 = vector.load %arg3[%c0, %c0_0] : memref<16x32xbf16, #tpu.memory_space<vmem>>, vector<16x32xbf16>
    %c0_1 = arith.constant 0 : index
    %c0_2 = arith.constant 0 : index
    %1 = vector.load %arg4[%c0_1, %c0_2] : memref<32x32xbf16, #tpu.memory_space<vmem>>, vector<32x32xbf16>
    %cst = arith.constant dense<0.000000e+00> : vector<16x32xf32>
    %2 = tpu.matmul %0, %1, %cst {dimension_numbers = #tpu.dot_dimension_numbers<[1], [0], [0], [1], [0, 0, 1, 1], [], []>} : vector<16x32xbf16>, vector<32x32xbf16>, vector<16x32xf32> -> vector<16x32xf32>
    %c0_3 = arith.constant 0 : index
    %c0_4 = arith.constant 0 : index
    %3 = vector.load %arg5[%c0_3, %c0_4] : memref<1x32xf32, #tpu.memory_space<vmem>>, vector<1x32xf32>
    %4 = vector.broadcast %3 : vector<1x32xf32> to vector<16x32xf32>
    %5 = arith.addf %2, %4 : vector<16x32xf32>
    %c0_5 = arith.constant 0 : index
    %c0_6 = arith.constant 0 : index
    %6 = vector.load %arg6[%c0_5, %c0_6] : memref<16x32xbf16, #tpu.memory_space<vmem>>, vector<16x32xbf16>
    %7 = arith.extf %6 : vector<16x32xbf16> to vector<16x32xf32>
    %8 = arith.addf %5, %7 : vector<16x32xf32>
    %9 = arith.truncf %8 : vector<16x32xf32> to vector<16x32xbf16>
    %c0_7 = arith.constant 0 : index
    %c0_8 = arith.constant 0 : index
    %10 = vector.load %arg7[%c0_7, %c0_8] : memref<16x32xbf16, #tpu.memory_space<vmem>>, vector<16x32xbf16>
    tpu.vector_store %arg7[%c0_7, %c0_8], %9 {strides = array<i32>} : memref<16x32xbf16, #tpu.memory_space<vmem>>, vector<16x32xbf16>,
    return
  }
  func.func @transform_0(%arg0: i32, %arg1: i32, %arg2: i32) -> (i32, i32) {
    %c0_i32 = arith.constant 0 : i32
    return %arg0, %arg2 : i32, i32
  }
  func.func @transform_1(%arg0: i32, %arg1: i32, %arg2: i32) -> (i32, i32) {
    %c0_i32 = arith.constant 0 : i32
    return %arg2, %arg1 : i32, i32
  }
  func.func @transform_2(%arg0: i32, %arg1: i32, %arg2: i32) -> (i32, i32) {
    %c0_i32 = arith.constant 0 : i32
    %c0_i32_0 = arith.constant 0 : i32
    return %c0_i32, %arg1 : i32, i32
  }
  func.func @transform_3(%arg0: i32, %arg1: i32, %arg2: i32) -> (i32, i32) {
    %c0_i32 = arith.constant 0 : i32
    return %arg0, %arg1 : i32, i32
  }
  func.func @transform_4(%arg0: i32, %arg1: i32, %arg2: i32) -> (i32, i32) {
    %c0_i32 = arith.constant 0 : i32
    return %arg0, %arg1 : i32, i32
  }
}

module attributes {stable_mosaic.version = 11 : i64} {
  func.func @_mha_kernel(%arg0: i32, %arg1: i32, %arg2: i32, %arg3: memref<1x8x96xbf16, #tpu.memory_space<vmem>>, %arg4: memref<1x8x96xbf16, #tpu.memory_space<vmem>>, %arg5: memref<1x1x8xf32, #tpu.memory_space<vmem>>, %arg6: memref<1x8x32xbf16, #tpu.memory_space<vmem>>, %arg7: memref<8x32xf32, #tpu.memory_space<vmem>>, %arg8: memref<8x4xf32, #tpu.memory_space<vmem>>, %arg9: memref<8x4xf32, #tpu.memory_space<vmem>>) attributes {dimension_semantics = [#tpu.dimension_semantics<parallel>, #tpu.dimension_semantics<parallel>, #tpu.dimension_semantics<arbitrary>], iteration_bounds = array<i64: 2, 1, 1>, scalar_prefetch = 0 : i64, scratch_operands = 3 : i64, tpu.core_type = #tpu.core_type<tc>, window_params = [{transform_indices = @transform_0, window_bounds = array<i64: 1, 8, 96>}, {transform_indices = @transform_1, window_bounds = array<i64: 1, 8, 96>}, {transform_indices = @transform_2, window_bounds = array<i64: 1, 1, 8>}, {transform_indices = @transform_3, window_bounds = array<i64: 1, 8, 32>}]} {
    %c0_i32 = arith.constant 0 : i32
    %0 = arith.cmpi eq, %arg2, %c0_i32 : i32
    %1 = arith.extui %0 : i1 to i32
    %c0_i32_0 = arith.constant 0 : i32
    %2 = arith.cmpi ne, %1, %c0_i32_0 : i32
    scf.if %2 {
      %cst_69 = arith.constant 0.000000e+00 : f32
      %131 = vector.broadcast %cst_69 : f32 to vector<8x32xf32>
      %c0_70 = arith.constant 0 : index
      %c0_71 = arith.constant 0 : index
      %132 = vector.load %arg7[%c0_70, %c0_71] : memref<8x32xf32, #tpu.memory_space<vmem>>, vector<8x32xf32>
      tpu.vector_store %arg7[%c0_70, %c0_71], %131 {strides = array<i32>} : memref<8x32xf32, #tpu.memory_space<vmem>>, vector<8x32xf32>,
      %cst_72 = arith.constant -1.000000e+09 : f32
      %133 = vector.broadcast %cst_72 : f32 to vector<8x4xf32>
      %c0_73 = arith.constant 0 : index
      %c0_74 = arith.constant 0 : index
      %134 = vector.load %arg8[%c0_73, %c0_74] : memref<8x4xf32, #tpu.memory_space<vmem>>, vector<8x4xf32>
      tpu.vector_store %arg8[%c0_73, %c0_74], %133 {strides = array<i32>} : memref<8x4xf32, #tpu.memory_space<vmem>>, vector<8x4xf32>,
      %cst_75 = arith.constant 0.000000e+00 : f32
      %135 = vector.broadcast %cst_75 : f32 to vector<8x4xf32>
      %c0_76 = arith.constant 0 : index
      %c0_77 = arith.constant 0 : index
      %136 = vector.load %arg9[%c0_76, %c0_77] : memref<8x4xf32, #tpu.memory_space<vmem>>, vector<8x4xf32>
      tpu.vector_store %arg9[%c0_76, %c0_77], %135 {strides = array<i32>} : memref<8x4xf32, #tpu.memory_space<vmem>>, vector<8x4xf32>,
    } else {
    }
    %c0 = arith.constant 0 : index
    %c0_1 = arith.constant 0 : index
    %c0_2 = arith.constant 0 : index
    %3 = vector.load %arg3[%c0, %c0_1, %c0_2] : memref<1x8x96xbf16, #tpu.memory_space<vmem>>, vector<1x8x96xbf16>
    %4 = vector.shape_cast %3 : vector<1x8x96xbf16> to vector<8x96xbf16>
    %c0_3 = arith.constant 0 : index
    %c0_4 = arith.constant 0 : index
    %c0_5 = arith.constant 0 : index
    %5 = vector.load %arg4[%c0_3, %c0_4, %c0_5] : memref<1x8x96xbf16, #tpu.memory_space<vmem>>, vector<1x8x96xbf16>
    %6 = vector.shape_cast %5 : vector<1x8x96xbf16> to vector<8x96xbf16>
    %7 = vector.extract_strided_slice %4 {offsets = [0, 0], sizes = [8, 32], strides = [1, 1]} : vector<8x96xbf16> to vector<8x32xbf16>
    %cst = arith.constant 3.535160e-01 : bf16
    %8 = vector.broadcast %cst : bf16 to vector<8x32xbf16>
    %9 = arith.mulf %7, %8 : vector<8x32xbf16>
    %10 = vector.extract_strided_slice %6 {offsets = [0, 32], sizes = [8, 32], strides = [1, 1]} : vector<8x96xbf16> to vector<8x32xbf16>
    %11 = vector.extract_strided_slice %6 {offsets = [0, 64], sizes = [8, 32], strides = [1, 1]} : vector<8x96xbf16> to vector<8x32xbf16>
    %c0_6 = arith.constant 0 : index
    %c0_7 = arith.constant 0 : index
    %c0_8 = arith.constant 0 : index
    %12 = vector.load %arg5[%c0_6, %c0_7, %c0_8] : memref<1x1x8xf32, #tpu.memory_space<vmem>>, vector<1x1x8xf32>
    %13 = vector.shape_cast %12 : vector<1x1x8xf32> to vector<1x8xf32>
    %14 = vector.shape_cast %13 : vector<1x8xf32> to vector<1x8xf32>
    %15 = vector.broadcast %14 : vector<1x8xf32> to vector<8x8xf32>
    %16 = vector.extract_strided_slice %9 {offsets = [0, 0], sizes = [8, 8], strides = [1, 1]} : vector<8x32xbf16> to vector<8x8xbf16>
    %17 = vector.extract_strided_slice %10 {offsets = [0, 0], sizes = [8, 8], strides = [1, 1]} : vector<8x32xbf16> to vector<8x8xbf16>
    %cst_9 = arith.constant dense<0.000000e+00> : vector<8x8xf32>
    %18 = tpu.matmul %16, %17, %cst_9 {dimension_numbers = #tpu.dot_dimension_numbers<[1], [1], [0], [0], [0, 0, 1, 0], [], []>} : vector<8x8xbf16>, vector<8x8xbf16>, vector<8x8xf32> -> vector<8x8xf32>
    %19 = arith.addf %18, %15 : vector<8x8xf32>
    %c0_10 = arith.constant 0 : index
    %c0_11 = arith.constant 0 : index
    %20 = vector.load %arg8[%c0_10, %c0_11] : memref<8x4xf32, #tpu.memory_space<vmem>>, vector<8x1xf32>
    %cst_12 = arith.constant dense<0xFF800000> : vector<8xf32>
    %21 = vector.multi_reduction <maximumf>, %19, %cst_12 [1] : vector<8x8xf32> to vector<8xf32>
    %22 = vector.shape_cast %21 : vector<8xf32> to vector<8x1xf32>
    %23 = arith.maximumf %20, %22 : vector<8x1xf32>
    %24 = arith.subf %20, %23 : vector<8x1xf32>
    %25 = math.exp %24 : vector<8x1xf32>
    %26 = vector.broadcast %23 : vector<8x1xf32> to vector<8x8xf32>
    %27 = arith.subf %19, %26 : vector<8x8xf32>
    %28 = math.exp %27 : vector<8x8xf32>
    %c0_13 = arith.constant 0 : index
    %c0_14 = arith.constant 0 : index
    %29 = vector.load %arg9[%c0_13, %c0_14] : memref<8x4xf32, #tpu.memory_space<vmem>>, vector<8x1xf32>
    %30 = arith.mulf %25, %29 : vector<8x1xf32>
    %cst_15 = arith.constant dense<0.000000e+00> : vector<8xf32>
    %31 = vector.multi_reduction <add>, %28, %cst_15 [1] : vector<8x8xf32> to vector<8xf32>
    %32 = vector.shape_cast %31 : vector<8xf32> to vector<8x1xf32>
    %33 = arith.addf %30, %32 : vector<8x1xf32>
    %c0_16 = arith.constant 0 : index
    %c0_17 = arith.constant 0 : index
    %34 = vector.load %arg9[%c0_16, %c0_17] : memref<8x4xf32, #tpu.memory_space<vmem>>, vector<8x1xf32>
    tpu.vector_store %arg9[%c0_16, %c0_17], %33 {strides = array<i32>} : memref<8x4xf32, #tpu.memory_space<vmem>>, vector<8x1xf32>,
    %c0_18 = arith.constant 0 : index
    %c0_19 = arith.constant 0 : index
    %35 = vector.load %arg8[%c0_18, %c0_19] : memref<8x4xf32, #tpu.memory_space<vmem>>, vector<8x1xf32>
    tpu.vector_store %arg8[%c0_18, %c0_19], %23 {strides = array<i32>} : memref<8x4xf32, #tpu.memory_space<vmem>>, vector<8x1xf32>,
    %c0_20 = arith.constant 0 : index
    %c0_21 = arith.constant 0 : index
    %36 = vector.load %arg7[%c0_20, %c0_21] : memref<8x32xf32, #tpu.memory_space<vmem>>, vector<8x8xf32>
    %37 = vector.broadcast %25 : vector<8x1xf32> to vector<8x8xf32>
    %38 = arith.mulf %37, %36 : vector<8x8xf32>
    %39 = arith.truncf %28 : vector<8x8xf32> to vector<8x8xbf16>
    %40 = vector.extract_strided_slice %11 {offsets = [0, 0], sizes = [8, 8], strides = [1, 1]} : vector<8x32xbf16> to vector<8x8xbf16>
    %cst_22 = arith.constant dense<0.000000e+00> : vector<8x8xf32>
    %41 = tpu.matmul %39, %40, %cst_22 {dimension_numbers = #tpu.dot_dimension_numbers<[1], [0], [0], [1], [0, 0, 1, 1], [], []>} : vector<8x8xbf16>, vector<8x8xbf16>, vector<8x8xf32> -> vector<8x8xf32>
    %42 = arith.addf %38, %41 : vector<8x8xf32>
    %c0_23 = arith.constant 0 : index
    %c0_24 = arith.constant 0 : index
    %43 = vector.load %arg7[%c0_23, %c0_24] : memref<8x32xf32, #tpu.memory_space<vmem>>, vector<8x8xf32>
    tpu.vector_store %arg7[%c0_23, %c0_24], %42 {strides = array<i32>} : memref<8x32xf32, #tpu.memory_space<vmem>>, vector<8x8xf32>,
    %44 = vector.extract_strided_slice %9 {offsets = [0, 8], sizes = [8, 8], strides = [1, 1]} : vector<8x32xbf16> to vector<8x8xbf16>
    %45 = vector.extract_strided_slice %10 {offsets = [0, 8], sizes = [8, 8], strides = [1, 1]} : vector<8x32xbf16> to vector<8x8xbf16>
    %cst_25 = arith.constant dense<0.000000e+00> : vector<8x8xf32>
    %46 = tpu.matmul %44, %45, %cst_25 {dimension_numbers = #tpu.dot_dimension_numbers<[1], [1], [0], [0], [0, 0, 1, 0], [], []>} : vector<8x8xbf16>, vector<8x8xbf16>, vector<8x8xf32> -> vector<8x8xf32>
    %47 = arith.addf %46, %15 : vector<8x8xf32>
    %c0_26 = arith.constant 0 : index
    %c1 = arith.constant 1 : index
    %48 = vector.load %arg8[%c0_26, %c1] : memref<8x4xf32, #tpu.memory_space<vmem>>, vector<8x1xf32>
    %cst_27 = arith.constant dense<0xFF800000> : vector<8xf32>
    %49 = vector.multi_reduction <maximumf>, %47, %cst_27 [1] : vector<8x8xf32> to vector<8xf32>
    %50 = vector.shape_cast %49 : vector<8xf32> to vector<8x1xf32>
    %51 = arith.maximumf %48, %50 : vector<8x1xf32>
    %52 = arith.subf %48, %51 : vector<8x1xf32>
    %53 = math.exp %52 : vector<8x1xf32>
    %54 = vector.broadcast %51 : vector<8x1xf32> to vector<8x8xf32>
    %55 = arith.subf %47, %54 : vector<8x8xf32>
    %56 = math.exp %55 : vector<8x8xf32>
    %c0_28 = arith.constant 0 : index
    %c1_29 = arith.constant 1 : index
    %57 = vector.load %arg9[%c0_28, %c1_29] : memref<8x4xf32, #tpu.memory_space<vmem>>, vector<8x1xf32>
    %58 = arith.mulf %53, %57 : vector<8x1xf32>
    %cst_30 = arith.constant dense<0.000000e+00> : vector<8xf32>
    %59 = vector.multi_reduction <add>, %56, %cst_30 [1] : vector<8x8xf32> to vector<8xf32>
    %60 = vector.shape_cast %59 : vector<8xf32> to vector<8x1xf32>
    %61 = arith.addf %58, %60 : vector<8x1xf32>
    %c0_31 = arith.constant 0 : index
    %c1_32 = arith.constant 1 : index
    %62 = vector.load %arg9[%c0_31, %c1_32] : memref<8x4xf32, #tpu.memory_space<vmem>>, vector<8x1xf32>
    tpu.vector_store %arg9[%c0_31, %c1_32], %61 {strides = array<i32>} : memref<8x4xf32, #tpu.memory_space<vmem>>, vector<8x1xf32>,
    %c0_33 = arith.constant 0 : index
    %c1_34 = arith.constant 1 : index
    %63 = vector.load %arg8[%c0_33, %c1_34] : memref<8x4xf32, #tpu.memory_space<vmem>>, vector<8x1xf32>
    tpu.vector_store %arg8[%c0_33, %c1_34], %51 {strides = array<i32>} : memref<8x4xf32, #tpu.memory_space<vmem>>, vector<8x1xf32>,
    %c0_35 = arith.constant 0 : index
    %c8 = arith.constant 8 : index
    %64 = vector.load %arg7[%c0_35, %c8] : memref<8x32xf32, #tpu.memory_space<vmem>>, vector<8x8xf32>
    %65 = vector.broadcast %53 : vector<8x1xf32> to vector<8x8xf32>
    %66 = arith.mulf %65, %64 : vector<8x8xf32>
    %67 = arith.truncf %56 : vector<8x8xf32> to vector<8x8xbf16>
    %68 = vector.extract_strided_slice %11 {offsets = [0, 8], sizes = [8, 8], strides = [1, 1]} : vector<8x32xbf16> to vector<8x8xbf16>
    %cst_36 = arith.constant dense<0.000000e+00> : vector<8x8xf32>
    %69 = tpu.matmul %67, %68, %cst_36 {dimension_numbers = #tpu.dot_dimension_numbers<[1], [0], [0], [1], [0, 0, 1, 1], [], []>} : vector<8x8xbf16>, vector<8x8xbf16>, vector<8x8xf32> -> vector<8x8xf32>
    %70 = arith.addf %66, %69 : vector<8x8xf32>
    %c0_37 = arith.constant 0 : index
    %c8_38 = arith.constant 8 : index
    %71 = vector.load %arg7[%c0_37, %c8_38] : memref<8x32xf32, #tpu.memory_space<vmem>>, vector<8x8xf32>
    tpu.vector_store %arg7[%c0_37, %c8_38], %70 {strides = array<i32>} : memref<8x32xf32, #tpu.memory_space<vmem>>, vector<8x8xf32>,
    %72 = vector.extract_strided_slice %9 {offsets = [0, 16], sizes = [8, 8], strides = [1, 1]} : vector<8x32xbf16> to vector<8x8xbf16>
    %73 = vector.extract_strided_slice %10 {offsets = [0, 16], sizes = [8, 8], strides = [1, 1]} : vector<8x32xbf16> to vector<8x8xbf16>
    %cst_39 = arith.constant dense<0.000000e+00> : vector<8x8xf32>
    %74 = tpu.matmul %72, %73, %cst_39 {dimension_numbers = #tpu.dot_dimension_numbers<[1], [1], [0], [0], [0, 0, 1, 0], [], []>} : vector<8x8xbf16>, vector<8x8xbf16>, vector<8x8xf32> -> vector<8x8xf32>
    %75 = arith.addf %74, %15 : vector<8x8xf32>
    %c0_40 = arith.constant 0 : index
    %c2 = arith.constant 2 : index
    %76 = vector.load %arg8[%c0_40, %c2] : memref<8x4xf32, #tpu.memory_space<vmem>>, vector<8x1xf32>
    %cst_41 = arith.constant dense<0xFF800000> : vector<8xf32>
    %77 = vector.multi_reduction <maximumf>, %75, %cst_41 [1] : vector<8x8xf32> to vector<8xf32>
    %78 = vector.shape_cast %77 : vector<8xf32> to vector<8x1xf32>
    %79 = arith.maximumf %76, %78 : vector<8x1xf32>
    %80 = arith.subf %76, %79 : vector<8x1xf32>
    %81 = math.exp %80 : vector<8x1xf32>
    %82 = vector.broadcast %79 : vector<8x1xf32> to vector<8x8xf32>
    %83 = arith.subf %75, %82 : vector<8x8xf32>
    %84 = math.exp %83 : vector<8x8xf32>
    %c0_42 = arith.constant 0 : index
    %c2_43 = arith.constant 2 : index
    %85 = vector.load %arg9[%c0_42, %c2_43] : memref<8x4xf32, #tpu.memory_space<vmem>>, vector<8x1xf32>
    %86 = arith.mulf %81, %85 : vector<8x1xf32>
    %cst_44 = arith.constant dense<0.000000e+00> : vector<8xf32>
    %87 = vector.multi_reduction <add>, %84, %cst_44 [1] : vector<8x8xf32> to vector<8xf32>
    %88 = vector.shape_cast %87 : vector<8xf32> to vector<8x1xf32>
    %89 = arith.addf %86, %88 : vector<8x1xf32>
    %c0_45 = arith.constant 0 : index
    %c2_46 = arith.constant 2 : index
    %90 = vector.load %arg9[%c0_45, %c2_46] : memref<8x4xf32, #tpu.memory_space<vmem>>, vector<8x1xf32>
    tpu.vector_store %arg9[%c0_45, %c2_46], %89 {strides = array<i32>} : memref<8x4xf32, #tpu.memory_space<vmem>>, vector<8x1xf32>,
    %c0_47 = arith.constant 0 : index
    %c2_48 = arith.constant 2 : index
    %91 = vector.load %arg8[%c0_47, %c2_48] : memref<8x4xf32, #tpu.memory_space<vmem>>, vector<8x1xf32>
    tpu.vector_store %arg8[%c0_47, %c2_48], %79 {strides = array<i32>} : memref<8x4xf32, #tpu.memory_space<vmem>>, vector<8x1xf32>,
    %c0_49 = arith.constant 0 : index
    %c16 = arith.constant 16 : index
    %92 = vector.load %arg7[%c0_49, %c16] : memref<8x32xf32, #tpu.memory_space<vmem>>, vector<8x8xf32>
    %93 = vector.broadcast %81 : vector<8x1xf32> to vector<8x8xf32>
    %94 = arith.mulf %93, %92 : vector<8x8xf32>
    %95 = arith.truncf %84 : vector<8x8xf32> to vector<8x8xbf16>
    %96 = vector.extract_strided_slice %11 {offsets = [0, 16], sizes = [8, 8], strides = [1, 1]} : vector<8x32xbf16> to vector<8x8xbf16>
    %cst_50 = arith.constant dense<0.000000e+00> : vector<8x8xf32>
    %97 = tpu.matmul %95, %96, %cst_50 {dimension_numbers = #tpu.dot_dimension_numbers<[1], [0], [0], [1], [0, 0, 1, 1], [], []>} : vector<8x8xbf16>, vector<8x8xbf16>, vector<8x8xf32> -> vector<8x8xf32>
    %98 = arith.addf %94, %97 : vector<8x8xf32>
    %c0_51 = arith.constant 0 : index
    %c16_52 = arith.constant 16 : index
    %99 = vector.load %arg7[%c0_51, %c16_52] : memref<8x32xf32, #tpu.memory_space<vmem>>, vector<8x8xf32>
    tpu.vector_store %arg7[%c0_51, %c16_52], %98 {strides = array<i32>} : memref<8x32xf32, #tpu.memory_space<vmem>>, vector<8x8xf32>,
    %100 = vector.extract_strided_slice %9 {offsets = [0, 24], sizes = [8, 8], strides = [1, 1]} : vector<8x32xbf16> to vector<8x8xbf16>
    %101 = vector.extract_strided_slice %10 {offsets = [0, 24], sizes = [8, 8], strides = [1, 1]} : vector<8x32xbf16> to vector<8x8xbf16>
    %cst_53 = arith.constant dense<0.000000e+00> : vector<8x8xf32>
    %102 = tpu.matmul %100, %101, %cst_53 {dimension_numbers = #tpu.dot_dimension_numbers<[1], [1], [0], [0], [0, 0, 1, 0], [], []>} : vector<8x8xbf16>, vector<8x8xbf16>, vector<8x8xf32> -> vector<8x8xf32>
    %103 = arith.addf %102, %15 : vector<8x8xf32>
    %c0_54 = arith.constant 0 : index
    %c3 = arith.constant 3 : index
    %104 = vector.load %arg8[%c0_54, %c3] : memref<8x4xf32, #tpu.memory_space<vmem>>, vector<8x1xf32>
    %cst_55 = arith.constant dense<0xFF800000> : vector<8xf32>
    %105 = vector.multi_reduction <maximumf>, %103, %cst_55 [1] : vector<8x8xf32> to vector<8xf32>
    %106 = vector.shape_cast %105 : vector<8xf32> to vector<8x1xf32>
    %107 = arith.maximumf %104, %106 : vector<8x1xf32>
    %108 = arith.subf %104, %107 : vector<8x1xf32>
    %109 = math.exp %108 : vector<8x1xf32>
    %110 = vector.broadcast %107 : vector<8x1xf32> to vector<8x8xf32>
    %111 = arith.subf %103, %110 : vector<8x8xf32>
    %112 = math.exp %111 : vector<8x8xf32>
    %c0_56 = arith.constant 0 : index
    %c3_57 = arith.constant 3 : index
    %113 = vector.load %arg9[%c0_56, %c3_57] : memref<8x4xf32, #tpu.memory_space<vmem>>, vector<8x1xf32>
    %114 = arith.mulf %109, %113 : vector<8x1xf32>
    %cst_58 = arith.constant dense<0.000000e+00> : vector<8xf32>
    %115 = vector.multi_reduction <add>, %112, %cst_58 [1] : vector<8x8xf32> to vector<8xf32>
    %116 = vector.shape_cast %115 : vector<8xf32> to vector<8x1xf32>
    %117 = arith.addf %114, %116 : vector<8x1xf32>
    %c0_59 = arith.constant 0 : index
    %c3_60 = arith.constant 3 : index
    %118 = vector.load %arg9[%c0_59, %c3_60] : memref<8x4xf32, #tpu.memory_space<vmem>>, vector<8x1xf32>
    tpu.vector_store %arg9[%c0_59, %c3_60], %117 {strides = array<i32>} : memref<8x4xf32, #tpu.memory_space<vmem>>, vector<8x1xf32>,
    %c0_61 = arith.constant 0 : index
    %c3_62 = arith.constant 3 : index
    %119 = vector.load %arg8[%c0_61, %c3_62] : memref<8x4xf32, #tpu.memory_space<vmem>>, vector<8x1xf32>
    tpu.vector_store %arg8[%c0_61, %c3_62], %107 {strides = array<i32>} : memref<8x4xf32, #tpu.memory_space<vmem>>, vector<8x1xf32>,
    %c0_63 = arith.constant 0 : index
    %c24 = arith.constant 24 : index
    %120 = vector.load %arg7[%c0_63, %c24] : memref<8x32xf32, #tpu.memory_space<vmem>>, vector<8x8xf32>
    %121 = vector.broadcast %109 : vector<8x1xf32> to vector<8x8xf32>
    %122 = arith.mulf %121, %120 : vector<8x8xf32>
    %123 = arith.truncf %112 : vector<8x8xf32> to vector<8x8xbf16>
    %124 = vector.extract_strided_slice %11 {offsets = [0, 24], sizes = [8, 8], strides = [1, 1]} : vector<8x32xbf16> to vector<8x8xbf16>
    %cst_64 = arith.constant dense<0.000000e+00> : vector<8x8xf32>
    %125 = tpu.matmul %123, %124, %cst_64 {dimension_numbers = #tpu.dot_dimension_numbers<[1], [0], [0], [1], [0, 0, 1, 1], [], []>} : vector<8x8xbf16>, vector<8x8xbf16>, vector<8x8xf32> -> vector<8x8xf32>
    %126 = arith.addf %122, %125 : vector<8x8xf32>
    %c0_65 = arith.constant 0 : index
    %c24_66 = arith.constant 24 : index
    %127 = vector.load %arg7[%c0_65, %c24_66] : memref<8x32xf32, #tpu.memory_space<vmem>>, vector<8x8xf32>
    tpu.vector_store %arg7[%c0_65, %c24_66], %126 {strides = array<i32>} : memref<8x32xf32, #tpu.memory_space<vmem>>, vector<8x8xf32>,
    %c0_i32_67 = arith.constant 0 : i32
    %128 = arith.cmpi eq, %arg2, %c0_i32_67 : i32
    %129 = arith.extui %128 : i1 to i32
    %c0_i32_68 = arith.constant 0 : i32
    %130 = arith.cmpi ne, %129, %c0_i32_68 : i32
    scf.if %130 {
      %c0_69 = arith.constant 0 : index
      %c0_70 = arith.constant 0 : index
      %131 = vector.load %arg7[%c0_69, %c0_70] : memref<8x32xf32, #tpu.memory_space<vmem>>, vector<8x8xf32>
      %c0_71 = arith.constant 0 : index
      %c0_72 = arith.constant 0 : index
      %132 = vector.load %arg9[%c0_71, %c0_72] : memref<8x4xf32, #tpu.memory_space<vmem>>, vector<8x1xf32>
      %133 = vector.broadcast %132 : vector<8x1xf32> to vector<8x8xf32>
      %134 = arith.divf %131, %133 : vector<8x8xf32>
      %c0_73 = arith.constant 0 : index
      %c0_74 = arith.constant 0 : index
      %135 = vector.load %arg7[%c0_73, %c0_74] : memref<8x32xf32, #tpu.memory_space<vmem>>, vector<8x8xf32>
      tpu.vector_store %arg7[%c0_73, %c0_74], %134 {strides = array<i32>} : memref<8x32xf32, #tpu.memory_space<vmem>>, vector<8x8xf32>,
      %c0_75 = arith.constant 0 : index
      %c8_76 = arith.constant 8 : index
      %136 = vector.load %arg7[%c0_75, %c8_76] : memref<8x32xf32, #tpu.memory_space<vmem>>, vector<8x8xf32>
      %c0_77 = arith.constant 0 : index
      %c1_78 = arith.constant 1 : index
      %137 = vector.load %arg9[%c0_77, %c1_78] : memref<8x4xf32, #tpu.memory_space<vmem>>, vector<8x1xf32>
      %138 = vector.broadcast %137 : vector<8x1xf32> to vector<8x8xf32>
      %139 = arith.divf %136, %138 : vector<8x8xf32>
      %c0_79 = arith.constant 0 : index
      %c8_80 = arith.constant 8 : index
      %140 = vector.load %arg7[%c0_79, %c8_80] : memref<8x32xf32, #tpu.memory_space<vmem>>, vector<8x8xf32>
      tpu.vector_store %arg7[%c0_79, %c8_80], %139 {strides = array<i32>} : memref<8x32xf32, #tpu.memory_space<vmem>>, vector<8x8xf32>,
      %c0_81 = arith.constant 0 : index
      %c16_82 = arith.constant 16 : index
      %141 = vector.load %arg7[%c0_81, %c16_82] : memref<8x32xf32, #tpu.memory_space<vmem>>, vector<8x8xf32>
      %c0_83 = arith.constant 0 : index
      %c2_84 = arith.constant 2 : index
      %142 = vector.load %arg9[%c0_83, %c2_84] : memref<8x4xf32, #tpu.memory_space<vmem>>, vector<8x1xf32>
      %143 = vector.broadcast %142 : vector<8x1xf32> to vector<8x8xf32>
      %144 = arith.divf %141, %143 : vector<8x8xf32>
      %c0_85 = arith.constant 0 : index
      %c16_86 = arith.constant 16 : index
      %145 = vector.load %arg7[%c0_85, %c16_86] : memref<8x32xf32, #tpu.memory_space<vmem>>, vector<8x8xf32>
      tpu.vector_store %arg7[%c0_85, %c16_86], %144 {strides = array<i32>} : memref<8x32xf32, #tpu.memory_space<vmem>>, vector<8x8xf32>,
      %c0_87 = arith.constant 0 : index
      %c24_88 = arith.constant 24 : index
      %146 = vector.load %arg7[%c0_87, %c24_88] : memref<8x32xf32, #tpu.memory_space<vmem>>, vector<8x8xf32>
      %c0_89 = arith.constant 0 : index
      %c3_90 = arith.constant 3 : index
      %147 = vector.load %arg9[%c0_89, %c3_90] : memref<8x4xf32, #tpu.memory_space<vmem>>, vector<8x1xf32>
      %148 = vector.broadcast %147 : vector<8x1xf32> to vector<8x8xf32>
      %149 = arith.divf %146, %148 : vector<8x8xf32>
      %c0_91 = arith.constant 0 : index
      %c24_92 = arith.constant 24 : index
      %150 = vector.load %arg7[%c0_91, %c24_92] : memref<8x32xf32, #tpu.memory_space<vmem>>, vector<8x8xf32>
      tpu.vector_store %arg7[%c0_91, %c24_92], %149 {strides = array<i32>} : memref<8x32xf32, #tpu.memory_space<vmem>>, vector<8x8xf32>,
      %c0_93 = arith.constant 0 : index
      %c0_94 = arith.constant 0 : index
      %151 = vector.load %arg7[%c0_93, %c0_94] : memref<8x32xf32, #tpu.memory_space<vmem>>, vector<8x32xf32>
      %152 = arith.truncf %151 : vector<8x32xf32> to vector<8x32xbf16>
      %c0_95 = arith.constant 0 : index
      %c0_96 = arith.constant 0 : index
      %c0_97 = arith.constant 0 : index
      %153 = vector.load %arg6[%c0_95, %c0_96, %c0_97] : memref<1x8x32xbf16, #tpu.memory_space<vmem>>, vector<1x8x32xbf16>
      %154 = vector.shape_cast %153 : vector<1x8x32xbf16> to vector<8x32xbf16>
      %155 = vector.shape_cast %152 : vector<8x32xbf16> to vector<1x8x32xbf16>
      tpu.vector_store %arg6[%c0_95, %c0_96, %c0_97], %155 {strides = array<i32>} : memref<1x8x32xbf16, #tpu.memory_space<vmem>>, vector<1x8x32xbf16>,
    } else {
    }
    return
  }
  func.func @transform_0(%arg0: i32, %arg1: i32, %arg2: i32) -> (i32, i32, i32) {
    %c0_i32 = arith.constant 0 : i32
    %c0_i32_0 = arith.constant 0 : i32
    return %arg0, %arg1, %c0_i32 : i32, i32, i32
  }
  func.func @transform_1(%arg0: i32, %arg1: i32, %arg2: i32) -> (i32, i32, i32) {
    %c0_i32 = arith.constant 0 : i32
    %c0_i32_0 = arith.constant 0 : i32
    return %arg0, %arg2, %c0_i32 : i32, i32, i32
  }
  func.func @transform_2(%arg0: i32, %arg1: i32, %arg2: i32) -> (i32, i32, i32) {
    %c0_i32 = arith.constant 0 : i32
    %c0_i32_0 = arith.constant 0 : i32
    return %arg0, %c0_i32, %arg2 : i32, i32, i32
  }
  func.func @transform_3(%arg0: i32, %arg1: i32, %arg2: i32) -> (i32, i32, i32) {
    %c0_i32 = arith.constant 0 : i32
    %c0_i32_0 = arith.constant 0 : i32
    return %arg0, %arg1, %c0_i32 : i32, i32, i32
  }
}

module attributes {stable_mosaic.version = 11 : i64} {
  func.func @_linear_kernel(%arg0: i32, %arg1: i32, %arg2: i32, %arg3: memref<16x32xbf16, #tpu.memory_space<vmem>>, %arg4: memref<32x64xbf16, #tpu.memory_space<vmem>>, %arg5: memref<1x64xf32, #tpu.memory_space<vmem>>, %arg6: memref<16x64xbf16, #tpu.memory_space<vmem>>) attributes {dimension_semantics = [#tpu.dimension_semantics<parallel>, #tpu.dimension_semantics<parallel>, #tpu.dimension_semantics<arbitrary>], iteration_bounds = array<i64: 1, 1, 1>, scalar_prefetch = 0 : i64, scratch_operands = 0 : i64, tpu.core_type = #tpu.core_type<tc>, window_params = [{transform_indices = @transform_0, window_bounds = array<i64: 16, 32>}, {transform_indices = @transform_1, window_bounds = array<i64: 32, 64>}, {transform_indices = @transform_2, window_bounds = array<i64: 1, 64>}, {transform_indices = @transform_3, window_bounds = array<i64: 16, 64>}]} {
    %c0 = arith.constant 0 : index
    %c0_0 = arith.constant 0 : index
    %0 = vector.load %arg3[%c0, %c0_0] : memref<16x32xbf16, #tpu.memory_space<vmem>>, vector<16x32xbf16>
    %c0_1 = arith.constant 0 : index
    %c0_2 = arith.constant 0 : index
    %1 = vector.load %arg4[%c0_1, %c0_2] : memref<32x64xbf16, #tpu.memory_space<vmem>>, vector<32x64xbf16>
    %cst = arith.constant dense<0.000000e+00> : vector<16x64xf32>
    %2 = tpu.matmul %0, %1, %cst {dimension_numbers = #tpu.dot_dimension_numbers<[1], [0], [0], [1], [0, 0, 1, 1], [], []>} : vector<16x32xbf16>, vector<32x64xbf16>, vector<16x64xf32> -> vector<16x64xf32>
    %c0_3 = arith.constant 0 : index
    %c0_4 = arith.constant 0 : index
    %3 = vector.load %arg5[%c0_3, %c0_4] : memref<1x64xf32, #tpu.memory_space<vmem>>, vector<1x64xf32>
    %4 = vector.broadcast %3 : vector<1x64xf32> to vector<16x64xf32>
    %5 = arith.addf %2, %4 : vector<16x64xf32>
    %6 = arith.truncf %5 : vector<16x64xf32> to vector<16x64xbf16>
    %c0_5 = arith.constant 0 : index
    %c0_6 = arith.constant 0 : index
    %7 = vector.load %arg6[%c0_5, %c0_6] : memref<16x64xbf16, #tpu.memory_space<vmem>>, vector<16x64xbf16>
    tpu.vector_store %arg6[%c0_5, %c0_6], %6 {strides = array<i32>} : memref<16x64xbf16, #tpu.memory_space<vmem>>, vector<16x64xbf16>,
    return
  }
  func.func @transform_0(%arg0: i32, %arg1: i32, %arg2: i32) -> (i32, i32) {
    %c0_i32 = arith.constant 0 : i32
    return %arg0, %arg2 : i32, i32
  }
  func.func @transform_1(%arg0: i32, %arg1: i32, %arg2: i32) -> (i32, i32) {
    %c0_i32 = arith.constant 0 : i32
    return %arg2, %arg1 : i32, i32
  }
  func.func @transform_2(%arg0: i32, %arg1: i32, %arg2: i32) -> (i32, i32) {
    %c0_i32 = arith.constant 0 : i32
    %c0_i32_0 = arith.constant 0 : i32
    return %c0_i32, %arg1 : i32, i32
  }
  func.func @transform_3(%arg0: i32, %arg1: i32, %arg2: i32) -> (i32, i32) {
    %c0_i32 = arith.constant 0 : i32
    return %arg0, %arg1 : i32, i32
  }
}

module attributes {stable_mosaic.version = 11 : i64} {
  func.func @_linear_kernel(%arg0: i32, %arg1: i32, %arg2: i32, %arg3: memref<16x32xbf16, #tpu.memory_space<vmem>>, %arg4: memref<32x64xbf16, #tpu.memory_space<vmem>>, %arg5: memref<1x64xf32, #tpu.memory_space<vmem>>, %arg6: memref<16x64xbf16, #tpu.memory_space<vmem>>) attributes {dimension_semantics = [#tpu.dimension_semantics<parallel>, #tpu.dimension_semantics<parallel>, #tpu.dimension_semantics<arbitrary>], iteration_bounds = array<i64: 1, 1, 1>, scalar_prefetch = 0 : i64, scratch_operands = 0 : i64, tpu.core_type = #tpu.core_type<tc>, window_params = [{transform_indices = @transform_0, window_bounds = array<i64: 16, 32>}, {transform_indices = @transform_1, window_bounds = array<i64: 32, 64>}, {transform_indices = @transform_2, window_bounds = array<i64: 1, 64>}, {transform_indices = @transform_3, window_bounds = array<i64: 16, 64>}]} {
    %c0 = arith.constant 0 : index
    %c0_0 = arith.constant 0 : index
    %0 = vector.load %arg3[%c0, %c0_0] : memref<16x32xbf16, #tpu.memory_space<vmem>>, vector<16x32xbf16>
    %c0_1 = arith.constant 0 : index
    %c0_2 = arith.constant 0 : index
    %1 = vector.load %arg4[%c0_1, %c0_2] : memref<32x64xbf16, #tpu.memory_space<vmem>>, vector<32x64xbf16>
    %cst = arith.constant dense<0.000000e+00> : vector<16x64xf32>
    %2 = tpu.matmul %0, %1, %cst {dimension_numbers = #tpu.dot_dimension_numbers<[1], [0], [0], [1], [0, 0, 1, 1], [], []>} : vector<16x32xbf16>, vector<32x64xbf16>, vector<16x64xf32> -> vector<16x64xf32>
    %c0_3 = arith.constant 0 : index
    %c0_4 = arith.constant 0 : index
    %3 = vector.load %arg5[%c0_3, %c0_4] : memref<1x64xf32, #tpu.memory_space<vmem>>, vector<1x64xf32>
    %4 = vector.broadcast %3 : vector<1x64xf32> to vector<16x64xf32>
    %5 = arith.addf %2, %4 : vector<16x64xf32>
    %cst_5 = arith.constant 0.000000e+00 : f32
    %6 = vector.broadcast %cst_5 : f32 to vector<16x64xf32>
    %7 = arith.maximumf %5, %6 : vector<16x64xf32>
    %8 = arith.truncf %7 : vector<16x64xf32> to vector<16x64xbf16>
    %c0_6 = arith.constant 0 : index
    %c0_7 = arith.constant 0 : index
    %9 = vector.load %arg6[%c0_6, %c0_7] : memref<16x64xbf16, #tpu.memory_space<vmem>>, vector<16x64xbf16>
    tpu.vector_store %arg6[%c0_6, %c0_7], %8 {strides = array<i32>} : memref<16x64xbf16, #tpu.memory_space<vmem>>, vector<16x64xbf16>,
    return
  }
  func.func @transform_0(%arg0: i32, %arg1: i32, %arg2: i32) -> (i32, i32) {
    %c0_i32 = arith.constant 0 : i32
    return %arg0, %arg2 : i32, i32
  }
  func.func @transform_1(%arg0: i32, %arg1: i32, %arg2: i32) -> (i32, i32) {
    %c0_i32 = arith.constant 0 : i32
    return %arg2, %arg1 : i32, i32
  }
  func.func @transform_2(%arg0: i32, %arg1: i32, %arg2: i32) -> (i32, i32) {
    %c0_i32 = arith.constant 0 : i32
    %c0_i32_0 = arith.constant 0 : i32
    return %c0_i32, %arg1 : i32, i32
  }
  func.func @transform_3(%arg0: i32, %arg1: i32, %arg2: i32) -> (i32, i32) {
    %c0_i32 = arith.constant 0 : i32
    return %arg0, %arg1 : i32, i32
  }
}

module attributes {stable_mosaic.version = 11 : i64} {
  func.func @_linear_kernel(%arg0: i32, %arg1: i32, %arg2: i32, %arg3: memref<16x64xbf16, #tpu.memory_space<vmem>>, %arg4: memref<64x32xbf16, #tpu.memory_space<vmem>>, %arg5: memref<1x32xf32, #tpu.memory_space<vmem>>, %arg6: memref<16x32xbf16, #tpu.memory_space<vmem>>, %arg7: memref<16x32xbf16, #tpu.memory_space<vmem>>) attributes {dimension_semantics = [#tpu.dimension_semantics<parallel>, #tpu.dimension_semantics<parallel>, #tpu.dimension_semantics<arbitrary>], iteration_bounds = array<i64: 1, 1, 1>, scalar_prefetch = 0 : i64, scratch_operands = 0 : i64, tpu.core_type = #tpu.core_type<tc>, window_params = [{transform_indices = @transform_0, window_bounds = array<i64: 16, 64>}, {transform_indices = @transform_1, window_bounds = array<i64: 64, 32>}, {transform_indices = @transform_2, window_bounds = array<i64: 1, 32>}, {transform_indices = @transform_3, window_bounds = array<i64: 16, 32>}, {transform_indices = @transform_4, window_bounds = array<i64: 16, 32>}]} {
    %c0 = arith.constant 0 : index
    %c0_0 = arith.constant 0 : index
    %0 = vector.load %arg3[%c0, %c0_0] : memref<16x64xbf16, #tpu.memory_space<vmem>>, vector<16x64xbf16>
    %c0_1 = arith.constant 0 : index
    %c0_2 = arith.constant 0 : index
    %1 = vector.load %arg4[%c0_1, %c0_2] : memref<64x32xbf16, #tpu.memory_space<vmem>>, vector<64x32xbf16>
    %cst = arith.constant dense<0.000000e+00> : vector<16x32xf32>
    %2 = tpu.matmul %0, %1, %cst {dimension_numbers = #tpu.dot_dimension_numbers<[1], [0], [0], [1], [0, 0, 1, 1], [], []>} : vector<16x64xbf16>, vector<64x32xbf16>, vector<16x32xf32> -> vector<16x32xf32>
    %c0_3 = arith.constant 0 : index
    %c0_4 = arith.constant 0 : index
    %3 = vector.load %arg5[%c0_3, %c0_4] : memref<1x32xf32, #tpu.memory_space<vmem>>, vector<1x32xf32>
    %4 = vector.broadcast %3 : vector<1x32xf32> to vector<16x32xf32>
    %5 = arith.addf %2, %4 : vector<16x32xf32>
    %c0_5 = arith.constant 0 : index
    %c0_6 = arith.constant 0 : index
    %6 = vector.load %arg6[%c0_5, %c0_6] : memref<16x32xbf16, #tpu.memory_space<vmem>>, vector<16x32xbf16>
    %7 = arith.extf %6 : vector<16x32xbf16> to vector<16x32xf32>
    %8 = arith.addf %5, %7 : vector<16x32xf32>
    %9 = arith.truncf %8 : vector<16x32xf32> to vector<16x32xbf16>
    %c0_7 = arith.constant 0 : index
    %c0_8 = arith.constant 0 : index
    %10 = vector.load %arg7[%c0_7, %c0_8] : memref<16x32xbf16, #tpu.memory_space<vmem>>, vector<16x32xbf16>
    tpu.vector_store %arg7[%c0_7, %c0_8], %9 {strides = array<i32>} : memref<16x32xbf16, #tpu.memory_space<vmem>>, vector<16x32xbf16>,
    return
  }
  func.func @transform_0(%arg0: i32, %arg1: i32, %arg2: i32) -> (i32, i32) {
    %c0_i32 = arith.constant 0 : i32
    return %arg0, %arg2 : i32, i32
  }
  func.func @transform_1(%arg0: i32, %arg1: i32, %arg2: i32) -> (i32, i32) {
    %c0_i32 = arith.constant 0 : i32
    return %arg2, %arg1 : i32, i32
  }
  func.func @transform_2(%arg0: i32, %arg1: i32, %arg2: i32) -> (i32, i32) {
    %c0_i32 = arith.constant 0 : i32
    %c0_i32_0 = arith.constant 0 : i32
    return %c0_i32, %arg1 : i32, i32
  }
  func.func @transform_3(%arg0: i32, %arg1: i32, %arg2: i32) -> (i32, i32) {
    %c0_i32 = arith.constant 0 : i32
    return %arg0, %arg1 : i32, i32
  }
  func.func @transform_4(%arg0: i32, %arg1: i32, %arg2: i32) -> (i32, i32) {
    %c0_i32 = arith.constant 0 : i32
    return %arg0, %arg1 : i32, i32
  }
}

module attributes {stable_mosaic.version = 11 : i64} {
  func.func @_mha_kernel(%arg0: i32, %arg1: i32, %arg2: i32, %arg3: memref<1x8x96xbf16, #tpu.memory_space<vmem>>, %arg4: memref<1x8x96xbf16, #tpu.memory_space<vmem>>, %arg5: memref<1x1x8xf32, #tpu.memory_space<vmem>>, %arg6: memref<1x8x32xbf16, #tpu.memory_space<vmem>>, %arg7: memref<8x32xf32, #tpu.memory_space<vmem>>, %arg8: memref<8x4xf32, #tpu.memory_space<vmem>>, %arg9: memref<8x4xf32, #tpu.memory_space<vmem>>) attributes {dimension_semantics = [#tpu.dimension_semantics<parallel>, #tpu.dimension_semantics<parallel>, #tpu.dimension_semantics<arbitrary>], iteration_bounds = array<i64: 2, 1, 1>, scalar_prefetch = 0 : i64, scratch_operands = 3 : i64, tpu.core_type = #tpu.core_type<tc>, window_params = [{transform_indices = @transform_0, window_bounds = array<i64: 1, 8, 96>}, {transform_indices = @transform_1, window_bounds = array<i64: 1, 8, 96>}, {transform_indices = @transform_2, window_bounds = array<i64: 1, 1, 8>}, {transform_indices = @transform_3, window_bounds = array<i64: 1, 8, 32>}]} {
    %c0_i32 = arith.constant 0 : i32
    %0 = arith.cmpi eq, %arg2, %c0_i32 : i32
    %1 = arith.extui %0 : i1 to i32
    %c0_i32_0 = arith.constant 0 : i32
    %2 = arith.cmpi ne, %1, %c0_i32_0 : i32
    scf.if %2 {
      %cst = arith.constant 0.000000e+00 : f32
      %13 = vector.broadcast %cst : f32 to vector<8x32xf32>
      %c0 = arith.constant 0 : index
      %c0_6 = arith.constant 0 : index
      %14 = vector.load %arg7[%c0, %c0_6] : memref<8x32xf32, #tpu.memory_space<vmem>>, vector<8x32xf32>
      tpu.vector_store %arg7[%c0, %c0_6], %13 {strides = array<i32>} : memref<8x32xf32, #tpu.memory_space<vmem>>, vector<8x32xf32>,
      %cst_7 = arith.constant -1.000000e+09 : f32
      %15 = vector.broadcast %cst_7 : f32 to vector<8x4xf32>
      %c0_8 = arith.constant 0 : index
      %c0_9 = arith.constant 0 : index
      %16 = vector.load %arg8[%c0_8, %c0_9] : memref<8x4xf32, #tpu.memory_space<vmem>>, vector<8x4xf32>
      tpu.vector_store %arg8[%c0_8, %c0_9], %15 {strides = array<i32>} : memref<8x4xf32, #tpu.memory_space<vmem>>, vector<8x4xf32>,
      %cst_10 = arith.constant 0.000000e+00 : f32
      %17 = vector.broadcast %cst_10 : f32 to vector<8x4xf32>
      %c0_11 = arith.constant 0 : index
      %c0_12 = arith.constant 0 : index
      %18 = vector.load %arg9[%c0_11, %c0_12] : memref<8x4xf32, #tpu.memory_space<vmem>>, vector<8x4xf32>
      tpu.vector_store %arg9[%c0_11, %c0_12], %17 {strides = array<i32>} : memref<8x4xf32, #tpu.memory_space<vmem>>, vector<8x4xf32>,
    } else {
    }
    %c8_i32 = arith.constant 8 : i32
    %3 = arith.muli %arg2, %c8_i32 : i32
    %c8_i32_1 = arith.constant 8 : i32
    %4 = arith.muli %arg1, %c8_i32_1 : i32
    %c8_i32_2 = arith.constant 8 : i32
    %5 = arith.addi %4, %c8_i32_2 : i32
    %c1_i32 = arith.constant 1 : i32
    %6 = arith.subi %5, %c1_i32 : i32
    %7 = arith.cmpi sle, %3, %6 : i32
    %8 = arith.extui %7 : i1 to i32
    %c0_i32_3 = arith.constant 0 : i32
    %9 = arith.cmpi ne, %8, %c0_i32_3 : i32
    scf.if %9 {
      %c0 = arith.constant 0 : index
      %c0_6 = arith.constant 0 : index
      %c0_7 = arith.constant 0 : index
      %13 = vector.load %arg3[%c0, %c0_6, %c0_7] : memref<1x8x96xbf16, #tpu.memory_space<vmem>>, vector<1x8x96xbf16>
      %14 = vector.shape_cast %13 : vector<1x8x96xbf16> to vector<8x96xbf16>
      %c0_8 = arith.constant 0 : index
      %c0_9 = arith.constant 0 : index
      %c0_10 = arith.constant 0 : index
      %15 = vector.load %arg4[%c0_8, %c0_9, %c0_10] : memref<1x8x96xbf16, #tpu.memory_space<vmem>>, vector<1x8x96xbf16>
      %16 = vector.shape_cast %15 : vector<1x8x96xbf16> to vector<8x96xbf16>
      %17 = vector.extract_strided_slice %14 {offsets = [0, 0], sizes = [8, 32], strides = [1, 1]} : vector<8x96xbf16> to vector<8x32xbf16>
      %cst = arith.constant 3.535160e-01 : bf16
      %18 = vector.broadcast %cst : bf16 to vector<8x32xbf16>
      %19 = arith.mulf %17, %18 : vector<8x32xbf16>
      %20 = vector.extract_strided_slice %16 {offsets = [0, 32], sizes = [8, 32], strides = [1, 1]} : vector<8x96xbf16> to vector<8x32xbf16>
      %21 = vector.extract_strided_slice %16 {offsets = [0, 64], sizes = [8, 32], strides = [1, 1]} : vector<8x96xbf16> to vector<8x32xbf16>
      %c0_11 = arith.constant 0 : index
      %c0_12 = arith.constant 0 : index
      %c0_13 = arith.constant 0 : index
      %22 = vector.load %arg5[%c0_11, %c0_12, %c0_13] : memref<1x1x8xf32, #tpu.memory_space<vmem>>, vector<1x1x8xf32>
      %23 = vector.shape_cast %22 : vector<1x1x8xf32> to vector<1x8xf32>
      %24 = vector.shape_cast %23 : vector<1x8xf32> to vector<1x8xf32>
      %25 = vector.broadcast %24 : vector<1x8xf32> to vector<8x8xf32>
      %c8_i32_14 = arith.constant 8 : i32
      %26 = arith.muli %arg1, %c8_i32_14 : i32
      %27 = tpu.iota {dimensions = array<i32: 0>} : vector<8x8xi32>
      %28 = vector.broadcast %26 : i32 to vector<8x8xi32>
      %29 = arith.addi %28, %27 : vector<8x8xi32>
      %c8_i32_15 = arith.constant 8 : i32
      %30 = arith.muli %arg2, %c8_i32_15 : i32
      %31 = tpu.iota {dimensions = array<i32: 1>} : vector<8x8xi32>
      %32 = vector.broadcast %30 : i32 to vector<8x8xi32>
      %33 = arith.addi %32, %31 : vector<8x8xi32>
      %34 = arith.cmpi sgt, %33, %29 : vector<8x8xi32>
      %cst_16 = arith.constant -1.000000e+09 : f32
      %35 = vector.broadcast %cst_16 : f32 to vector<8x8xf32>
      %36 = arith.select %34, %35, %25 : vector<8x8xi1>, vector<8x8xf32>
      %37 = vector.extract_strided_slice %19 {offsets = [0, 0], sizes = [8, 8], strides = [1, 1]} : vector<8x32xbf16> to vector<8x8xbf16>
      %38 = vector.extract_strided_slice %20 {offsets = [0, 0], sizes = [8, 8], strides = [1, 1]} : vector<8x32xbf16> to vector<8x8xbf16>
      %cst_17 = arith.constant dense<0.000000e+00> : vector<8x8xf32>
      %39 = tpu.matmul %37, %38, %cst_17 {dimension_numbers = #tpu.dot_dimension_numbers<[1], [1], [0], [0], [0, 0, 1, 0], [], []>} : vector<8x8xbf16>, vector<8x8xbf16>, vector<8x8xf32> -> vector<8x8xf32>
      %40 = arith.addf %39, %36 : vector<8x8xf32>
      %c0_18 = arith.constant 0 : index
      %c0_19 = arith.constant 0 : index
      %41 = vector.load %arg8[%c0_18, %c0_19] : memref<8x4xf32, #tpu.memory_space<vmem>>, vector<8x1xf32>
      %cst_20 = arith.constant dense<0xFF800000> : vector<8xf32>
      %42 = vector.multi_reduction <maximumf>, %40, %cst_20 [1] : vector<8x8xf32> to vector<8xf32>
      %43 = vector.shape_cast %42 : vector<8xf32> to vector<8x1xf32>
      %44 = arith.maximumf %41, %43 : vector<8x1xf32>
      %45 = arith.subf %41, %44 : vector<8x1xf32>
      %46 = math.exp %45 : vector<8x1xf32>
      %47 = vector.broadcast %44 : vector<8x1xf32> to vector<8x8xf32>
      %48 = arith.subf %40, %47 : vector<8x8xf32>
      %49 = math.exp %48 : vector<8x8xf32>
      %c0_21 = arith.constant 0 : index
      %c0_22 = arith.constant 0 : index
      %50 = vector.load %arg9[%c0_21, %c0_22] : memref<8x4xf32, #tpu.memory_space<vmem>>, vector<8x1xf32>
      %51 = arith.mulf %46, %50 : vector<8x1xf32>
      %cst_23 = arith.constant dense<0.000000e+00> : vector<8xf32>
      %52 = vector.multi_reduction <add>, %49, %cst_23 [1] : vector<8x8xf32> to vector<8xf32>
      %53 = vector.shape_cast %52 : vector<8xf32> to vector<8x1xf32>
      %54 = arith.addf %51, %53 : vector<8x1xf32>
      %c0_24 = arith.constant 0 : index
      %c0_25 = arith.constant 0 : index
      %55 = vector.load %arg9[%c0_24, %c0_25] : memref<8x4xf32, #tpu.memory_space<vmem>>, vector<8x1xf32>
      tpu.vector_store %arg9[%c0_24, %c0_25], %54 {strides = array<i32>} : memref<8x4xf32, #tpu.memory_space<vmem>>, vector<8x1xf32>,
      %c0_26 = arith.constant 0 : index
      %c0_27 = arith.constant 0 : index
      %56 = vector.load %arg8[%c0_26, %c0_27] : memref<8x4xf32, #tpu.memory_space<vmem>>, vector<8x1xf32>
      tpu.vector_store %arg8[%c0_26, %c0_27], %44 {strides = array<i32>} : memref<8x4xf32, #tpu.memory_space<vmem>>, vector<8x1xf32>,
      %c0_28 = arith.constant 0 : index
      %c0_29 = arith.constant 0 : index
      %57 = vector.load %arg7[%c0_28, %c0_29] : memref<8x32xf32, #tpu.memory_space<vmem>>, vector<8x8xf32>
      %58 = vector.broadcast %46 : vector<8x1xf32> to vector<8x8xf32>
      %59 = arith.mulf %58, %57 : vector<8x8xf32>
      %60 = arith.truncf %49 : vector<8x8xf32> to vector<8x8xbf16>
      %61 = vector.extract_strided_slice %21 {offsets = [0, 0], sizes = [8, 8], strides = [1, 1]} : vector<8x32xbf16> to vector<8x8xbf16>
      %cst_30 = arith.constant dense<0.000000e+00> : vector<8x8xf32>
      %62 = tpu.matmul %60, %61, %cst_30 {dimension_numbers = #tpu.dot_dimension_numbers<[1], [0], [0], [1], [0, 0, 1, 1], [], []>} : vector<8x8xbf16>, vector<8x8xbf16>, vector<8x8xf32> -> vector<8x8xf32>
      %63 = arith.addf %59, %62 : vector<8x8xf32>
      %c0_31 = arith.constant 0 : index
      %c0_32 = arith.constant 0 : index
      %64 = vector.load %arg7[%c0_31, %c0_32] : memref<8x32xf32, #tpu.memory_space<vmem>>, vector<8x8xf32>
      tpu.vector_store %arg7[%c0_31, %c0_32], %63 {strides = array<i32>} : memref<8x32xf32, #tpu.memory_space<vmem>>, vector<8x8xf32>,
      %65 = vector.extract_strided_slice %19 {offsets = [0, 8], sizes = [8, 8], strides = [1, 1]} : vector<8x32xbf16> to vector<8x8xbf16>
      %66 = vector.extract_strided_slice %20 {offsets = [0, 8], sizes = [8, 8], strides = [1, 1]} : vector<8x32xbf16> to vector<8x8xbf16>
      %cst_33 = arith.constant dense<0.000000e+00> : vector<8x8xf32>
      %67 = tpu.matmul %65, %66, %cst_33 {dimension_numbers = #tpu.dot_dimension_numbers<[1], [1], [0], [0], [0, 0, 1, 0], [], []>} : vector<8x8xbf16>, vector<8x8xbf16>, vector<8x8xf32> -> vector<8x8xf32>
      %68 = arith.addf %67, %36 : vector<8x8xf32>
      %c0_34 = arith.constant 0 : index
      %c1 = arith.constant 1 : index
      %69 = vector.load %arg8[%c0_34, %c1] : memref<8x4xf32, #tpu.memory_space<vmem>>, vector<8x1xf32>
      %cst_35 = arith.constant dense<0xFF800000> : vector<8xf32>
      %70 = vector.multi_reduction <maximumf>, %68, %cst_35 [1] : vector<8x8xf32> to vector<8xf32>
      %71 = vector.shape_cast %70 : vector<8xf32> to vector<8x1xf32>
      %72 = arith.maximumf %69, %71 : vector<8x1xf32>
      %73 = arith.subf %69, %72 : vector<8x1xf32>
      %74 = math.exp %73 : vector<8x1xf32>
      %75 = vector.broadcast %72 : vector<8x1xf32> to vector<8x8xf32>
      %76 = arith.subf %68, %75 : vector<8x8xf32>
      %77 = math.exp %76 : vector<8x8xf32>
      %c0_36 = arith.constant 0 : index
      %c1_37 = arith.constant 1 : index
      %78 = vector.load %arg9[%c0_36, %c1_37] : memref<8x4xf32, #tpu.memory_space<vmem>>, vector<8x1xf32>
      %79 = arith.mulf %74, %78 : vector<8x1xf32>
      %cst_38 = arith.constant dense<0.000000e+00> : vector<8xf32>
      %80 = vector.multi_reduction <add>, %77, %cst_38 [1] : vector<8x8xf32> to vector<8xf32>
      %81 = vector.shape_cast %80 : vector<8xf32> to vector<8x1xf32>
      %82 = arith.addf %79, %81 : vector<8x1xf32>
      %c0_39 = arith.constant 0 : index
      %c1_40 = arith.constant 1 : index
      %83 = vector.load %arg9[%c0_39, %c1_40] : memref<8x4xf32, #tpu.memory_space<vmem>>, vector<8x1xf32>
      tpu.vector_store %arg9[%c0_39, %c1_40], %82 {strides = array<i32>} : memref<8x4xf32, #tpu.memory_space<vmem>>, vector<8x1xf32>,
      %c0_41 = arith.constant 0 : index
      %c1_42 = arith.constant 1 : index
      %84 = vector.load %arg8[%c0_41, %c1_42] : memref<8x4xf32, #tpu.memory_space<vmem>>, vector<8x1xf32>
      tpu.vector_store %arg8[%c0_41, %c1_42], %72 {strides = array<i32>} : memref<8x4xf32, #tpu.memory_space<vmem>>, vector<8x1xf32>,
      %c0_43 = arith.constant 0 : index
      %c8 = arith.constant 8 : index
      %85 = vector.load %arg7[%c0_43, %c8] : memref<8x32xf32, #tpu.memory_space<vmem>>, vector<8x8xf32>
      %86 = vector.broadcast %74 : vector<8x1xf32> to vector<8x8xf32>
      %87 = arith.mulf %86, %85 : vector<8x8xf32>
      %88 = arith.truncf %77 : vector<8x8xf32> to vector<8x8xbf16>
      %89 = vector.extract_strided_slice %21 {offsets = [0, 8], sizes = [8, 8], strides = [1, 1]} : vector<8x32xbf16> to vector<8x8xbf16>
      %cst_44 = arith.constant dense<0.000000e+00> : vector<8x8xf32>
      %90 = tpu.matmul %88, %89, %cst_44 {dimension_numbers = #tpu.dot_dimension_numbers<[1], [0], [0], [1], [0, 0, 1, 1], [], []>} : vector<8x8xbf16>, vector<8x8xbf16>, vector<8x8xf32> -> vector<8x8xf32>
      %91 = arith.addf %87, %90 : vector<8x8xf32>
      %c0_45 = arith.constant 0 : index
      %c8_46 = arith.constant 8 : index
      %92 = vector.load %arg7[%c0_45, %c8_46] : memref<8x32xf32, #tpu.memory_space<vmem>>, vector<8x8xf32>
      tpu.vector_store %arg7[%c0_45, %c8_46], %91 {strides = array<i32>} : memref<8x32xf32, #tpu.memory_space<vmem>>, vector<8x8xf32>,
      %93 = vector.extract_strided_slice %19 {offsets = [0, 16], sizes = [8, 8], strides = [1, 1]} : vector<8x32xbf16> to vector<8x8xbf16>
      %94 = vector.extract_strided_slice %20 {offsets = [0, 16], sizes = [8, 8], strides = [1, 1]} : vector<8x32xbf16> to vector<8x8xbf16>
      %cst_47 = arith.constant dense<0.000000e+00> : vector<8x8xf32>
      %95 = tpu.matmul %93, %94, %cst_47 {dimension_numbers = #tpu.dot_dimension_numbers<[1], [1], [0], [0], [0, 0, 1, 0], [], []>} : vector<8x8xbf16>, vector<8x8xbf16>, vector<8x8xf32> -> vector<8x8xf32>
      %96 = arith.addf %95, %36 : vector<8x8xf32>
      %c0_48 = arith.constant 0 : index
      %c2 = arith.constant 2 : index
      %97 = vector.load %arg8[%c0_48, %c2] : memref<8x4xf32, #tpu.memory_space<vmem>>, vector<8x1xf32>
      %cst_49 = arith.constant dense<0xFF800000> : vector<8xf32>
      %98 = vector.multi_reduction <maximumf>, %96, %cst_49 [1] : vector<8x8xf32> to vector<8xf32>
      %99 = vector.shape_cast %98 : vector<8xf32> to vector<8x1xf32>
      %100 = arith.maximumf %97, %99 : vector<8x1xf32>
      %101 = arith.subf %97, %100 : vector<8x1xf32>
      %102 = math.exp %101 : vector<8x1xf32>
      %103 = vector.broadcast %100 : vector<8x1xf32> to vector<8x8xf32>
      %104 = arith.subf %96, %103 : vector<8x8xf32>
      %105 = math.exp %104 : vector<8x8xf32>
      %c0_50 = arith.constant 0 : index
      %c2_51 = arith.constant 2 : index
      %106 = vector.load %arg9[%c0_50, %c2_51] : memref<8x4xf32, #tpu.memory_space<vmem>>, vector<8x1xf32>
      %107 = arith.mulf %102, %106 : vector<8x1xf32>
      %cst_52 = arith.constant dense<0.000000e+00> : vector<8xf32>
      %108 = vector.multi_reduction <add>, %105, %cst_52 [1] : vector<8x8xf32> to vector<8xf32>
      %109 = vector.shape_cast %108 : vector<8xf32> to vector<8x1xf32>
      %110 = arith.addf %107, %109 : vector<8x1xf32>
      %c0_53 = arith.constant 0 : index
      %c2_54 = arith.constant 2 : index
      %111 = vector.load %arg9[%c0_53, %c2_54] : memref<8x4xf32, #tpu.memory_space<vmem>>, vector<8x1xf32>
      tpu.vector_store %arg9[%c0_53, %c2_54], %110 {strides = array<i32>} : memref<8x4xf32, #tpu.memory_space<vmem>>, vector<8x1xf32>,
      %c0_55 = arith.constant 0 : index
      %c2_56 = arith.constant 2 : index
      %112 = vector.load %arg8[%c0_55, %c2_56] : memref<8x4xf32, #tpu.memory_space<vmem>>, vector<8x1xf32>
      tpu.vector_store %arg8[%c0_55, %c2_56], %100 {strides = array<i32>} : memref<8x4xf32, #tpu.memory_space<vmem>>, vector<8x1xf32>,
      %c0_57 = arith.constant 0 : index
      %c16 = arith.constant 16 : index
      %113 = vector.load %arg7[%c0_57, %c16] : memref<8x32xf32, #tpu.memory_space<vmem>>, vector<8x8xf32>
      %114 = vector.broadcast %102 : vector<8x1xf32> to vector<8x8xf32>
      %115 = arith.mulf %114, %113 : vector<8x8xf32>
      %116 = arith.truncf %105 : vector<8x8xf32> to vector<8x8xbf16>
      %117 = vector.extract_strided_slice %21 {offsets = [0, 16], sizes = [8, 8], strides = [1, 1]} : vector<8x32xbf16> to vector<8x8xbf16>
      %cst_58 = arith.constant dense<0.000000e+00> : vector<8x8xf32>
      %118 = tpu.matmul %116, %117, %cst_58 {dimension_numbers = #tpu.dot_dimension_numbers<[1], [0], [0], [1], [0, 0, 1, 1], [], []>} : vector<8x8xbf16>, vector<8x8xbf16>, vector<8x8xf32> -> vector<8x8xf32>
      %119 = arith.addf %115, %118 : vector<8x8xf32>
      %c0_59 = arith.constant 0 : index
      %c16_60 = arith.constant 16 : index
      %120 = vector.load %arg7[%c0_59, %c16_60] : memref<8x32xf32, #tpu.memory_space<vmem>>, vector<8x8xf32>
      tpu.vector_store %arg7[%c0_59, %c16_60], %119 {strides = array<i32>} : memref<8x32xf32, #tpu.memory_space<vmem>>, vector<8x8xf32>,
      %121 = vector.extract_strided_slice %19 {offsets = [0, 24], sizes = [8, 8], strides = [1, 1]} : vector<8x32xbf16> to vector<8x8xbf16>
      %122 = vector.extract_strided_slice %20 {offsets = [0, 24], sizes = [8, 8], strides = [1, 1]} : vector<8x32xbf16> to vector<8x8xbf16>
      %cst_61 = arith.constant dense<0.000000e+00> : vector<8x8xf32>
      %123 = tpu.matmul %121, %122, %cst_61 {dimension_numbers = #tpu.dot_dimension_numbers<[1], [1], [0], [0], [0, 0, 1, 0], [], []>} : vector<8x8xbf16>, vector<8x8xbf16>, vector<8x8xf32> -> vector<8x8xf32>
      %124 = arith.addf %123, %36 : vector<8x8xf32>
      %c0_62 = arith.constant 0 : index
      %c3 = arith.constant 3 : index
      %125 = vector.load %arg8[%c0_62, %c3] : memref<8x4xf32, #tpu.memory_space<vmem>>, vector<8x1xf32>
      %cst_63 = arith.constant dense<0xFF800000> : vector<8xf32>
      %126 = vector.multi_reduction <maximumf>, %124, %cst_63 [1] : vector<8x8xf32> to vector<8xf32>
      %127 = vector.shape_cast %126 : vector<8xf32> to vector<8x1xf32>
      %128 = arith.maximumf %125, %127 : vector<8x1xf32>
      %129 = arith.subf %125, %128 : vector<8x1xf32>
      %130 = math.exp %129 : vector<8x1xf32>
      %131 = vector.broadcast %128 : vector<8x1xf32> to vector<8x8xf32>
      %132 = arith.subf %124, %131 : vector<8x8xf32>
      %133 = math.exp %132 : vector<8x8xf32>
      %c0_64 = arith.constant 0 : index
      %c3_65 = arith.constant 3 : index
      %134 = vector.load %arg9[%c0_64, %c3_65] : memref<8x4xf32, #tpu.memory_space<vmem>>, vector<8x1xf32>
      %135 = arith.mulf %130, %134 : vector<8x1xf32>
      %cst_66 = arith.constant dense<0.000000e+00> : vector<8xf32>
      %136 = vector.multi_reduction <add>, %133, %cst_66 [1] : vector<8x8xf32> to vector<8xf32>
      %137 = vector.shape_cast %136 : vector<8xf32> to vector<8x1xf32>
      %138 = arith.addf %135, %137 : vector<8x1xf32>
      %c0_67 = arith.constant 0 : index
      %c3_68 = arith.constant 3 : index
      %139 = vector.load %arg9[%c0_67, %c3_68] : memref<8x4xf32, #tpu.memory_space<vmem>>, vector<8x1xf32>
      tpu.vector_store %arg9[%c0_67, %c3_68], %138 {strides = array<i32>} : memref<8x4xf32, #tpu.memory_space<vmem>>, vector<8x1xf32>,
      %c0_69 = arith.constant 0 : index
      %c3_70 = arith.constant 3 : index
      %140 = vector.load %arg8[%c0_69, %c3_70] : memref<8x4xf32, #tpu.memory_space<vmem>>, vector<8x1xf32>
      tpu.vector_store %arg8[%c0_69, %c3_70], %128 {strides = array<i32>} : memref<8x4xf32, #tpu.memory_space<vmem>>, vector<8x1xf32>,
      %c0_71 = arith.constant 0 : index
      %c24 = arith.constant 24 : index
      %141 = vector.load %arg7[%c0_71, %c24] : memref<8x32xf32, #tpu.memory_space<vmem>>, vector<8x8xf32>
      %142 = vector.broadcast %130 : vector<8x1xf32> to vector<8x8xf32>
      %143 = arith.mulf %142, %141 : vector<8x8xf32>
      %144 = arith.truncf %133 : vector<8x8xf32> to vector<8x8xbf16>
      %145 = vector.extract_strided_slice %21 {offsets = [0, 24], sizes = [8, 8], strides = [1, 1]} : vector<8x32xbf16> to vector<8x8xbf16>
      %cst_72 = arith.constant dense<0.000000e+00> : vector<8x8xf32>
      %146 = tpu.matmul %144, %145, %cst_72 {dimension_numbers = #tpu.dot_dimension_numbers<[1], [0], [0], [1], [0, 0, 1, 1], [], []>} : vector<8x8xbf16>, vector<8x8xbf16>, vector<8x8xf32> -> vector<8x8xf32>
      %147 = arith.addf %143, %146 : vector<8x8xf32>
      %c0_73 = arith.constant 0 : index
      %c24_74 = arith.constant 24 : index
      %148 = vector.load %arg7[%c0_73, %c24_74] : memref<8x32xf32, #tpu.memory_space<vmem>>, vector<8x8xf32>
      tpu.vector_store %arg7[%c0_73, %c24_74], %147 {strides = array<i32>} : memref<8x32xf32, #tpu.memory_space<vmem>>, vector<8x8xf32>,
    } else {
    }
    %c0_i32_4 = arith.constant 0 : i32
    %10 = arith.cmpi eq, %arg2, %c0_i32_4 : i32
    %11 = arith.extui %10 : i1 to i32
    %c0_i32_5 = arith.constant 0 : i32
    %12 = arith.cmpi ne, %11, %c0_i32_5 : i32
    scf.if %12 {
      %c0 = arith.constant 0 : index
      %c0_6 = arith.constant 0 : index
      %13 = vector.load %arg7[%c0, %c0_6] : memref<8x32xf32, #tpu.memory_space<vmem>>, vector<8x8xf32>
      %c0_7 = arith.constant 0 : index
      %c0_8 = arith.constant 0 : index
      %14 = vector.load %arg9[%c0_7, %c0_8] : memref<8x4xf32, #tpu.memory_space<vmem>>, vector<8x1xf32>
      %15 = vector.broadcast %14 : vector<8x1xf32> to vector<8x8xf32>
      %16 = arith.divf %13, %15 : vector<8x8xf32>
      %c0_9 = arith.constant 0 : index
      %c0_10 = arith.constant 0 : index
      %17 = vector.load %arg7[%c0_9, %c0_10] : memref<8x32xf32, #tpu.memory_space<vmem>>, vector<8x8xf32>
      tpu.vector_store %arg7[%c0_9, %c0_10], %16 {strides = array<i32>} : memref<8x32xf32, #tpu.memory_space<vmem>>, vector<8x8xf32>,
      %c0_11 = arith.constant 0 : index
      %c8 = arith.constant 8 : index
      %18 = vector.load %arg7[%c0_11, %c8] : memref<8x32xf32, #tpu.memory_space<vmem>>, vector<8x8xf32>
      %c0_12 = arith.constant 0 : index
      %c1 = arith.constant 1 : index
      %19 = vector.load %arg9[%c0_12, %c1] : memref<8x4xf32, #tpu.memory_space<vmem>>, vector<8x1xf32>
      %20 = vector.broadcast %19 : vector<8x1xf32> to vector<8x8xf32>
      %21 = arith.divf %18, %20 : vector<8x8xf32>
      %c0_13 = arith.constant 0 : index
      %c8_14 = arith.constant 8 : index
      %22 = vector.load %arg7[%c0_13, %c8_14] : memref<8x32xf32, #tpu.memory_space<vmem>>, vector<8x8xf32>
      tpu.vector_store %arg7[%c0_13, %c8_14], %21 {strides = array<i32>} : memref<8x32xf32, #tpu.memory_space<vmem>>, vector<8x8xf32>,
      %c0_15 = arith.constant 0 : index
      %c16 = arith.constant 16 : index
      %23 = vector.load %arg7[%c0_15, %c16] : memref<8x32xf32, #tpu.memory_space<vmem>>, vector<8x8xf32>
      %c0_16 = arith.constant 0 : index
      %c2 = arith.constant 2 : index
      %24 = vector.load %arg9[%c0_16, %c2] : memref<8x4xf32, #tpu.memory_space<vmem>>, vector<8x1xf32>
      %25 = vector.broadcast %24 : vector<8x1xf32> to vector<8x8xf32>
      %26 = arith.divf %23, %25 : vector<8x8xf32>
      %c0_17 = arith.constant 0 : index
      %c16_18 = arith.constant 16 : index
      %27 = vector.load %arg7[%c0_17, %c16_18] : memref<8x32xf32, #tpu.memory_space<vmem>>, vector<8x8xf32>
      tpu.vector_store %arg7[%c0_17, %c16_18], %26 {strides = array<i32>} : memref<8x32xf32, #tpu.memory_space<vmem>>, vector<8x8xf32>,
      %c0_19 = arith.constant 0 : index
      %c24 = arith.constant 24 : index
      %28 = vector.load %arg7[%c0_19, %c24] : memref<8x32xf32, #tpu.memory_space<vmem>>, vector<8x8xf32>
      %c0_20 = arith.constant 0 : index
      %c3 = arith.constant 3 : index
      %29 = vector.load %arg9[%c0_20, %c3] : memref<8x4xf32, #tpu.memory_space<vmem>>, vector<8x1xf32>
      %30 = vector.broadcast %29 : vector<8x1xf32> to vector<8x8xf32>
      %31 = arith.divf %28, %30 : vector<8x8xf32>
      %c0_21 = arith.constant 0 : index
      %c24_22 = arith.constant 24 : index
      %32 = vector.load %arg7[%c0_21, %c24_22] : memref<8x32xf32, #tpu.memory_space<vmem>>, vector<8x8xf32>
      tpu.vector_store %arg7[%c0_21, %c24_22], %31 {strides = array<i32>} : memref<8x32xf32, #tpu.memory_space<vmem>>, vector<8x8xf32>,
      %c0_23 = arith.constant 0 : index
      %c0_24 = arith.constant 0 : index
      %33 = vector.load %arg7[%c0_23, %c0_24] : memref<8x32xf32, #tpu.memory_space<vmem>>, vector<8x32xf32>
      %34 = arith.truncf %33 : vector<8x32xf32> to vector<8x32xbf16>
      %c0_25 = arith.constant 0 : index
      %c0_26 = arith.constant 0 : index
      %c0_27 = arith.constant 0 : index
      %35 = vector.load %arg6[%c0_25, %c0_26, %c0_27] : memref<1x8x32xbf16, #tpu.memory_space<vmem>>, vector<1x8x32xbf16>
      %36 = vector.shape_cast %35 : vector<1x8x32xbf16> to vector<8x32xbf16>
      %37 = vector.shape_cast %34 : vector<8x32xbf16> to vector<1x8x32xbf16>
      tpu.vector_store %arg6[%c0_25, %c0_26, %c0_27], %37 {strides = array<i32>} : memref<1x8x32xbf16, #tpu.memory_space<vmem>>, vector<1x8x32xbf16>,
    } else {
    }
    return
  }
  func.func @transform_0(%arg0: i32, %arg1: i32, %arg2: i32) -> (i32, i32, i32) {
    %c0_i32 = arith.constant 0 : i32
    %c0_i32_0 = arith.constant 0 : i32
    return %arg0, %arg1, %c0_i32 : i32, i32, i32
  }
  func.func @transform_1(%arg0: i32, %arg1: i32, %arg2: i32) -> (i32, i32, i32) {
    %c0_i32 = arith.constant 0 : i32
    %c0_i32_0 = arith.constant 0 : i32
    return %arg0, %arg2, %c0_i32 : i32, i32, i32
  }
  func.func @transform_2(%arg0: i32, %arg1: i32, %arg2: i32) -> (i32, i32, i32) {
    %c0_i32 = arith.constant 0 : i32
    %c0_i32_0 = arith.constant 0 : i32
    return %arg0, %c0_i32, %arg2 : i32, i32, i32
  }
  func.func @transform_3(%arg0: i32, %arg1: i32, %arg2: i32) -> (i32, i32, i32) {
    %c0_i32 = arith.constant 0 : i32
    %c0_i32_0 = arith.constant 0 : i32
    return %arg0, %arg1, %c0_i32 : i32, i32, i32
  }
}

module attributes {stable_mosaic.version = 11 : i64} {
  func.func @_linear_kernel(%arg0: i32, %arg1: i32, %arg2: i32, %arg3: memref<16x32xbf16, #tpu.memory_space<vmem>>, %arg4: memref<32x64xbf16, #tpu.memory_space<vmem>>, %arg5: memref<16x64xf32, #tpu.memory_space<vmem>>) attributes {dimension_semantics = [#tpu.dimension_semantics<parallel>, #tpu.dimension_semantics<parallel>, #tpu.dimension_semantics<arbitrary>], iteration_bounds = array<i64: 1, 1, 1>, scalar_prefetch = 0 : i64, scratch_operands = 0 : i64, tpu.core_type = #tpu.core_type<tc>, window_params = [{transform_indices = @transform_0, window_bounds = array<i64: 16, 32>}, {transform_indices = @transform_1, window_bounds = array<i64: 32, 64>}, {transform_indices = @transform_2, window_bounds = array<i64: 16, 64>}]} {
    %c0 = arith.constant 0 : index
    %c0_0 = arith.constant 0 : index
    %0 = vector.load %arg3[%c0, %c0_0] : memref<16x32xbf16, #tpu.memory_space<vmem>>, vector<16x32xbf16>
    %c0_1 = arith.constant 0 : index
    %c0_2 = arith.constant 0 : index
    %1 = vector.load %arg4[%c0_1, %c0_2] : memref<32x64xbf16, #tpu.memory_space<vmem>>, vector<32x64xbf16>
    %cst = arith.constant dense<0.000000e+00> : vector<16x64xf32>
    %2 = tpu.matmul %0, %1, %cst {dimension_numbers = #tpu.dot_dimension_numbers<[1], [0], [0], [1], [0, 0, 1, 1], [], []>} : vector<16x32xbf16>, vector<32x64xbf16>, vector<16x64xf32> -> vector<16x64xf32>
    %c0_3 = arith.constant 0 : index
    %c0_4 = arith.constant 0 : index
    %3 = vector.load %arg5[%c0_3, %c0_4] : memref<16x64xf32, #tpu.memory_space<vmem>>, vector<16x64xf32>
    tpu.vector_store %arg5[%c0_3, %c0_4], %2 {strides = array<i32>} : memref<16x64xf32, #tpu.memory_space<vmem>>, vector<16x64xf32>,
    return
  }
  func.func @transform_0(%arg0: i32, %arg1: i32, %arg2: i32) -> (i32, i32) {
    %c0_i32 = arith.constant 0 : i32
    return %arg0, %arg2 : i32, i32
  }
  func.func @transform_1(%arg0: i32, %arg1: i32, %arg2: i32) -> (i32, i32) {
    %c0_i32 = arith.constant 0 : i32
    return %arg2, %arg1 : i32, i32
  }
  func.func @transform_2(%arg0: i32, %arg1: i32, %arg2: i32) -> (i32, i32) {
    %c0_i32 = arith.constant 0 : i32
    return %arg0, %arg1 : i32, i32
  }
}

module attributes {stable_mosaic.version = 11 : i64} {
  func.func @_mha_kernel(%arg0: i32, %arg1: i32, %arg2: i32, %arg3: memref<1x8x32xbf16, #tpu.memory_space<vmem>>, %arg4: memref<1x8x64xbf16, #tpu.memory_space<vmem>>, %arg5: memref<1x1x8xf32, #tpu.memory_space<vmem>>, %arg6: memref<1x8x32xbf16, #tpu.memory_space<vmem>>, %arg7: memref<8x32xf32, #tpu.memory_space<vmem>>, %arg8: memref<8x4xf32, #tpu.memory_space<vmem>>, %arg9: memref<8x4xf32, #tpu.memory_space<vmem>>) attributes {dimension_semantics = [#tpu.dimension_semantics<parallel>, #tpu.dimension_semantics<parallel>, #tpu.dimension_semantics<arbitrary>], iteration_bounds = array<i64: 2, 1, 1>, scalar_prefetch = 0 : i64, scratch_operands = 3 : i64, tpu.core_type = #tpu.core_type<tc>, window_params = [{transform_indices = @transform_0, window_bounds = array<i64: 1, 8, 32>}, {transform_indices = @transform_1, window_bounds = array<i64: 1, 8, 64>}, {transform_indices = @transform_2, window_bounds = array<i64: 1, 1, 8>}, {transform_indices = @transform_3, window_bounds = array<i64: 1, 8, 32>}]} {
    %c0_i32 = arith.constant 0 : i32
    %0 = arith.cmpi eq, %arg2, %c0_i32 : i32
    %1 = arith.extui %0 : i1 to i32
    %c0_i32_0 = arith.constant 0 : i32
    %2 = arith.cmpi ne, %1, %c0_i32_0 : i32
    scf.if %2 {
      %cst_69 = arith.constant 0.000000e+00 : f32
      %130 = vector.broadcast %cst_69 : f32 to vector<8x32xf32>
      %c0_70 = arith.constant 0 : index
      %c0_71 = arith.constant 0 : index
      %131 = vector.load %arg7[%c0_70, %c0_71] : memref<8x32xf32, #tpu.memory_space<vmem>>, vector<8x32xf32>
      tpu.vector_store %arg7[%c0_70, %c0_71], %130 {strides = array<i32>} : memref<8x32xf32, #tpu.memory_space<vmem>>, vector<8x32xf32>,
      %cst_72 = arith.constant -1.000000e+09 : f32
      %132 = vector.broadcast %cst_72 : f32 to vector<8x4xf32>
      %c0_73 = arith.constant 0 : index
      %c0_74 = arith.constant 0 : index
      %133 = vector.load %arg8[%c0_73, %c0_74] : memref<8x4xf32, #tpu.memory_space<vmem>>, vector<8x4xf32>
      tpu.vector_store %arg8[%c0_73, %c0_74], %132 {strides = array<i32>} : memref<8x4xf32, #tpu.memory_space<vmem>>, vector<8x4xf32>,
      %cst_75 = arith.constant 0.000000e+00 : f32
      %134 = vector.broadcast %cst_75 : f32 to vector<8x4xf32>
      %c0_76 = arith.constant 0 : index
      %c0_77 = arith.constant 0 : index
      %135 = vector.load %arg9[%c0_76, %c0_77] : memref<8x4xf32, #tpu.memory_space<vmem>>, vector<8x4xf32>
      tpu.vector_store %arg9[%c0_76, %c0_77], %134 {strides = array<i32>} : memref<8x4xf32, #tpu.memory_space<vmem>>, vector<8x4xf32>,
    } else {
    }
    %c0 = arith.constant 0 : index
    %c0_1 = arith.constant 0 : index
    %c0_2 = arith.constant 0 : index
    %3 = vector.load %arg3[%c0, %c0_1, %c0_2] : memref<1x8x32xbf16, #tpu.memory_space<vmem>>, vector<1x8x32xbf16>
    %4 = vector.shape_cast %3 : vector<1x8x32xbf16> to vector<8x32xbf16>
    %c0_3 = arith.constant 0 : index
    %c0_4 = arith.constant 0 : index
    %c0_5 = arith.constant 0 : index
    %5 = vector.load %arg4[%c0_3, %c0_4, %c0_5] : memref<1x8x64xbf16, #tpu.memory_space<vmem>>, vector<1x8x64xbf16>
    %6 = vector.shape_cast %5 : vector<1x8x64xbf16> to vector<8x64xbf16>
    %cst = arith.constant 3.535160e-01 : bf16
    %7 = vector.broadcast %cst : bf16 to vector<8x32xbf16>
    %8 = arith.mulf %4, %7 : vector<8x32xbf16>
    %9 = vector.extract_strided_slice %6 {offsets = [0, 0], sizes = [8, 32], strides = [1, 1]} : vector<8x64xbf16> to vector<8x32xbf16>
    %10 = vector.extract_strided_slice %6 {offsets = [0, 32], sizes = [8, 32], strides = [1, 1]} : vector<8x64xbf16> to vector<8x32xbf16>
    %c0_6 = arith.constant 0 : index
    %c0_7 = arith.constant 0 : index
    %c0_8 = arith.constant 0 : index
    %11 = vector.load %arg5[%c0_6, %c0_7, %c0_8] : memref<1x1x8xf32, #tpu.memory_space<vmem>>, vector<1x1x8xf32>
    %12 = vector.shape_cast %11 : vector<1x1x8xf32> to vector<1x8xf32>
    %13 = vector.shape_cast %12 : vector<1x8xf32> to vector<1x8xf32>
    %14 = vector.broadcast %13 : vector<1x8xf32> to vector<8x8xf32>
    %15 = vector.extract_strided_slice %8 {offsets = [0, 0], sizes = [8, 8], strides = [1, 1]} : vector<8x32xbf16> to vector<8x8xbf16>
    %16 = vector.extract_strided_slice %9 {offsets = [0, 0], sizes = [8, 8], strides = [1, 1]} : vector<8x32xbf16> to vector<8x8xbf16>
    %cst_9 = arith.constant dense<0.000000e+00> : vector<8x8xf32>
    %17 = tpu.matmul %15, %16, %cst_9 {dimension_numbers = #tpu.dot_dimension_numbers<[1], [1], [0], [0], [0, 0, 1, 0], [], []>} : vector<8x8xbf16>, vector<8x8xbf16>, vector<8x8xf32> -> vector<8x8xf32>
    %18 = arith.addf %17, %14 : vector<8x8xf32>
    %c0_10 = arith.constant 0 : index
    %c0_11 = arith.constant 0 : index
    %19 = vector.load %arg8[%c0_10, %c0_11] : memref<8x4xf32, #tpu.memory_space<vmem>>, vector<8x1xf32>
    %cst_12 = arith.constant dense<0xFF800000> : vector<8xf32>
    %20 = vector.multi_reduction <maximumf>, %18, %cst_12 [1] : vector<8x8xf32> to vector<8xf32>
    %21 = vector.shape_cast %20 : vector<8xf32> to vector<8x1xf32>
    %22 = arith.maximumf %19, %21 : vector<8x1xf32>
    %23 = arith.subf %19, %22 : vector<8x1xf32>
    %24 = math.exp %23 : vector<8x1xf32>
    %25 = vector.broadcast %22 : vector<8x1xf32> to vector<8x8xf32>
    %26 = arith.subf %18, %25 : vector<8x8xf32>
    %27 = math.exp %26 : vector<8x8xf32>
    %c0_13 = arith.constant 0 : index
    %c0_14 = arith.constant 0 : index
    %28 = vector.load %arg9[%c0_13, %c0_14] : memref<8x4xf32, #tpu.memory_space<vmem>>, vector<8x1xf32>
    %29 = arith.mulf %24, %28 : vector<8x1xf32>
    %cst_15 = arith.constant dense<0.000000e+00> : vector<8xf32>
    %30 = vector.multi_reduction <add>, %27, %cst_15 [1] : vector<8x8xf32> to vector<8xf32>
    %31 = vector.shape_cast %30 : vector<8xf32> to vector<8x1xf32>
    %32 = arith.addf %29, %31 : vector<8x1xf32>
    %c0_16 = arith.constant 0 : index
    %c0_17 = arith.constant 0 : index
    %33 = vector.load %arg9[%c0_16, %c0_17] : memref<8x4xf32, #tpu.memory_space<vmem>>, vector<8x1xf32>
    tpu.vector_store %arg9[%c0_16, %c0_17], %32 {strides = array<i32>} : memref<8x4xf32, #tpu.memory_space<vmem>>, vector<8x1xf32>,
    %c0_18 = arith.constant 0 : index
    %c0_19 = arith.constant 0 : index
    %34 = vector.load %arg8[%c0_18, %c0_19] : memref<8x4xf32, #tpu.memory_space<vmem>>, vector<8x1xf32>
    tpu.vector_store %arg8[%c0_18, %c0_19], %22 {strides = array<i32>} : memref<8x4xf32, #tpu.memory_space<vmem>>, vector<8x1xf32>,
    %c0_20 = arith.constant 0 : index
    %c0_21 = arith.constant 0 : index
    %35 = vector.load %arg7[%c0_20, %c0_21] : memref<8x32xf32, #tpu.memory_space<vmem>>, vector<8x8xf32>
    %36 = vector.broadcast %24 : vector<8x1xf32> to vector<8x8xf32>
    %37 = arith.mulf %36, %35 : vector<8x8xf32>
    %38 = arith.truncf %27 : vector<8x8xf32> to vector<8x8xbf16>
    %39 = vector.extract_strided_slice %10 {offsets = [0, 0], sizes = [8, 8], strides = [1, 1]} : vector<8x32xbf16> to vector<8x8xbf16>
    %cst_22 = arith.constant dense<0.000000e+00> : vector<8x8xf32>
    %40 = tpu.matmul %38, %39, %cst_22 {dimension_numbers = #tpu.dot_dimension_numbers<[1], [0], [0], [1], [0, 0, 1, 1], [], []>} : vector<8x8xbf16>, vector<8x8xbf16>, vector<8x8xf32> -> vector<8x8xf32>
    %41 = arith.addf %37, %40 : vector<8x8xf32>
    %c0_23 = arith.constant 0 : index
    %c0_24 = arith.constant 0 : index
    %42 = vector.load %arg7[%c0_23, %c0_24] : memref<8x32xf32, #tpu.memory_space<vmem>>, vector<8x8xf32>
    tpu.vector_store %arg7[%c0_23, %c0_24], %41 {strides = array<i32>} : memref<8x32xf32, #tpu.memory_space<vmem>>, vector<8x8xf32>,
    %43 = vector.extract_strided_slice %8 {offsets = [0, 8], sizes = [8, 8], strides = [1, 1]} : vector<8x32xbf16> to vector<8x8xbf16>
    %44 = vector.extract_strided_slice %9 {offsets = [0, 8], sizes = [8, 8], strides = [1, 1]} : vector<8x32xbf16> to vector<8x8xbf16>
    %cst_25 = arith.constant dense<0.000000e+00> : vector<8x8xf32>
    %45 = tpu.matmul %43, %44, %cst_25 {dimension_numbers = #tpu.dot_dimension_numbers<[1], [1], [0], [0], [0, 0, 1, 0], [], []>} : vector<8x8xbf16>, vector<8x8xbf16>, vector<8x8xf32> -> vector<8x8xf32>
    %46 = arith.addf %45, %14 : vector<8x8xf32>
    %c0_26 = arith.constant 0 : index
    %c1 = arith.constant 1 : index
    %47 = vector.load %arg8[%c0_26, %c1] : memref<8x4xf32, #tpu.memory_space<vmem>>, vector<8x1xf32>
    %cst_27 = arith.constant dense<0xFF800000> : vector<8xf32>
    %48 = vector.multi_reduction <maximumf>, %46, %cst_27 [1] : vector<8x8xf32> to vector<8xf32>
    %49 = vector.shape_cast %48 : vector<8xf32> to vector<8x1xf32>
    %50 = arith.maximumf %47, %49 : vector<8x1xf32>
    %51 = arith.subf %47, %50 : vector<8x1xf32>
    %52 = math.exp %51 : vector<8x1xf32>
    %53 = vector.broadcast %50 : vector<8x1xf32> to vector<8x8xf32>
    %54 = arith.subf %46, %53 : vector<8x8xf32>
    %55 = math.exp %54 : vector<8x8xf32>
    %c0_28 = arith.constant 0 : index
    %c1_29 = arith.constant 1 : index
    %56 = vector.load %arg9[%c0_28, %c1_29] : memref<8x4xf32, #tpu.memory_space<vmem>>, vector<8x1xf32>
    %57 = arith.mulf %52, %56 : vector<8x1xf32>
    %cst_30 = arith.constant dense<0.000000e+00> : vector<8xf32>
    %58 = vector.multi_reduction <add>, %55, %cst_30 [1] : vector<8x8xf32> to vector<8xf32>
    %59 = vector.shape_cast %58 : vector<8xf32> to vector<8x1xf32>
    %60 = arith.addf %57, %59 : vector<8x1xf32>
    %c0_31 = arith.constant 0 : index
    %c1_32 = arith.constant 1 : index
    %61 = vector.load %arg9[%c0_31, %c1_32] : memref<8x4xf32, #tpu.memory_space<vmem>>, vector<8x1xf32>
    tpu.vector_store %arg9[%c0_31, %c1_32], %60 {strides = array<i32>} : memref<8x4xf32, #tpu.memory_space<vmem>>, vector<8x1xf32>,
    %c0_33 = arith.constant 0 : index
    %c1_34 = arith.constant 1 : index
    %62 = vector.load %arg8[%c0_33, %c1_34] : memref<8x4xf32, #tpu.memory_space<vmem>>, vector<8x1xf32>
    tpu.vector_store %arg8[%c0_33, %c1_34], %50 {strides = array<i32>} : memref<8x4xf32, #tpu.memory_space<vmem>>, vector<8x1xf32>,
    %c0_35 = arith.constant 0 : index
    %c8 = arith.constant 8 : index
    %63 = vector.load %arg7[%c0_35, %c8] : memref<8x32xf32, #tpu.memory_space<vmem>>, vector<8x8xf32>
    %64 = vector.broadcast %52 : vector<8x1xf32> to vector<8x8xf32>
    %65 = arith.mulf %64, %63 : vector<8x8xf32>
    %66 = arith.truncf %55 : vector<8x8xf32> to vector<8x8xbf16>
    %67 = vector.extract_strided_slice %10 {offsets = [0, 8], sizes = [8, 8], strides = [1, 1]} : vector<8x32xbf16> to vector<8x8xbf16>
    %cst_36 = arith.constant dense<0.000000e+00> : vector<8x8xf32>
    %68 = tpu.matmul %66, %67, %cst_36 {dimension_numbers = #tpu.dot_dimension_numbers<[1], [0], [0], [1], [0, 0, 1, 1], [], []>} : vector<8x8xbf16>, vector<8x8xbf16>, vector<8x8xf32> -> vector<8x8xf32>
    %69 = arith.addf %65, %68 : vector<8x8xf32>
    %c0_37 = arith.constant 0 : index
    %c8_38 = arith.constant 8 : index
    %70 = vector.load %arg7[%c0_37, %c8_38] : memref<8x32xf32, #tpu.memory_space<vmem>>, vector<8x8xf32>
    tpu.vector_store %arg7[%c0_37, %c8_38], %69 {strides = array<i32>} : memref<8x32xf32, #tpu.memory_space<vmem>>, vector<8x8xf32>,
    %71 = vector.extract_strided_slice %8 {offsets = [0, 16], sizes = [8, 8], strides = [1, 1]} : vector<8x32xbf16> to vector<8x8xbf16>
    %72 = vector.extract_strided_slice %9 {offsets = [0, 16], sizes = [8, 8], strides = [1, 1]} : vector<8x32xbf16> to vector<8x8xbf16>
    %cst_39 = arith.constant dense<0.000000e+00> : vector<8x8xf32>
    %73 = tpu.matmul %71, %72, %cst_39 {dimension_numbers = #tpu.dot_dimension_numbers<[1], [1], [0], [0], [0, 0, 1, 0], [], []>} : vector<8x8xbf16>, vector<8x8xbf16>, vector<8x8xf32> -> vector<8x8xf32>
    %74 = arith.addf %73, %14 : vector<8x8xf32>
    %c0_40 = arith.constant 0 : index
    %c2 = arith.constant 2 : index
    %75 = vector.load %arg8[%c0_40, %c2] : memref<8x4xf32, #tpu.memory_space<vmem>>, vector<8x1xf32>
    %cst_41 = arith.constant dense<0xFF800000> : vector<8xf32>
    %76 = vector.multi_reduction <maximumf>, %74, %cst_41 [1] : vector<8x8xf32> to vector<8xf32>
    %77 = vector.shape_cast %76 : vector<8xf32> to vector<8x1xf32>
    %78 = arith.maximumf %75, %77 : vector<8x1xf32>
    %79 = arith.subf %75, %78 : vector<8x1xf32>
    %80 = math.exp %79 : vector<8x1xf32>
    %81 = vector.broadcast %78 : vector<8x1xf32> to vector<8x8xf32>
    %82 = arith.subf %74, %81 : vector<8x8xf32>
    %83 = math.exp %82 : vector<8x8xf32>
    %c0_42 = arith.constant 0 : index
    %c2_43 = arith.constant 2 : index
    %84 = vector.load %arg9[%c0_42, %c2_43] : memref<8x4xf32, #tpu.memory_space<vmem>>, vector<8x1xf32>
    %85 = arith.mulf %80, %84 : vector<8x1xf32>
    %cst_44 = arith.constant dense<0.000000e+00> : vector<8xf32>
    %86 = vector.multi_reduction <add>, %83, %cst_44 [1] : vector<8x8xf32> to vector<8xf32>
    %87 = vector.shape_cast %86 : vector<8xf32> to vector<8x1xf32>
    %88 = arith.addf %85, %87 : vector<8x1xf32>
    %c0_45 = arith.constant 0 : index
    %c2_46 = arith.constant 2 : index
    %89 = vector.load %arg9[%c0_45, %c2_46] : memref<8x4xf32, #tpu.memory_space<vmem>>, vector<8x1xf32>
    tpu.vector_store %arg9[%c0_45, %c2_46], %88 {strides = array<i32>} : memref<8x4xf32, #tpu.memory_space<vmem>>, vector<8x1xf32>,
    %c0_47 = arith.constant 0 : index
    %c2_48 = arith.constant 2 : index
    %90 = vector.load %arg8[%c0_47, %c2_48] : memref<8x4xf32, #tpu.memory_space<vmem>>, vector<8x1xf32>
    tpu.vector_store %arg8[%c0_47, %c2_48], %78 {strides = array<i32>} : memref<8x4xf32, #tpu.memory_space<vmem>>, vector<8x1xf32>,
    %c0_49 = arith.constant 0 : index
    %c16 = arith.constant 16 : index
    %91 = vector.load %arg7[%c0_49, %c16] : memref<8x32xf32, #tpu.memory_space<vmem>>, vector<8x8xf32>
    %92 = vector.broadcast %80 : vector<8x1xf32> to vector<8x8xf32>
    %93 = arith.mulf %92, %91 : vector<8x8xf32>
    %94 = arith.truncf %83 : vector<8x8xf32> to vector<8x8xbf16>
    %95 = vector.extract_strided_slice %10 {offsets = [0, 16], sizes = [8, 8], strides = [1, 1]} : vector<8x32xbf16> to vector<8x8xbf16>
    %cst_50 = arith.constant dense<0.000000e+00> : vector<8x8xf32>
    %96 = tpu.matmul %94, %95, %cst_50 {dimension_numbers = #tpu.dot_dimension_numbers<[1], [0], [0], [1], [0, 0, 1, 1], [], []>} : vector<8x8xbf16>, vector<8x8xbf16>, vector<8x8xf32> -> vector<8x8xf32>
    %97 = arith.addf %93, %96 : vector<8x8xf32>
    %c0_51 = arith.constant 0 : index
    %c16_52 = arith.constant 16 : index
    %98 = vector.load %arg7[%c0_51, %c16_52] : memref<8x32xf32, #tpu.memory_space<vmem>>, vector<8x8xf32>
    tpu.vector_store %arg7[%c0_51, %c16_52], %97 {strides = array<i32>} : memref<8x32xf32, #tpu.memory_space<vmem>>, vector<8x8xf32>,
    %99 = vector.extract_strided_slice %8 {offsets = [0, 24], sizes = [8, 8], strides = [1, 1]} : vector<8x32xbf16> to vector<8x8xbf16>
    %100 = vector.extract_strided_slice %9 {offsets = [0, 24], sizes = [8, 8], strides = [1, 1]} : vector<8x32xbf16> to vector<8x8xbf16>
    %cst_53 = arith.constant dense<0.000000e+00> : vector<8x8xf32>
    %101 = tpu.matmul %99, %100, %cst_53 {dimension_numbers = #tpu.dot_dimension_numbers<[1], [1], [0], [0], [0, 0, 1, 0], [], []>} : vector<8x8xbf16>, vector<8x8xbf16>, vector<8x8xf32> -> vector<8x8xf32>
    %102 = arith.addf %101, %14 : vector<8x8xf32>
    %c0_54 = arith.constant 0 : index
    %c3 = arith.constant 3 : index
    %103 = vector.load %arg8[%c0_54, %c3] : memref<8x4xf32, #tpu.memory_space<vmem>>, vector<8x1xf32>
    %cst_55 = arith.constant dense<0xFF800000> : vector<8xf32>
    %104 = vector.multi_reduction <maximumf>, %102, %cst_55 [1] : vector<8x8xf32> to vector<8xf32>
    %105 = vector.shape_cast %104 : vector<8xf32> to vector<8x1xf32>
    %106 = arith.maximumf %103, %105 : vector<8x1xf32>
    %107 = arith.subf %103, %106 : vector<8x1xf32>
    %108 = math.exp %107 : vector<8x1xf32>
    %109 = vector.broadcast %106 : vector<8x1xf32> to vector<8x8xf32>
    %110 = arith.subf %102, %109 : vector<8x8xf32>
    %111 = math.exp %110 : vector<8x8xf32>
    %c0_56 = arith.constant 0 : index
    %c3_57 = arith.constant 3 : index
    %112 = vector.load %arg9[%c0_56, %c3_57] : memref<8x4xf32, #tpu.memory_space<vmem>>, vector<8x1xf32>
    %113 = arith.mulf %108, %112 : vector<8x1xf32>
    %cst_58 = arith.constant dense<0.000000e+00> : vector<8xf32>
    %114 = vector.multi_reduction <add>, %111, %cst_58 [1] : vector<8x8xf32> to vector<8xf32>
    %115 = vector.shape_cast %114 : vector<8xf32> to vector<8x1xf32>
    %116 = arith.addf %113, %115 : vector<8x1xf32>
    %c0_59 = arith.constant 0 : index
    %c3_60 = arith.constant 3 : index
    %117 = vector.load %arg9[%c0_59, %c3_60] : memref<8x4xf32, #tpu.memory_space<vmem>>, vector<8x1xf32>
    tpu.vector_store %arg9[%c0_59, %c3_60], %116 {strides = array<i32>} : memref<8x4xf32, #tpu.memory_space<vmem>>, vector<8x1xf32>,
    %c0_61 = arith.constant 0 : index
    %c3_62 = arith.constant 3 : index
    %118 = vector.load %arg8[%c0_61, %c3_62] : memref<8x4xf32, #tpu.memory_space<vmem>>, vector<8x1xf32>
    tpu.vector_store %arg8[%c0_61, %c3_62], %106 {strides = array<i32>} : memref<8x4xf32, #tpu.memory_space<vmem>>, vector<8x1xf32>,
    %c0_63 = arith.constant 0 : index
    %c24 = arith.constant 24 : index
    %119 = vector.load %arg7[%c0_63, %c24] : memref<8x32xf32, #tpu.memory_space<vmem>>, vector<8x8xf32>
    %120 = vector.broadcast %108 : vector<8x1xf32> to vector<8x8xf32>
    %121 = arith.mulf %120, %119 : vector<8x8xf32>
    %122 = arith.truncf %111 : vector<8x8xf32> to vector<8x8xbf16>
    %123 = vector.extract_strided_slice %10 {offsets = [0, 24], sizes = [8, 8], strides = [1, 1]} : vector<8x32xbf16> to vector<8x8xbf16>
    %cst_64 = arith.constant dense<0.000000e+00> : vector<8x8xf32>
    %124 = tpu.matmul %122, %123, %cst_64 {dimension_numbers = #tpu.dot_dimension_numbers<[1], [0], [0], [1], [0, 0, 1, 1], [], []>} : vector<8x8xbf16>, vector<8x8xbf16>, vector<8x8xf32> -> vector<8x8xf32>
    %125 = arith.addf %121, %124 : vector<8x8xf32>
    %c0_65 = arith.constant 0 : index
    %c24_66 = arith.constant 24 : index
    %126 = vector.load %arg7[%c0_65, %c24_66] : memref<8x32xf32, #tpu.memory_space<vmem>>, vector<8x8xf32>
    tpu.vector_store %arg7[%c0_65, %c24_66], %125 {strides = array<i32>} : memref<8x32xf32, #tpu.memory_space<vmem>>, vector<8x8xf32>,
    %c0_i32_67 = arith.constant 0 : i32
    %127 = arith.cmpi eq, %arg2, %c0_i32_67 : i32
    %128 = arith.extui %127 : i1 to i32
    %c0_i32_68 = arith.constant 0 : i32
    %129 = arith.cmpi ne, %128, %c0_i32_68 : i32
    scf.if %129 {
      %c0_69 = arith.constant 0 : index
      %c0_70 = arith.constant 0 : index
      %130 = vector.load %arg7[%c0_69, %c0_70] : memref<8x32xf32, #tpu.memory_space<vmem>>, vector<8x8xf32>
      %c0_71 = arith.constant 0 : index
      %c0_72 = arith.constant 0 : index
      %131 = vector.load %arg9[%c0_71, %c0_72] : memref<8x4xf32, #tpu.memory_space<vmem>>, vector<8x1xf32>
      %132 = vector.broadcast %131 : vector<8x1xf32> to vector<8x8xf32>
      %133 = arith.divf %130, %132 : vector<8x8xf32>
      %c0_73 = arith.constant 0 : index
      %c0_74 = arith.constant 0 : index
      %134 = vector.load %arg7[%c0_73, %c0_74] : memref<8x32xf32, #tpu.memory_space<vmem>>, vector<8x8xf32>
      tpu.vector_store %arg7[%c0_73, %c0_74], %133 {strides = array<i32>} : memref<8x32xf32, #tpu.memory_space<vmem>>, vector<8x8xf32>,
      %c0_75 = arith.constant 0 : index
      %c8_76 = arith.constant 8 : index
      %135 = vector.load %arg7[%c0_75, %c8_76] : memref<8x32xf32, #tpu.memory_space<vmem>>, vector<8x8xf32>
      %c0_77 = arith.constant 0 : index
      %c1_78 = arith.constant 1 : index
      %136 = vector.load %arg9[%c0_77, %c1_78] : memref<8x4xf32, #tpu.memory_space<vmem>>, vector<8x1xf32>
      %137 = vector.broadcast %136 : vector<8x1xf32> to vector<8x8xf32>
      %138 = arith.divf %135, %137 : vector<8x8xf32>
      %c0_79 = arith.constant 0 : index
      %c8_80 = arith.constant 8 : index
      %139 = vector.load %arg7[%c0_79, %c8_80] : memref<8x32xf32, #tpu.memory_space<vmem>>, vector<8x8xf32>
      tpu.vector_store %arg7[%c0_79, %c8_80], %138 {strides = array<i32>} : memref<8x32xf32, #tpu.memory_space<vmem>>, vector<8x8xf32>,
      %c0_81 = arith.constant 0 : index
      %c16_82 = arith.constant 16 : index
      %140 = vector.load %arg7[%c0_81, %c16_82] : memref<8x32xf32, #tpu.memory_space<vmem>>, vector<8x8xf32>
      %c0_83 = arith.constant 0 : index
      %c2_84 = arith.constant 2 : index
      %141 = vector.load %arg9[%c0_83, %c2_84] : memref<8x4xf32, #tpu.memory_space<vmem>>, vector<8x1xf32>
      %142 = vector.broadcast %141 : vector<8x1xf32> to vector<8x8xf32>
      %143 = arith.divf %140, %142 : vector<8x8xf32>
      %c0_85 = arith.constant 0 : index
      %c16_86 = arith.constant 16 : index
      %144 = vector.load %arg7[%c0_85, %c16_86] : memref<8x32xf32, #tpu.memory_space<vmem>>, vector<8x8xf32>
      tpu.vector_store %arg7[%c0_85, %c16_86], %143 {strides = array<i32>} : memref<8x32xf32, #tpu.memory_space<vmem>>, vector<8x8xf32>,
      %c0_87 = arith.constant 0 : index
      %c24_88 = arith.constant 24 : index
      %145 = vector.load %arg7[%c0_87, %c24_88] : memref<8x32xf32, #tpu.memory_space<vmem>>, vector<8x8xf32>
      %c0_89 = arith.constant 0 : index
      %c3_90 = arith.constant 3 : index
      %146 = vector.load %arg9[%c0_89, %c3_90] : memref<8x4xf32, #tpu.memory_space<vmem>>, vector<8x1xf32>
      %147 = vector.broadcast %146 : vector<8x1xf32> to vector<8x8xf32>
      %148 = arith.divf %145, %147 : vector<8x8xf32>
      %c0_91 = arith.constant 0 : index
      %c24_92 = arith.constant 24 : index
      %149 = vector.load %arg7[%c0_91, %c24_92] : memref<8x32xf32, #tpu.memory_space<vmem>>, vector<8x8xf32>
      tpu.vector_store %arg7[%c0_91, %c24_92], %148 {strides = array<i32>} : memref<8x32xf32, #tpu.memory_space<vmem>>, vector<8x8xf32>,
      %c0_93 = arith.constant 0 : index
      %c0_94 = arith.constant 0 : index
      %150 = vector.load %arg7[%c0_93, %c0_94] : memref<8x32xf32, #tpu.memory_space<vmem>>, vector<8x32xf32>
      %151 = arith.truncf %150 : vector<8x32xf32> to vector<8x32xbf16>
      %c0_95 = arith.constant 0 : index
      %c0_96 = arith.constant 0 : index
      %c0_97 = arith.constant 0 : index
      %152 = vector.load %arg6[%c0_95, %c0_96, %c0_97] : memref<1x8x32xbf16, #tpu.memory_space<vmem>>, vector<1x8x32xbf16>
      %153 = vector.shape_cast %152 : vector<1x8x32xbf16> to vector<8x32xbf16>
      %154 = vector.shape_cast %151 : vector<8x32xbf16> to vector<1x8x32xbf16>
      tpu.vector_store %arg6[%c0_95, %c0_96, %c0_97], %154 {strides = array<i32>} : memref<1x8x32xbf16, #tpu.memory_space<vmem>>, vector<1x8x32xbf16>,
    } else {
    }
    return
  }
  func.func @transform_0(%arg0: i32, %arg1: i32, %arg2: i32) -> (i32, i32, i32) {
    %c0_i32 = arith.constant 0 : i32
    %c0_i32_0 = arith.constant 0 : i32
    return %arg0, %arg1, %c0_i32 : i32, i32, i32
  }
  func.func @transform_1(%arg0: i32, %arg1: i32, %arg2: i32) -> (i32, i32, i32) {
    %c0_i32 = arith.constant 0 : i32
    %c0_i32_0 = arith.constant 0 : i32
    return %arg0, %arg2, %c0_i32 : i32, i32, i32
  }
  func.func @transform_2(%arg0: i32, %arg1: i32, %arg2: i32) -> (i32, i32, i32) {
    %c0_i32 = arith.constant 0 : i32
    %c0_i32_0 = arith.constant 0 : i32
    return %arg0, %c0_i32, %arg2 : i32, i32, i32
  }
  func.func @transform_3(%arg0: i32, %arg1: i32, %arg2: i32) -> (i32, i32, i32) {
    %c0_i32 = arith.constant 0 : i32
    %c0_i32_0 = arith.constant 0 : i32
    return %arg0, %arg1, %c0_i32 : i32, i32, i32
  }
}

module attributes {stable_mosaic.version = 11 : i64} {
  func.func @_linear_kernel(%arg0: i32, %arg1: i32, %arg2: i32, %arg3: memref<16x32xbf16, #tpu.memory_space<vmem>>, %arg4: memref<32x32xbf16, #tpu.memory_space<vmem>>, %arg5: memref<1x32xf32, #tpu.memory_space<vmem>>, %arg6: memref<16x32xbf16, #tpu.memory_space<vmem>>) attributes {dimension_semantics = [#tpu.dimension_semantics<parallel>, #tpu.dimension_semantics<parallel>, #tpu.dimension_semantics<arbitrary>], iteration_bounds = array<i64: 1, 1, 1>, scalar_prefetch = 0 : i64, scratch_operands = 0 : i64, tpu.core_type = #tpu.core_type<tc>, window_params = [{transform_indices = @transform_0, window_bounds = array<i64: 16, 32>}, {transform_indices = @transform_1, window_bounds = array<i64: 32, 32>}, {transform_indices = @transform_2, window_bounds = array<i64: 1, 32>}, {transform_indices = @transform_3, window_bounds = array<i64: 16, 32>}]} {
    %c0 = arith.constant 0 : index
    %c0_0 = arith.constant 0 : index
    %0 = vector.load %arg3[%c0, %c0_0] : memref<16x32xbf16, #tpu.memory_space<vmem>>, vector<16x32xbf16>
    %c0_1 = arith.constant 0 : index
    %c0_2 = arith.constant 0 : index
    %1 = vector.load %arg4[%c0_1, %c0_2] : memref<32x32xbf16, #tpu.memory_space<vmem>>, vector<32x32xbf16>
    %cst = arith.constant dense<0.000000e+00> : vector<16x32xf32>
    %2 = tpu.matmul %0, %1, %cst {dimension_numbers = #tpu.dot_dimension_numbers<[1], [0], [0], [1], [0, 0, 1, 1], [], []>} : vector<16x32xbf16>, vector<32x32xbf16>, vector<16x32xf32> -> vector<16x32xf32>
    %c0_3 = arith.constant 0 : index
    %c0_4 = arith.constant 0 : index
    %3 = vector.load %arg5[%c0_3, %c0_4] : memref<1x32xf32, #tpu.memory_space<vmem>>, vector<1x32xf32>
    %4 = vector.broadcast %3 : vector<1x32xf32> to vector<16x32xf32>
    %5 = arith.addf %2, %4 : vector<16x32xf32>
    %6 = arith.truncf %5 : vector<16x32xf32> to vector<16x32xbf16>
    %c0_5 = arith.constant 0 : index
    %c0_6 = arith.constant 0 : index
    %7 = vector.load %arg6[%c0_5, %c0_6] : memref<16x32xbf16, #tpu.memory_space<vmem>>, vector<16x32xbf16>
    tpu.vector_store %arg6[%c0_5, %c0_6], %6 {strides = array<i32>} : memref<16x32xbf16, #tpu.memory_space<vmem>>, vector<16x32xbf16>,
    return
  }
  func.func @transform_0(%arg0: i32, %arg1: i32, %arg2: i32) -> (i32, i32) {
    %c0_i32 = arith.constant 0 : i32
    return %arg0, %arg2 : i32, i32
  }
  func.func @transform_1(%arg0: i32, %arg1: i32, %arg2: i32) -> (i32, i32) {
    %c0_i32 = arith.constant 0 : i32
    return %arg2, %arg1 : i32, i32
  }
  func.func @transform_2(%arg0: i32, %arg1: i32, %arg2: i32) -> (i32, i32) {
    %c0_i32 = arith.constant 0 : i32
    %c0_i32_0 = arith.constant 0 : i32
    return %c0_i32, %arg1 : i32, i32
  }
  func.func @transform_3(%arg0: i32, %arg1: i32, %arg2: i32) -> (i32, i32) {
    %c0_i32 = arith.constant 0 : i32
    return %arg0, %arg1 : i32, i32
  }
}

</mosaic_0001>

<bundles_post_ra>
// kernel: transformer_forward.42
= control target key start
LH: loop header
LB: loop body
LE: loop exit
PB: predicated region body
PF: predicated region fallthrough
CT: control target
= control target key end

     0   :  { %v130_v0 = vmov 0.0   ;;  %vm131_vm0 = vmmov 0   ;;  %vm45_vm1 = vcmask 261120   ;;  %vm98_vm2 = vcmask 781312   ;;  %s170_s1 = inlined_call_operand.vmem [shape: bf16[32,96], index: 1, kind: input, shape index: {}]   ;;  %s171_s0 = inlined_call_operand.vmem [shape: bf16[16,32], index: 0, kind: input, shape index: {}]   ;;  %s172_s2 = inlined_call_operand.vmem [shape: f32[1,96], index: 2, kind: input, shape index: {}]   ;;  %s173_s3 = inlined_call_operand.vmem [shape: bf16[16,96], index: 3, kind: output, shape index: {}]  }
   0x1   :  { %117 = vmatprep.subr.bf16.mxu0 %v130_v0  ;;  %v127_v1 = vld [vmem:[%s170_s1 + $0x8] sm:$0xff]   ;;  %121 = vmatprep.mubr.msk.bf16.mxu0 %vm131_vm0, %v130_v0  ;;  %v128_v2 = vld [vmem:[%s170_s1] sm:$0xff]  }
   0x2   :  { %118 = vmatpush3.bf16.msra.mxu0 %v127_v1  ;;  %v129_v3 = vld [vmem:[%s171_s0] sm:$0xff]  }
   0x3   :  { %119 = vmatprep.subr.bf16.mxu0 %v130_v0  ;;  %v105_v4 = vld [vmem:[%s172_s2] ss:$0 sm:$0xff] }
   0x6   :  { %120 = vmatpush3.bf16.msra.mxu0 %v128_v2 }
   0x9   :  { %122 = vmatmul.mubr.msk.bf16.vlgmr.msra.gmra.mxu0 %vm45_vm1, %v129_v3 }
  0xc9   :  { %v83_v5 = vpop.f32.mrf.mxu0 }
  0xca   :  { %v84_v6 = vadd.f32 %v105_v4, %v83_v5 }
  0xcb   :  { %v123_v7 = vpop.f32.mrf.mxu0 }
  0xcc   :  { %v112_v8 = vpack.c.bf16 %v84_v6, %v84_v6 }
  0xcd   :  { %v86_v9 = vpop.f32.mrf.mxu0 }
  0xce   :  { %99 = vst.msk [vmem:[%s173_s3] sm:$0xf] %vm98_vm2, %v112_v8  ;;  %v87_v10 = vadd.f32 %v105_v4, %v86_v9 }
  0xcf   :  { %v124_v11 = vpop.f32.mrf.mxu0 }
  0xd0   :  { %v113_v12 = vpack.c.bf16 %v87_v10, %v87_v10 }
  0xd2   :  { %100 = vst.msk [vmem:[%s173_s3 + $0x4] sm:$0xf] %vm98_vm2, %v113_v12 }

// kernel: transformer_forward.41
= control target key start
LH: loop header
LB: loop body
LE: loop exit
PB: predicated region body
PF: predicated region fallthrough
CT: control target
= control target key end

     0   :  { %vm18_vm0 = vcmask 261120   ;;  %vm72_vm1 = vcmask 257024   ;;  %s132_s0 = inlined_call_operand.vmem [shape: bf16[16,32], index: 0, kind: input, shape index: {}]   ;;  %s133_s1 = inlined_call_operand.vmem [shape: f32[1,32], index: 1, kind: input, shape index: {}]   ;;  %s134_s2 = inlined_call_operand.vmem [shape: f32[1,32], index: 2, kind: input, shape index: {}]   ;;  %s135_s3 = inlined_call_operand.vmem [shape: bf16[16,32], index: 3, kind: output, shape index: {}]  }
   0x1   :  { %v86_v0 = vld [vmem:[%s132_s0] sm:$0xff]  }
   0x2   :  { %v87_v1 = vunpack.c.l.bf16 %v86_v0  ;;  %v88_v2 = vunpack.c.h.bf16 %v86_v0  ;;  %v79_v22 = vld [vmem:[%s133_s1] ss:$0 sm:$0xff] }
   0x3   :  { %v80_v24 = vld [vmem:[%s134_s2] ss:$0 sm:$0xff] }
   0x4   :  { %v19_v3 = vsel %vm18_vm0, %v87_v1, 0.0  ;;  %v22_v4 = vsel %vm18_vm0, %v88_v2, 0.0 }
   0x5   :  { %20 = vadd.xlane.f32.xlu0 %v19_v3 }
   0x9   :  { %23 = vadd.xlane.f32.xlu0 %v22_v4 }
  0x8e   :  { %v21_v5 = vpop.xlane.xlu0 %20 }
  0x8f   :  { %v26_v6 = vmul.f32 0.03125, %v21_v5 }
  0x91   :  { %v28_v7 = vsub.f32 %v87_v1, %v26_v6 }
  0x92   :  { %v24_v8 = vpop.xlane.xlu0 %23 }
  0x93   :  { %v27_v9 = vmul.f32 0.03125, %v24_v8  ;;  %v30_v10 = vmul.f32 %v28_v7, %v28_v7 }
  0x95   :  { %v29_v11 = vsub.f32 %v88_v2, %v27_v9  ;;  %v32_v12 = vsel %vm18_vm0, %v30_v10, 0.0 }
  0x96   :  { %33 = vadd.xlane.f32.xlu1 %v32_v12 }
  0x97   :  { %v31_v13 = vmul.f32 %v29_v11, %v29_v11 }
  0x99   :  { %v35_v14 = vsel %vm18_vm0, %v31_v13, 0.0 }
  0x9a   :  { %36 = vadd.xlane.f32.xlu1 %v35_v14 }
 0x11f   :  { %v34_v15 = vpop.xlane.xlu1 %33 }
 0x120   :  { %v38_v16 = vmul.f32 0.03125, %v34_v15 }
 0x122   :  { %v40_v17 = vadd.f32 1e-05, %v38_v16 }
 0x123   :  { %v37_v18 = vpop.xlane.xlu1 %36 }
 0x124   :  { %89 = vrsqrt.f32 %v40_v17  ;;  %v39_v19 = vmul.f32 0.03125, %v37_v18 }
 0x126   :  { %v41_v20 = vadd.f32 1e-05, %v39_v19 }
 0x128   :  { %91 = vrsqrt.f32 %v41_v20 }
 0x131   :  { %v90_v21 = vpop.eup %89 }
 0x132   :  { %v44_v23 = vmul.f32 %v90_v21, %v28_v7 }
 0x134   :  { %v53_v25 = vmul.f32 %v79_v22, %v44_v23 }
 0x135   :  { %v92_v26 = vpop.eup %91 }
 0x136   :  { %v62_v27 = vadd.f32 %v80_v24, %v53_v25  ;;  %v45_v28 = vmul.f32 %v92_v26, %v29_v11 }
 0x138   :  { %v83_v29 = vpack.c.bf16 %v62_v27, %v62_v27  ;;  %v54_v30 = vmul.f32 %v79_v22, %v45_v28 }
 0x13a   :  { %73 = vst.msk [vmem:[%s135_s3] sm:$0xf] %vm72_vm1, %v83_v29  ;;  %v63_v31 = vadd.f32 %v80_v24, %v54_v30 }
 0x13c   :  { %v84_v32 = vpack.c.bf16 %v63_v31, %v63_v31 }
 0x13e   :  { %74 = vst.msk [vmem:[%s135_s3 + $0x4] sm:$0xf] %vm72_vm1, %v84_v32 }

// kernel: transformer_forward.44
= control target key start
LH: loop header
LB: loop body
LE: loop exit
PB: predicated region body
PF: predicated region fallthrough
CT: control target
= control target key end

     0   :  { %v143_v0 = vmov 0.0   ;;  %vm144_vm0 = vmmov 0   ;;  %vm48_vm1 = vcmask 261120   ;;  %vm107_vm2 = vcmask 257024   ;;  %s191_s1 = inlined_call_operand.vmem [shape: bf16[32,32], index: 1, kind: input, shape index: {}]   ;;  %s192_s0 = inlined_call_operand.vmem [shape: bf16[16,32], index: 0, kind: input, shape index: {}]   ;;  %s193_s3 = inlined_call_operand.vmem [shape: bf16[16,32], index: 3, kind: input, shape index: {}]   ;;  %s194_s2 = inlined_call_operand.vmem [shape: f32[1,32], index: 2, kind: input, shape index: {}]   ;;  %s195_s4 = inlined_call_operand.vmem [shape: bf16[16,32], index: 4, kind: output, shape index: {}]  }
   0x1   :  { %130 = vmatprep.subr.bf16.mxu0 %v143_v0  ;;  %v140_v1 = vld [vmem:[%s191_s1 + $0x8] sm:$0xff]   ;;  %134 = vmatprep.mubr.msk.bf16.mxu0 %vm144_vm0, %v143_v0  ;;  %v141_v2 = vld [vmem:[%s191_s1] sm:$0xff]  }
   0x2   :  { %131 = vmatpush3.bf16.msra.mxu0 %v140_v1  ;;  %v142_v3 = vld [vmem:[%s192_s0] sm:$0xff]  }
   0x3   :  { %132 = vmatprep.subr.bf16.mxu0 %v143_v0  ;;  %v124_v4 = vld [vmem:[%s193_s3] sm:$0xff]  }
   0x4   :  { %v114_v5 = vld [vmem:[%s194_s2] ss:$0 sm:$0xff]  ;;  %v125_v6 = vunpack.c.l.bf16 %v124_v4  ;;  %v126_v11 = vunpack.c.h.bf16 %v124_v4 }
   0x6   :  { %133 = vmatpush3.bf16.msra.mxu0 %v141_v2 }
   0x9   :  { %135 = vmatmul.mubr.msk.bf16.vlgmr.msra.gmra.mxu0 %vm48_vm1, %v142_v3 }
  0xc9   :  { %v86_v7 = vpop.f32.mrf.mxu0 }
  0xca   :  { %v87_v8 = vadd.f32 %v114_v5, %v86_v7 }
  0xcb   :  { %v136_v9 = vpop.f32.mrf.mxu0 }
  0xcc   :  { %v97_v10 = vadd.f32 %v125_v6, %v87_v8 }
  0xcd   :  { %v89_v12 = vpop.f32.mrf.mxu0 }
  0xce   :  { %v121_v13 = vpack.c.bf16 %v97_v10, %v97_v10  ;;  %v90_v14 = vadd.f32 %v114_v5, %v89_v12 }
  0xcf   :  { %v137_v15 = vpop.f32.mrf.mxu0 }
  0xd0   :  { %108 = vst.msk [vmem:[%s195_s4] sm:$0xf] %vm107_vm2, %v121_v13  ;;  %v98_v16 = vadd.f32 %v126_v11, %v90_v14 }
  0xd2   :  { %v122_v17 = vpack.c.bf16 %v98_v16, %v98_v16 }
  0xd4   :  { %109 = vst.msk [vmem:[%s195_s4 + $0x4] sm:$0xf] %vm107_vm2, %v122_v17 }

// kernel: transformer_forward.43
= control target key start
LH: loop header
LB: loop body
LE: loop exit
PB: predicated region body
PF: predicated region fallthrough
CT: control target
= control target key end

     0   :  { %s1215_s12 = smov 0   ;;  %s1217_s13 = smov 0   ;;  %s1411_s0 = inlined_call_operand.vmem [shape: bf16[2,8,96], index: 0, kind: input, shape index: {}, may-alias: {0,1}]   ;;  %s1412_s1 = inlined_call_operand.vmem [shape: bf16[2,8,96], index: 1, kind: input, shape index: {}, may-alias: {0,1}]   ;;  %s1413_s2 = inlined_call_operand.vmem [shape: f32[2,1,8], index: 2, kind: input, shape index: {}]   ;;  %s1414_s3 = inlined_call_operand.vmem [shape: bf16[2,8,32], index: 3, kind: output, shape index: {}]  }
   0x1   :  { %s1219_s14 = smov 0  }
   0x2 LB: > { %s32_s15 = sadd.s32 1, %s1168_s13  ;;  %p986_p0 = scmp.ge.s32.totalorder %s1172_s14, 1  ;;  %s1172_s14 = sphi %s1219_s14, %s13_s14   ;;  %s1168_s13 = sphi %s1217_s13, %s1416_s13   ;;  %s1164_s12 = sphi %s1215_s12, %s1415_s12  }
   0x3   : > { %p34_p1 = scmp.ge.s32.totalorder %s32_s15, 2  ;;  %p189_p2 = scmp.lt.s32.totalorder %s1172_s14, 3 }
   0x5   : > { %s1418_s15 = smov (%p34_p1, %s32_s15), 0  ;;  %p190_p3 = pnand %p986_p0, %p189_p2 }
   0x6   : > { %p230_p4 = scmp.lt.s32.totalorder (!%p190_p3), %s1164_s12, 1  ;;  %s1176_s20 = smov (!%p190_p3), 96  }
   0x7   : > { %193 = sbr.rel (%p190_p3) target bundleno = 1505 (0x5e1), region = 32  ;;  %s1179_s27 = smov (!%p190_p3), 64  }
   0x8   : > { %s1180_s28 = smov (!%p190_p3), 88   ;;  %s1181_s29 = smov (!%p190_p3), 120  }
   0x9   : > { %s1182_s30 = smov (!%p190_p3), 80   ;;  %s1183_s4 = smov (!%p190_p3), 112  }
   0xa   : > { %s1184_s5 = smov (!%p190_p3), 72   ;;  %s1185_s6 = smov (!%p190_p3), 104  }
   0xb   : > { %s1189_s7 = smov (!%p190_p3), 56   ;;  %s1190_s8 = smov (!%p190_p3), 48  }
   0xc   : > { %v1174_v0 = vmov 0.0   ;;  %vm1175_vm0 = vmmov 0   ;;  %s1420_s12 = smov (!%p230_p4, %s1164_s12), 1  ;;  %vm283_vm1 = vcmask 64512   ;;  %vm265_vm2 = vcmask 31744   ;;  %s1191_s9 = smov 40  }
   0xd   : > { %1019 = vmatprep.subr.bf16.mxu0 %v1174_v0  ;;  %1021 = vmatprep.mubr.msk.bf16.mxu0 %vm1175_vm0, %v1174_v0  ;;  %s1239_s16 = sshll.u32 %s1420_s12, 2  ;;  %v1177_v6 = vmov -1e+09   ;;  %267 = vst.msk [vmem:[#allocation4] sm:$0xff] %vm265_vm2, %v1174_v0  ;;  %s249_s26 = scalar_lea.vmem %s1413_s2, %s1420_s12  ;;  %v1178_v14 = vmov 0   ;;  %vm352_vm3 = vcmask 7168  }
   0xe   : > { %1025 = vmatprep.subr.bf16.mxu1 %v1174_v0  ;;  %1027 = vmatprep.mubr.msk.bf16.mxu1 %vm1175_vm0, %v1174_v0  ;;  %s243_s19 = scalar_lea.vmem %s1412_s1, %s1239_s16  ;;  %s236_s23 = scalar_lea.vmem %s1411_s0, %s1239_s16  ;;  %266 = vst.msk [vmem:[#allocation3] sm:$0xff] %vm265_vm2, %v1177_v6  ;;  %v1261_v7 = vld [vmem:[%s249_s26] ss:$0 sm:$0xff]  ;;  %vm368_vm4 = vcmask 1043456   ;;  %v1186_v52 = vmov 1   ;;  %v1187_v59 = vmov 2  }
   0xf   : > { %v1245_v1 = vld [vmem:[%s243_s19] ss:$0 sps:$4 sm:$0xff]   ;;  %1112 = vset.pattern.permute.xlu1 %v1178_v14  ;;  %1113 = vset.pattern.permute.xlu0 %v1186_v52  ;;  %vm489_vm5 = vcmask 15368   ;;  %vm627_vm6 = vcmask 23568   ;;  %vm765_vm7 = vcmask 31768   ;;  %vm263_vm8 = vcmask 261120   ;;  %s256_s19 = scalar_lea.vmem %s1414_s3, %s1239_s16 }
  0x10   : > { %281 = vrot.lane.b32.xlu0 %v1245_v1, %s1176_s20  ;;  %v268_v4 = vld [vmem:[%s236_s23] sm:$0xf]  ;;  %264 = vst.msk [vmem:[#allocation2] sm:$0xff] %vm263_vm8, %v1174_v0  ;;  %s1192_s10 = smov 8   ;;  %s1193_s11 = smov 16   ;;  %vm553_vm9 = vcmask 130112  }
  0x11   : > { %v270_v5 = vmul.bf16 1052065461, %v268_v4  ;;  %s1194_s12 = smov 24   ;;  %vm691_vm10 = vcmask 195712   ;;  %vm829_vm11 = vcmask 261312   ;;  %vm876_vm12 = vcmask 257024  }
  0x13   : > { %v994_v19 = vcombine.low %v270_v5, %v270_v5 }
  0x15   : > { %v1266_v15 = vld [vmem:[#allocation3] sm:$0xff] }
  0x82   : > { %v282_v2 = vpop.permute.xlu0 %281 }
  0x83   : > { %v288_v3 = vsel %vm283_vm1, %v282_v2, 0  ;;  %v1188_v2 = vmov 3  }
  0x84   : > { %1020 = vmatpush3.bf16.xpose.msra.mxu0 %v288_v3 }
  0x85   : > { %1037 = vmatprep.subr.bf16.mxu0 %v1174_v0 }
  0x8b   : > { %1022 = vmatmul.mubr.msk.bf16.vlgmr.msra.gmra.mxu0 %vm283_vm1, %v270_v5 }
  0x8c   : > { %1039 = vmatprep.mubr.msk.bf16.mxu0 %vm1175_vm0, %v1174_v0 }
 0x14b   : > { %v324_v8 = vpop.f32.mrf.mxu0 }
 0x14c   : > { %v325_v9 = vadd.f32 %v1261_v7, %v324_v8 }
 0x14d   : > { %v1023_v10 = vpop.f32.mrf.mxu0 }
 0x14e   : > { %v331_v11 = vsel %vm283_vm1, %v325_v9, -inf }
 0x14f   : > { %332 = vmax.xlane.f32.xlu0 %v331_v11  ;;  %v327_v12 = vpop.f32.mrf.mxu0 }
 0x151   : > { %v1024_v13 = vpop.f32.mrf.mxu0 }
 0x1d8   : > { %v333_v16 = vpop.xlane.xlu0 %332 }
 0x1d9   : > { %v1269_v17 = vmax.f32 %v1266_v15, %v333_v16 }
 0x1db   : > { %v335_v18 = vsub.f32 %v1266_v15, %v1269_v17  ;;  %354 = vst.msk [vmem:[#allocation3] sm:$0xff] %vm352_vm3, %v1269_v17  ;;  %340 = vperm.xlu1 %1112, %v1269_v17  }
 0x1dd   : > { %v336_v11 = vmul.f32 1.442695, %v335_v18 }
 0x1df   : > { %363 = vrot.lane.b32.xlu1 %v1245_v1, %s1179_s27 }
 0x1e0   : > { %1114 = vset.pattern.permute.xlu1 %v1187_v59 }
 0x1e2   : > { %v1319_v61 = vld [vmem:[#allocation3] sm:$0xff] }
 0x1e3   : > { %419 = vrot.lane.b32.xlu1 %v1245_v1, %s1180_s28 }
 0x1e7   : > { %417 = vrot.lane.b32.xlu1 %v994_v19, %s1181_s29 }
 0x1eb   : > { %557 = vrot.lane.b32.xlu1 %v1245_v1, %s1182_s30 }
 0x1ef   : > { %555 = vrot.lane.b32.xlu1 %v994_v19, %s1183_s4 }
 0x1f3   : > { %695 = vrot.lane.b32.xlu1 %v1245_v1, %s1184_s5 }
 0x1f7   : > { %693 = vrot.lane.b32.xlu1 %v994_v19, %s1185_s6 }
 0x256   : > { %v341_v20 = vpop.permute.xlu1 %340 }
 0x257   : > { %v343_v21 = vsub.f32 %v325_v9, %v341_v20 }
 0x259   : > { %v344_v22 = vmul.f32 1.442695, %v343_v21 }
 0x25a   : > { %v364_v23 = vpop.permute.xlu1 %363 }
 0x25b   : > { %1126 = vpow2.f32 %v344_v22  ;;  %v370_v24 = vsel %vm368_vm4, %v364_v23, 0 }
 0x25c   : > { %1026 = vmatpush3.bf16.msra.mxu1 %v370_v24  ;;  %1128 = vpow2.f32 %v336_v11 }
 0x25d   : > { %1031 = vmatprep.subr.bf16.mxu1 %v1174_v0 }
 0x25e   : > { %v420_v25 = vpop.permute.xlu1 %419 }
 0x25f   : > { %v425_v28 = vsel %vm283_vm1, %v420_v25, 0 }
 0x262   : > { %v418_v26 = vpop.permute.xlu1 %417 }
 0x266   : > { %v558_v30 = vpop.permute.xlu1 %557 }
 0x267   : > { %v563_v32 = vsel %vm283_vm1, %v558_v30, 0 }
 0x268   : > { %v1282_v27 = vpop.eup %1126 }
 0x269   : > { %v362_v29 = vpack.c.bf16 %v1282_v27, %v1282_v27  ;;  %v348_v10 = vsel %vm283_vm1, %v1282_v27, 0.0  ;;  %v1129_v16 = vpop.eup %1128 }
 0x26a   : > { %v556_v31 = vpop.permute.xlu1 %555 }
 0x26b   : > { %1028 = vmatmul.mubr.msk.bf16.vlgmr.msra.gmra.mxu1 %vm283_vm1, %v362_v29 }
 0x26c   : > { %1032 = vmatpush3.bf16.xpose.msra.mxu1 %v425_v28  ;;  %1033 = vmatprep.mubr.msk.bf16.mxu1 %vm1175_vm0, %v1174_v0 }
 0x26d   : > { %1043 = vmatprep.subr.bf16.mxu1 %v1174_v0 }
 0x26e   : > { %v696_v33 = vpop.permute.xlu1 %695 }
 0x26f   : > { %v701_v34 = vsel %vm283_vm1, %v696_v33, 0 }
 0x272   : > { %v694_v35 = vpop.permute.xlu1 %693 }
 0x273   : > { %1034 = vmatmul.mubr.msk.bf16.vlgmr.msra.gmra.mxu1 %vm283_vm1, %v418_v26 }
 0x274   : > { %1044 = vmatpush3.bf16.xpose.msra.mxu1 %v563_v32  ;;  %1045 = vmatprep.mubr.msk.bf16.mxu1 %vm1175_vm0, %v1174_v0 }
 0x275   : > { %1055 = vmatprep.subr.bf16.mxu1 %v1174_v0 }
 0x27b   : > { %1046 = vmatmul.mubr.msk.bf16.vlgmr.msra.gmra.mxu1 %vm283_vm1, %v556_v31 }
 0x27c   : > { %1056 = vmatpush3.bf16.xpose.msra.mxu1 %v701_v34  ;;  %1057 = vmatprep.mubr.msk.bf16.mxu1 %vm1175_vm0, %v1174_v0 }
 0x283   : > { %1058 = vmatmul.mubr.msk.bf16.vlgmr.msra.gmra.mxu1 %vm283_vm1, %v694_v35 }
 0x32b   : > { %v1301_v36 = vpop.f32.mrf.mxu1 }
 0x32d   : > { %v1029_v37 = vpop.f32.mrf.mxu1 }
 0x32f   : > { %v409_v38 = vpop.f32.mrf.mxu1 }
 0x331   : > { %v1030_v39 = vpop.f32.mrf.mxu1 }
 0x333   : > { %v461_v40 = vpop.f32.mrf.mxu1 }
 0x334   : > { %v1304_v41 = vadd.f32 %v1261_v7, %v461_v40 }
 0x335   : > { %v1035_v42 = vpop.f32.mrf.mxu1 }
 0x336   : > { %v468_v43 = vsel %vm283_vm1, %v1304_v41, -inf }
 0x337   : > { %469 = vmax.xlane.f32.xlu1 %v468_v43  ;;  %v464_v44 = vpop.f32.mrf.mxu1  ;;  %v346_v43 = vld [vmem:[#allocation4] sm:$0xff] }
 0x338   : > { %v347_v44 = vmul.f32 %v1129_v16, %v346_v43 }
 0x339   : > { %v1036_v45 = vpop.f32.mrf.mxu1 }
 0x33b   : > { %v599_v46 = vpop.f32.mrf.mxu1 }
 0x33c   : > { %v1309_v47 = vadd.f32 %v1261_v7, %v599_v46  ;;  %v355_v46 = vld [vmem:[#allocation2] sm:$0xff] }
 0x33d   : > { %v1047_v48 = vpop.f32.mrf.mxu1 }
 0x33e   : > { %v606_v49 = vsel %vm283_vm1, %v1309_v47, -inf }
 0x33f   : > { %607 = vmax.xlane.f32.xlu0 %v606_v49  ;;  %v602_v50 = vpop.f32.mrf.mxu1 }
 0x341   : > { %v1048_v51 = vpop.f32.mrf.mxu1 }
 0x343   : > { %v737_v53 = vpop.f32.mrf.mxu1 }
 0x344   : > { %v1314_v54 = vadd.f32 %v1261_v7, %v737_v53 }
 0x345   : > { %v1059_v55 = vpop.f32.mrf.mxu1 }
 0x346   : > { %v744_v56 = vsel %vm283_vm1, %v1314_v54, -inf }
 0x347   : > { %v740_v57 = vpop.f32.mrf.mxu1  ;;  %745 = vmax.xlane.f32.xlu0 %v744_v56 }
 0x349   : > { %v1060_v58 = vpop.f32.mrf.mxu1 }
 0x3c0   : > { %v470_v60 = vpop.xlane.xlu1 %469 }
 0x3c1   : > { %v1322_v62 = vmax.f32 %v1319_v61, %v470_v60 }
 0x3c3   : > { %v472_v63 = vsub.f32 %v1319_v61, %v1322_v62  ;;  %491 = vst.msk [vmem:[#allocation3] sm:$0xff] %vm489_vm5, %v1322_v62  ;;  %477 = vperm.xlu0 %1113, %v1322_v62  }
 0x3c5   : > { %v473_v39 = vmul.f32 1.442695, %v472_v63 }
 0x3c7   : > { %1115 = vset.pattern.permute.xlu0 %v1188_v2 }
 0x3c8   : > { %v608_v3 = vpop.xlane.xlu0 %607 }
 0x3ca   : > { %v1330_v4 = vld [vmem:[#allocation3] sm:$0xff] }
 0x3cb   : > { %v1333_v5 = vmax.f32 %v1330_v4, %v608_v3 }
 0x3cd   : > { %v610_v6 = vsub.f32 %v1330_v4, %v1333_v5  ;;  %629 = vst.msk [vmem:[#allocation3] sm:$0xff] %vm627_vm6, %v1333_v5  ;;  %615 = vperm.xlu1 %1114, %v1333_v5  }
 0x3cf   : > { %v611_v50 = vmul.f32 1.442695, %v610_v6 }
 0x3d0   : > { %v746_v7 = vpop.xlane.xlu0 %745 }
 0x3d1   : > { %500 = vrot.lane.b32.xlu1 %v1245_v1, %s1189_s7 }
 0x3d2   : > { %1117 = vset.pattern.permute.xlu1 %v1186_v52 }
 0x3d4   : > { %v743_v8 = vld [vmem:[#allocation3] sm:$0xff] }
 0x3d5   : > { %v747_v9 = vmax.f32 %v743_v8, %v746_v7  ;;  %638 = vrot.lane.b32.xlu1 %v1245_v1, %s1190_s8 }
 0x3d7   : > { %767 = vst.msk [vmem:[#allocation3] sm:$0xff] %vm765_vm7, %v747_v9  ;;  %753 = vperm.xlu0 %1115, %v747_v9   ;;  %v748_v12 = vsub.f32 %v743_v8, %v747_v9 }
 0x3d9   : > { %776 = vrot.lane.b32.xlu1 %v1245_v1, %s1191_s9  ;;  %v749_v13 = vmul.f32 1.442695, %v748_v12 }
 0x3db   : > { %1116 = vset.pattern.permute.xlu0 %v1178_v14  ;;  %1130 = vpow2.f32 %v749_v13 }
 0x3e8   : > { %v1351_v1 = vpop.eup %1130 }
 0x3f6   : > { %349 = vadd.xlane.f32.xlu0 %v348_v10 }
 0x40c   : > { %358 = vperm.xlu0 %1116, %v1129_v16  }
 0x410   : > { %1119 = vset.pattern.permute.xlu0 %v1188_v2 }
 0x411   : > { %771 = vperm.xlu0 %1119, %v1351_v1  }
 0x415   : > { %1121 = vset.pattern.permute.xlu0 %v1186_v52 }
 0x43e   : > { %v478_v19 = vpop.permute.xlu0 %477 }
 0x43f   : > { %v480_v15 = vsub.f32 %v1304_v41, %v478_v19 }
 0x441   : > { %v481_v17 = vmul.f32 1.442695, %v480_v15 }
 0x443   : > { %1132 = vpow2.f32 %v481_v17 }
 0x448   : > { %v616_v18 = vpop.permute.xlu1 %615 }
 0x449   : > { %v618_v20 = vsub.f32 %v1309_v47, %v616_v18 }
 0x44b   : > { %v619_v21 = vmul.f32 1.442695, %v618_v20 }
 0x44c   : > { %v501_v22 = vpop.permute.xlu1 %500 }
 0x44d   : > { %1134 = vpow2.f32 %v619_v21  ;;  %v506_v23 = vsel %vm368_vm4, %v501_v22, 0 }
 0x44e   : > { %1038 = vmatpush3.bf16.msra.mxu0 %v506_v23 }
 0x44f   : > { %1049 = vmatprep.subr.bf16.mxu0 %v1174_v0 }
 0x450   : > { %v1133_v24 = vpop.eup %1132  ;;  %v639_v25 = vpop.permute.xlu1 %638 }
 0x451   : > { %v485_v26 = vsel %vm283_vm1, %v1133_v24, 0.0  ;;  %v499_v27 = vpack.c.bf16 %v1133_v24, %v1133_v24  ;;  %v644_v28 = vsel %vm368_vm4, %v639_v25, 0 }
 0x452   : > { %486 = vadd.xlane.f32.xlu1 %v485_v26  ;;  %v754_v29 = vpop.permute.xlu0 %753 }
 0x453   : > { %v756_v30 = vsub.f32 %v1314_v54, %v754_v29  ;;  %1040 = vmatmul.mubr.msk.bf16.vlgmr.msra.gmra.mxu0 %vm283_vm1, %v499_v27 }
 0x454   : > { %1050 = vmatpush3.bf16.msra.mxu0 %v644_v28  ;;  %1051 = vmatprep.mubr.msk.bf16.mxu0 %vm1175_vm0, %v1174_v0  ;;  %v777_v32 = vpop.permute.xlu1 %776 }
 0x455   : > { %v757_v31 = vmul.f32 1.442695, %v756_v30  ;;  %1061 = vmatprep.subr.bf16.mxu0 %v1174_v0  ;;  %v782_v37 = vsel %vm368_vm4, %v777_v32, 0 }
 0x457   : > { %1136 = vpow2.f32 %v757_v31 }
 0x458   : > { %1138 = vpow2.f32 %v473_v39 }
 0x459   : > { %1140 = vpow2.f32 %v611_v50 }
 0x45a   : > { %v1135_v33 = vpop.eup %1134 }
 0x45b   : > { %v623_v34 = vsel %vm283_vm1, %v1135_v33, 0.0  ;;  %v637_v35 = vpack.c.bf16 %v1135_v33, %v1135_v33 }
 0x45c   : > { %624 = vadd.xlane.f32.xlu1 %v623_v34 }
 0x45d   : > { %1052 = vmatmul.mubr.msk.bf16.vlgmr.msra.gmra.mxu0 %vm283_vm1, %v637_v35 }
 0x45e   : > { %1062 = vmatpush3.bf16.msra.mxu0 %v782_v37  ;;  %1063 = vmatprep.mubr.msk.bf16.mxu0 %vm1175_vm0, %v1174_v0 }
 0x464   : > { %v1137_v38 = vpop.eup %1136 }
 0x465   : > { %v761_v40 = vsel %vm283_vm1, %v1137_v38, 0.0  ;;  %v775_v41 = vpack.c.bf16 %v1137_v38, %v1137_v38  ;;  %v1139_v42 = vpop.eup %1138 }
 0x466   : > { %762 = vadd.xlane.f32.xlu1 %v761_v40  ;;  %v1141_v55 = vpop.eup %1140 }
 0x467   : > { %1064 = vmatmul.mubr.msk.bf16.vlgmr.msra.gmra.mxu0 %vm283_vm1, %v775_v41 }
 0x477   : > { %495 = vperm.xlu1 %1117, %v1139_v42  }
 0x47b   : > { %1118 = vset.pattern.permute.xlu1 %v1187_v59 }
 0x47f   : > { %v350_v45 = vpop.xlane.xlu0 %349 }
 0x480   : > { %v351_v0 = vadd.f32 %v350_v45, %v347_v44 }
 0x482   : > { %353 = vst.msk [vmem:[#allocation4] sm:$0xff] %vm352_vm3, %v351_v0 }
 0x487   : > { %v359_v47 = vpop.permute.xlu0 %358 }
 0x488   : > { %v361_v48 = vmul.f32 %v359_v47, %v355_v46 }
 0x489   : > { %v483_v51 = vld [vmem:[#allocation4] sm:$0xff] }
 0x48a   : > { %v412_v49 = vadd.f32 %v1301_v36, %v361_v48  ;;  %v484_v52 = vmul.f32 %v1139_v42, %v483_v51 }
 0x48c   : > { %413 = vst.msk [vmem:[#allocation2] sm:$0xff] %vm283_vm1, %v412_v49 }
 0x493   : > { %v492_v19 = vld [vmem:[#allocation2] sm:$0xff] }
 0x4db   : > { %v487_v53 = vpop.xlane.xlu1 %486 }
 0x4dc   : > { %v488_v54 = vadd.f32 %v487_v53, %v484_v52 }
 0x4de   : > { %490 = vst.msk [vmem:[#allocation4] sm:$0xff] %vm489_vm5, %v488_v54 }
 0x4e5   : > { %v621_v56 = vld [vmem:[#allocation4] sm:$0xff]  ;;  %v625_v58 = vpop.xlane.xlu1 %624 }
 0x4e6   : > { %v622_v57 = vmul.f32 %v1141_v55, %v621_v56 }
 0x4e8   : > { %v626_v60 = vadd.f32 %v625_v58, %v622_v57 }
 0x4ea   : > { %628 = vst.msk [vmem:[#allocation4] sm:$0xff] %vm627_vm6, %v626_v60 }
 0x4ef   : > { %v763_v62 = vpop.xlane.xlu1 %762 }
 0x4f1   : > { %v759_v36 = vld [vmem:[#allocation4] sm:$0xff] }
 0x4f2   : > { %v760_v61 = vmul.f32 %v1351_v1, %v759_v36 }
 0x4f4   : > { %v764_v63 = vadd.f32 %v763_v62, %v760_v61 }
 0x4f6   : > { %766 = vst.msk [vmem:[#allocation4] sm:$0xff] %vm765_vm7, %v764_v63 }
 0x4fd   : > { %v845_v3 = vld [vmem:[#allocation4] sm:$0xff] }
 0x4fe   : > { %848 = vperm.xlu0 %1121, %v845_v3  }
 0x502   : > { %1124 = vset.pattern.permute.xlu0 %v1188_v2 }
 0x513   : > { %v542_v4 = vpop.f32.mrf.mxu0 }
 0x514   : > { %549 = vrot.lane.b32.xlu1 %v542_v4, %s1192_s10 }
 0x515   : > { %v1041_v5 = vpop.f32.mrf.mxu0 }
 0x517   : > { %v545_v6 = vpop.f32.mrf.mxu0 }
 0x518   : > { %633 = vperm.xlu1 %1118, %v1141_v55  }
 0x519   : > { %v1042_v7 = vpop.f32.mrf.mxu0 }
 0x51c   : > { %1120 = vset.pattern.permute.xlu1 %v1178_v14  ;;  %v496_v14 = vpop.permute.xlu1 %495 }
 0x51d   : > { %v680_v8 = vpop.f32.mrf.mxu0  ;;  %v498_v15 = vmul.f32 %v496_v14, %v492_v19 }
 0x51e   : > { %687 = vrot.lane.b32.xlu1 %v680_v8, %s1193_s11 }
 0x51f   : > { %v1053_v9 = vpop.f32.mrf.mxu0 }
 0x521   : > { %v683_v10 = vpop.f32.mrf.mxu0 }
 0x523   : > { %v1054_v11 = vpop.f32.mrf.mxu0 }
 0x527   : > { %v818_v12 = vpop.f32.mrf.mxu0 }
 0x528   : > { %825 = vrot.lane.b32.xlu1 %v818_v12, %s1194_s12 }
 0x529   : > { %v1065_v13 = vpop.f32.mrf.mxu0 }
 0x52b   : > { %v821_v16 = vpop.f32.mrf.mxu0 }
 0x52c   : > { %838 = vperm.xlu1 %1120, %v845_v3  }
 0x52d   : > { %v1066_v1 = vpop.f32.mrf.mxu0 }
 0x530   : > { %1122 = vset.pattern.permute.xlu1 %v1187_v59  ;;  %v772_v59 = vpop.permute.xlu0 %771 }
 0x531   : > { %858 = vperm.xlu1 %1122, %v845_v3  }
 0x535   : > { %1123 = vset.pattern.permute.xlu1 %v1188_v2 }
 0x536   : > { %868 = vperm.xlu1 %1123, %v845_v3  }
 0x579   : > { %v849_v29 = vpop.permute.xlu0 %848 }
 0x586   : > { %v550_v17 = vpop.permute.xlu1 %549 }
 0x587   : > { %v552_v18 = vadd.f32 %v550_v17, %v498_v15 }
 0x589   : > { %554 = vst.msk [vmem:[#allocation2] sm:$0xff] %vm553_vm9, %v552_v18 }
 0x590   : > { %v630_v21 = vld [vmem:[#allocation2] sm:$0xff] }
 0x593   : > { %v634_v20 = vpop.permute.xlu1 %633 }
 0x594   : > { %v636_v22 = vmul.f32 %v634_v20, %v630_v21 }
 0x597   : > { %v688_v23 = vpop.permute.xlu1 %687 }
 0x598   : > { %v690_v24 = vadd.f32 %v688_v23, %v636_v22 }
 0x59a   : > { %692 = vst.msk [vmem:[#allocation2] sm:$0xff] %vm691_vm10, %v690_v24 }
 0x59b   : > { %v826_v26 = vpop.permute.xlu1 %825 }
 0x5a1   : > { %v768_v25 = vld [vmem:[#allocation2] sm:$0xff] }
 0x5a2   : > { %v774_v2 = vmul.f32 %v772_v59, %v768_v25 }
 0x5a4   : > { %v828_v27 = vadd.f32 %v826_v26, %v774_v2 }
 0x5a6   : > { %830 = vst.msk [vmem:[#allocation2] sm:$0xff] %vm829_vm11, %v828_v27 }
 0x5a7   : > { %v839_v28 = vpop.permute.xlu1 %838 }
 0x5a8   : > { %1142 = vrcp.f32 %v839_v28 }
 0x5a9   : > { %1144 = vrcp.f32 %v849_v29 }
 0x5ac   : > { %v859_v33 = vpop.permute.xlu1 %858 }
 0x5ad   : > { %v834_v31 = vld [vmem:[#allocation2] sm:$0xff]  ;;  %1146 = vrcp.f32 %v859_v33 }
 0x5b1   : > { %v869_v38 = vpop.permute.xlu1 %868 }
 0x5b2   : > { %1148 = vrcp.f32 %v869_v38 }
 0x5b5   : > { %v1143_v30 = vpop.eup %1142 }
 0x5b6   : > { %v842_v32 = vmul.f32 %v1143_v30, %v834_v31  ;;  %v1145_v34 = vpop.eup %1144 }
 0x5b8   : > { %843 = vst.msk [vmem:[#allocation2] sm:$0xff] %vm283_vm1, %v842_v32 }
 0x5ba   : > { %v1147_v39 = vpop.eup %1146 }
 0x5bf   : > { %v844_v35 = vld [vmem:[#allocation2] sm:$0xff]  ;;  %v1149_v42 = vpop.eup %1148 }
 0x5c0   : > { %v852_v37 = vmul.f32 %v1145_v34, %v844_v35 }
 0x5c2   : > { %853 = vst.msk [vmem:[#allocation2] sm:$0xff] %vm553_vm9, %v852_v37 }
 0x5c9   : > { %v854_v40 = vld [vmem:[#allocation2] sm:$0xff] }
 0x5ca   : > { %v862_v41 = vmul.f32 %v1147_v39, %v854_v40 }
 0x5cc   : > { %863 = vst.msk [vmem:[#allocation2] sm:$0xff] %vm691_vm10, %v862_v41 }
 0x5d3   : > { %v864_v43 = vld [vmem:[#allocation2] sm:$0xff] }
 0x5d4   : > { %v872_v44 = vmul.f32 %v1149_v42, %v864_v43 }
 0x5d6   : > { %873 = vst.msk [vmem:[#allocation2] sm:$0xff] %vm829_vm11, %v872_v44 }
 0x5dd   : > { %v874_v45 = vld [vmem:[#allocation2] sm:$0xff] }
 0x5de   : > { %v875_v0 = vpack.c.bf16 %v874_v45, %v874_v45 }
 0x5e0   : > { %877 = vst.msk [vmem:[%s256_s19] sm:$0xf] %vm876_vm12, %v875_v0 }
 0x5e1 PF: > { %s13_s14 = sadd.s32 1, %s1172_s14   ;;  %s1415_s12 = smov %s1168_s13 }
 0x5e2   : > { %p10_p5 = scmp.ge.s32.totalorder %s13_s14, 4   ;;  %s1416_s13 = smov %s1418_s15 }
 0x5e4   :  { %12 = sbr.rel (!%p10_p5) target bundleno = 2 (0x2), region = 76 }

// kernel: transformer_forward.62
= control target key start
LH: loop header
LB: loop body
LE: loop exit
PB: predicated region body
PF: predicated region fallthrough
CT: control target
= control target key end

     0   :  { %v130_v0 = vmov 0.0   ;;  %vm131_vm0 = vmmov 0   ;;  %vm45_vm1 = vcmask 261120   ;;  %vm98_vm2 = vcmask 519168   ;;  %s170_s1 = inlined_call_operand.vmem [shape: bf16[32,64], index: 1, kind: input, shape index: {}]   ;;  %s171_s0 = inlined_call_operand.vmem [shape: bf16[16,32], index: 0, kind: input, shape index: {}]   ;;  %s172_s2 = inlined_call_operand.vmem [shape: f32[1,64], index: 2, kind: input, shape index: {}]   ;;  %s173_s3 = inlined_call_operand.vmem [shape: bf16[16,64], index: 3, kind: output, shape index: {}]  }
   0x1   :  { %117 = vmatprep.subr.bf16.mxu0 %v130_v0  ;;  %v127_v1 = vld [vmem:[%s170_s1 + $0x8] sm:$0xff]   ;;  %121 = vmatprep.mubr.msk.bf16.mxu0 %vm131_vm0, %v130_v0  ;;  %v128_v2 = vld [vmem:[%s170_s1] sm:$0xff]  }
   0x2   :  { %118 = vmatpush3.bf16.msra.mxu0 %v127_v1  ;;  %v129_v3 = vld [vmem:[%s171_s0] sm:$0xff]  }
   0x3   :  { %119 = vmatprep.subr.bf16.mxu0 %v130_v0  ;;  %v105_v4 = vld [vmem:[%s172_s2] ss:$0 sm:$0xff] }
   0x6   :  { %120 = vmatpush3.bf16.msra.mxu0 %v128_v2 }
   0x9   :  { %122 = vmatmul.mubr.msk.bf16.vlgmr.msra.gmra.mxu0 %vm45_vm1, %v129_v3 }
  0xc9   :  { %v83_v5 = vpop.f32.mrf.mxu0 }
  0xca   :  { %v84_v6 = vadd.f32 %v105_v4, %v83_v5 }
  0xcb   :  { %v123_v7 = vpop.f32.mrf.mxu0 }
  0xcc   :  { %v112_v8 = vpack.c.bf16 %v84_v6, %v84_v6 }
  0xcd   :  { %v86_v9 = vpop.f32.mrf.mxu0 }
  0xce   :  { %99 = vst.msk [vmem:[%s173_s3] sm:$0xf] %vm98_vm2, %v112_v8  ;;  %v87_v10 = vadd.f32 %v105_v4, %v86_v9 }
  0xcf   :  { %v124_v11 = vpop.f32.mrf.mxu0 }
  0xd0   :  { %v113_v12 = vpack.c.bf16 %v87_v10, %v87_v10 }
  0xd2   :  { %100 = vst.msk [vmem:[%s173_s3 + $0x4] sm:$0xf] %vm98_vm2, %v113_v12 }

// kernel: transformer_forward.46
= control target key start
LH: loop header
LB: loop body
LE: loop exit
PB: predicated region body
PF: predicated region fallthrough
CT: control target
= control target key end

     0   :  { %v132_v0 = vmov 0.0   ;;  %vm133_vm0 = vmmov 0   ;;  %vm45_vm1 = vcmask 261120   ;;  %vm100_vm2 = vcmask 519168   ;;  %s172_s1 = inlined_call_operand.vmem [shape: bf16[32,64], index: 1, kind: input, shape index: {}]   ;;  %s173_s0 = inlined_call_operand.vmem [shape: bf16[16,32], index: 0, kind: input, shape index: {}]   ;;  %s174_s2 = inlined_call_operand.vmem [shape: f32[1,64], index: 2, kind: input, shape index: {}]   ;;  %s175_s3 = inlined_call_operand.vmem [shape: bf16[16,64], index: 3, kind: output, shape index: {}]  }
   0x1   :  { %119 = vmatprep.subr.bf16.mxu0 %v132_v0  ;;  %v129_v1 = vld [vmem:[%s172_s1 + $0x8] sm:$0xff]   ;;  %123 = vmatprep.mubr.msk.bf16.mxu0 %vm133_vm0, %v132_v0  ;;  %v130_v2 = vld [vmem:[%s172_s1] sm:$0xff]  }
   0x2   :  { %120 = vmatpush3.bf16.msra.mxu0 %v129_v1  ;;  %v131_v3 = vld [vmem:[%s173_s0] sm:$0xff]  }
   0x3   :  { %121 = vmatprep.subr.bf16.mxu0 %v132_v0  ;;  %v107_v4 = vld [vmem:[%s174_s2] ss:$0 sm:$0xff] }
   0x6   :  { %122 = vmatpush3.bf16.msra.mxu0 %v130_v2 }
   0x9   :  { %124 = vmatmul.mubr.msk.bf16.vlgmr.msra.gmra.mxu0 %vm45_vm1, %v131_v3 }
  0xc9   :  { %v83_v5 = vpop.f32.mrf.mxu0 }
  0xca   :  { %v84_v6 = vadd.f32 %v107_v4, %v83_v5 }
  0xcb   :  { %v125_v7 = vpop.f32.mrf.mxu0 }
  0xcc   :  { %v90_v8 = vmax.f32 %v84_v6, 0.0 }
  0xcd   :  { %v86_v9 = vpop.f32.mrf.mxu0 }
  0xce   :  { %v114_v10 = vpack.c.bf16 %v90_v8, %v90_v8  ;;  %v87_v11 = vadd.f32 %v107_v4, %v86_v9 }
  0xcf   :  { %v126_v12 = vpop.f32.mrf.mxu0 }
  0xd0   :  { %101 = vst.msk [vmem:[%s175_s3] sm:$0xf] %vm100_vm2, %v114_v10  ;;  %v91_v13 = vmax.f32 %v87_v11, 0.0 }
  0xd2   :  { %v115_v14 = vpack.c.bf16 %v91_v13, %v91_v13 }
  0xd4   :  { %102 = vst.msk [vmem:[%s175_s3 + $0x4] sm:$0xf] %vm100_vm2, %v115_v14 }

// kernel: transformer_forward.47
= control target key start
LH: loop header
LB: loop body
LE: loop exit
PB: predicated region body
PF: predicated region fallthrough
CT: control target
= control target key end

     0   :  { %v169_v0 = vmov 0.0   ;;  %vm170_vm0 = vmmov 0   ;;  %vm64_vm1 = vcmask 523264   ;;  %vm123_vm2 = vcmask 257024   ;;  %s223_s1 = inlined_call_operand.vmem [shape: bf16[64,32], index: 1, kind: input, shape index: {}]   ;;  %s224_s0 = inlined_call_operand.vmem [shape: bf16[16,64], index: 0, kind: input, shape index: {}]   ;;  %s225_s3 = inlined_call_operand.vmem [shape: bf16[16,32], index: 3, kind: input, shape index: {}]   ;;  %s226_s2 = inlined_call_operand.vmem [shape: f32[1,32], index: 2, kind: input, shape index: {}]   ;;  %s227_s4 = inlined_call_operand.vmem [shape: bf16[16,32], index: 4, kind: output, shape index: {}]  }
   0x1   :  { %150 = vmatprep.subr.bf16.mxu0 %v169_v0  ;;  %v164_v1 = vld [vmem:[%s223_s1 + $0x18] sm:$0xff]   ;;  %158 = vmatprep.mubr.msk.bf16.mxu0 %vm170_vm0, %v169_v0  ;;  %v165_v2 = vld [vmem:[%s223_s1 + $0x10] sm:$0xff]   ;;  %v166_v3 = vld [vmem:[%s223_s1 + $0x8] sm:$0xff]  }
   0x2   :  { %151 = vmatpush3.bf16.msra.mxu0 %v164_v1  ;;  %v167_v4 = vld [vmem:[%s223_s1] sm:$0xff]  }
   0x3   :  { %152 = vmatprep.subr.bf16.mxu0 %v169_v0  ;;  %v168_v5 = vld [vmem:[%s224_s0] sm:$0xff]  }
   0x4   :  { %v142_v6 = vld [vmem:[%s225_s3] sm:$0xff]  }
   0x5   :  { %v130_v7 = vld [vmem:[%s226_s2] ss:$0 sm:$0xff]  ;;  %v143_v8 = vunpack.c.l.bf16 %v142_v6  ;;  %v144_v13 = vunpack.c.h.bf16 %v142_v6 }
   0x6   :  { %153 = vmatpush3.bf16.msra.mxu0 %v165_v2 }
   0x7   :  { %154 = vmatprep.subr.bf16.mxu0 %v169_v0 }
   0xa   :  { %155 = vmatpush3.bf16.msra.mxu0 %v166_v3 }
   0xb   :  { %156 = vmatprep.subr.bf16.mxu0 %v169_v0 }
   0xe   :  { %157 = vmatpush3.bf16.msra.mxu0 %v167_v4 }
  0x11   :  { %159 = vmatmul.mubr.msk.bf16.vlgmr.msra.gmra.mxu0 %vm64_vm1, %v168_v5 }
  0xd1   :  { %v102_v9 = vpop.f32.mrf.mxu0 }
  0xd2   :  { %v103_v10 = vadd.f32 %v130_v7, %v102_v9 }
  0xd3   :  { %v160_v11 = vpop.f32.mrf.mxu0 }
  0xd4   :  { %v113_v12 = vadd.f32 %v143_v8, %v103_v10 }
  0xd5   :  { %v105_v14 = vpop.f32.mrf.mxu0 }
  0xd6   :  { %v139_v15 = vpack.c.bf16 %v113_v12, %v113_v12  ;;  %v106_v16 = vadd.f32 %v130_v7, %v105_v14 }
  0xd7   :  { %v161_v17 = vpop.f32.mrf.mxu0 }
  0xd8   :  { %124 = vst.msk [vmem:[%s227_s4] sm:$0xf] %vm123_vm2, %v139_v15  ;;  %v114_v18 = vadd.f32 %v144_v13, %v106_v16 }
  0xda   :  { %v140_v19 = vpack.c.bf16 %v114_v18, %v114_v18 }
  0xdc   :  { %125 = vst.msk [vmem:[%s227_s4 + $0x4] sm:$0xf] %vm123_vm2, %v140_v19 }

// kernel: transformer_forward.81
= control target key start
LH: loop header
LB: loop body
LE: loop exit
PB: predicated region body
PF: predicated region fallthrough
CT: control target
= control target key end

     0   :  { %v145_v1 = vmov 0.0   ;;  %vm146_vm0 = vmmov 0   ;;  %s177_s0 = inlined_call_operand.vmem [shape: bf16[16,32], index: 0, kind: input, shape index: {}]   ;;  %s178_s1 = inlined_call_operand.vmem [shape: bf16[32,64], index: 1, kind: input, shape index: {}]   ;;  %s179_s2 = inlined_call_operand.hbm [shape: f32[16,64], index: 2, kind: output, shape index: {}]  }
   0x1   :  { %v120_v0 = vld [vmem:[%s178_s1 + $0x8] sm:$0xff]   ;;  %107 = vmatprep.subr.bf16.mxu0 %v145_v1  ;;  %v121_v2 = vld [vmem:[%s178_s1] sm:$0xff]   ;;  %111 = vmatprep.mubr.msk.bf16.mxu0 %vm146_vm0, %v145_v1 }
   0x2   :  { %108 = vmatpush3.bf16.msra.mxu0 %v120_v0 }
   0x3   :  { %109 = vmatprep.subr.bf16.mxu0 %v145_v1 }
   0x4   :  { %7 = vsyncpa [#allocation3], 0  ;;  %v122_v3 = vld [vmem:[%s177_s0] sm:$0xff]   ;;  %vm36_vm1 = vcmask 261120   ;;  %vm81_vm2 = vcmask 523264   ;;  %s147_s15 = smov [#allocation2]  }
   0x5   :  { %s89_s16 = sshll.u32 %s147_s15, 4  ;;  %s90_s16 = int_to_ptr.vmem [resolvable:$true] %s89_s16 }
   0x6   :  { %110 = vmatpush3.bf16.msra.mxu0 %v121_v2  ;;  %s123_s1 = scalar_lea.vmem %s90_s16, 256  ;;  %p128_p1 = scmp.lt.s32.totalorder %s90_s16, %s90_s16 }
   0x7   :  { %p124_p0 = scmp.ne.s32.totalorder %s90_s16, %s123_s1  ;;  %p129_p2 = scmp.lt.s32.totalorder %s123_s1, %s123_s1 }
   0x9   :  { %112 = vmatmul.mubr.msk.bf16.vlgmr.msra.gmra.mxu0 %vm36_vm1, %v122_v3  ;;  %p130_p3 = por %p129_p2, %p128_p1 }
   0xb   :  { %p131_p4 = pnand %p130_p3, %p124_p0 }
  0xc9   :  { %v74_v4 = vpop.f32.mrf.mxu0 }
  0xca   :  { %82 = vst.msk [vmem:[#allocation2] sm:$0xff] %vm81_vm2, %v74_v4 }
  0xcb   :  { %v113_v5 = vpop.f32.mrf.mxu0 }
  0xcd   :  { %v77_v6 = vpop.f32.mrf.mxu0 }
  0xce   :  { %83 = vst.msk [vmem:[#allocation2 + $0x8] sm:$0xff] %vm81_vm2, %v77_v6 }
  0xcf   :  { %v114_v7 = vpop.f32.mrf.mxu0 }
  0xd0   :  { %134 = shalt.err (!%p131_p4)
}
  0xd1   :  { %s148_s0 = smov 128   ;;  %s149_s17 = smov 8  }
  0xd2   :  { %95 = dma.vmem_to_hbm [thread:$0]  %s90_s16, 256, %s179_s2, [#allocation3], %s148_s0, %s148_s0, %s149_s17  }
  0xd3   :  { %143 = dma.done.wait [#allocation3], 256  }
  0xd4   :  { %144 = vsyncadd [#allocation3], 4294967040 }
  0xd5   :  { %99 = vsyncpa [#allocation3], 1 }

// kernel: transformer_forward.61
= control target key start
LH: loop header
LB: loop body
LE: loop exit
PB: predicated region body
PF: predicated region fallthrough
CT: control target
= control target key end

     0   :  { %v130_v0 = vmov 0.0   ;;  %vm131_vm0 = vmmov 0   ;;  %vm45_vm1 = vcmask 261120   ;;  %vm98_vm2 = vcmask 257024   ;;  %s170_s1 = inlined_call_operand.vmem [shape: bf16[32,32], index: 1, kind: input, shape index: {}]   ;;  %s171_s0 = inlined_call_operand.vmem [shape: bf16[16,32], index: 0, kind: input, shape index: {}]   ;;  %s172_s2 = inlined_call_operand.vmem [shape: f32[1,32], index: 2, kind: input, shape index: {}]   ;;  %s173_s3 = inlined_call_operand.vmem [shape: bf16[16,32], index: 3, kind: output, shape index: {}]  }
   0x1   :  { %117 = vmatprep.subr.bf16.mxu0 %v130_v0  ;;  %v127_v1 = vld [vmem:[%s170_s1 + $0x8] sm:$0xff]   ;;  %121 = vmatprep.mubr.msk.bf16.mxu0 %vm131_vm0, %v130_v0  ;;  %v128_v2 = vld [vmem:[%s170_s1] sm:$0xff]  }
   0x2   :  { %118 = vmatpush3.bf16.msra.mxu0 %v127_v1  ;;  %v129_v3 = vld [vmem:[%s171_s0] sm:$0xff]  }
   0x3   :  { %119 = vmatprep.subr.bf16.mxu0 %v130_v0  ;;  %v105_v4 = vld [vmem:[%s172_s2] ss:$0 sm:$0xff] }
   0x6   :  { %120 = vmatpush3.bf16.msra.mxu0 %v128_v2 }
   0x9   :  { %122 = vmatmul.mubr.msk.bf16.vlgmr.msra.gmra.mxu0 %vm45_vm1, %v129_v3 }
  0xc9   :  { %v83_v5 = vpop.f32.mrf.mxu0 }
  0xca   :  { %v84_v6 = vadd.f32 %v105_v4, %v83_v5 }
  0xcb   :  { %v123_v7 = vpop.f32.mrf.mxu0 }
  0xcc   :  { %v112_v8 = vpack.c.bf16 %v84_v6, %v84_v6 }
  0xcd   :  { %v86_v9 = vpop.f32.mrf.mxu0 }
  0xce   :  { %99 = vst.msk [vmem:[%s173_s3] sm:$0xf] %vm98_vm2, %v112_v8  ;;  %v87_v10 = vadd.f32 %v105_v4, %v86_v9 }
  0xcf   :  { %v124_v11 = vpop.f32.mrf.mxu0 }
  0xd0   :  { %v113_v12 = vpack.c.bf16 %v87_v10, %v87_v10 }
  0xd2   :  { %100 = vst.msk [vmem:[%s173_s3 + $0x4] sm:$0xf] %vm98_vm2, %v113_v12 }

// kernel: transformer_forward.58
= control target key start
LH: loop header
LB: loop body
LE: loop exit
PB: predicated region body
PF: predicated region fallthrough
CT: control target
= control target key end

     0   :  { %s1236_s12 = smov 0   ;;  %s1238_s13 = smov 0   ;;  %s1432_s0 = inlined_call_operand.vmem [shape: bf16[2,8,96], index: 0, kind: input, shape index: {}, may-alias: {0,1}]   ;;  %s1433_s1 = inlined_call_operand.vmem [shape: bf16[2,8,96], index: 1, kind: input, shape index: {}, may-alias: {0,1}]   ;;  %s1434_s2 = inlined_call_operand.vmem [shape: f32[2,1,8], index: 2, kind: input, shape index: {}]   ;;  %s1435_s3 = inlined_call_operand.vmem [shape: bf16[2,8,32], index: 3, kind: output, shape index: {}]  }
   0x1   :  { %s1240_s14 = smov 0  }
   0x2 LB: > { %s32_s15 = sadd.s32 1, %s1189_s13  ;;  %p1007_p0 = scmp.ge.s32.totalorder %s1193_s14, 1  ;;  %s1193_s14 = sphi %s1240_s14, %s13_s14   ;;  %s1189_s13 = sphi %s1238_s13, %s1437_s13   ;;  %s1185_s12 = sphi %s1236_s12, %s1436_s12  }
   0x3   : > { %p34_p1 = scmp.ge.s32.totalorder %s32_s15, 2  ;;  %p189_p2 = scmp.lt.s32.totalorder %s1193_s14, 3 }
   0x5   : > { %s1439_s15 = smov (%p34_p1, %s32_s15), 0  ;;  %p190_p3 = pnand %p1007_p0, %p189_p2 }
   0x6   : > { %p230_p4 = scmp.lt.s32.totalorder (!%p190_p3), %s1185_s12, 1  ;;  %s1197_s20 = smov (!%p190_p3), 96  }
   0x7   : > { %193 = sbr.rel (%p190_p3) target bundleno = 1505 (0x5e1), region = 32  ;;  %s1200_s27 = smov (!%p190_p3), 64  }
   0x8   : > { %s1201_s28 = smov (!%p190_p3), 88   ;;  %s1202_s29 = smov (!%p190_p3), 120  }
   0x9   : > { %s1203_s30 = smov (!%p190_p3), 80   ;;  %s1204_s4 = smov (!%p190_p3), 112  }
   0xa   : > { %s1205_s5 = smov (!%p190_p3), 72   ;;  %s1206_s6 = smov (!%p190_p3), 104  }
   0xb   : > { %s1210_s7 = smov (!%p190_p3), 56   ;;  %s1211_s8 = smov (!%p190_p3), 48  }
   0xc   : > { %v1195_v0 = vmov 0.0   ;;  %vm1196_vm0 = vmmov 0   ;;  %s1441_s12 = smov (!%p230_p4, %s1185_s12), 1  ;;  %vm300_vm1 = vcmask 64512   ;;  %vm265_vm2 = vcmask 31744   ;;  %s1212_s9 = smov 40  }
   0xd   : > { %1040 = vmatprep.subr.bf16.mxu0 %v1195_v0  ;;  %1042 = vmatprep.mubr.msk.bf16.mxu0 %vm1196_vm0, %v1195_v0  ;;  %s1260_s16 = sshll.u32 %s1441_s12, 2  ;;  %v1198_v6 = vmov -1e+09   ;;  %267 = vst.msk [vmem:[#allocation4] sm:$0xff] %vm265_vm2, %v1195_v0  ;;  %v285_v7 = vlaneseq  ;;  %s249_s26 = scalar_lea.vmem %s1434_s2, %s1441_s12  ;;  %v1199_v18 = vmov 0   ;;  %vm369_vm4 = vcmask 7168  }
   0xe   : > { %1046 = vmatprep.subr.bf16.mxu1 %v1195_v0  ;;  %1048 = vmatprep.mubr.msk.bf16.mxu1 %vm1196_vm0, %v1195_v0  ;;  %s243_s19 = scalar_lea.vmem %s1433_s1, %s1260_s16  ;;  %s236_s23 = scalar_lea.vmem %s1432_s0, %s1260_s16  ;;  %266 = vst.msk [vmem:[#allocation3] sm:$0xff] %vm265_vm2, %v1198_v6  ;;  %v1011_v10 = vld [vmem:[%s249_s26] ss:$0 sm:$0xff]  ;;  %vm385_vm5 = vcmask 1043456   ;;  %v1207_v56 = vmov 1   ;;  %v1208_v63 = vmov 2  }
   0xf   : > { %v1266_v1 = vld [vmem:[%s243_s19] ss:$0 sps:$4 sm:$0xff]   ;;  %v286_v8 = vshrl.u32 %v285_v7, 7  ;;  %v290_v9 = vand.u32 127, %v285_v7  ;;  %1133 = vset.pattern.permute.xlu1 %v1199_v18  ;;  %1134 = vset.pattern.permute.xlu0 %v1207_v56  ;;  %vm506_vm6 = vcmask 15368   ;;  %v1209_v6 = vmov 3   ;;  %s256_s19 = scalar_lea.vmem %s1435_s3, %s1260_s16 }
  0x10   : > { %298 = vrot.lane.b32.xlu0 %v1266_v1, %s1197_s20  ;;  %v275_v4 = vld [vmem:[%s236_s23] sm:$0xf]  ;;  %vm644_vm7 = vcmask 23568   ;;  %vm782_vm8 = vcmask 31768   ;;  %vm263_vm9 = vcmask 261120   ;;  %s1213_s10 = smov 8  }
  0x11   : > { %v277_v5 = vmul.bf16 1052065461, %v275_v4  ;;  %vm293_vm3 = vcmp.gt.s32.totalorder %v290_v9, %v286_v8  ;;  %264 = vst.msk [vmem:[#allocation2] sm:$0xff] %vm263_vm9, %v1195_v0  ;;  %s1214_s11 = smov 16   ;;  %s1215_s12 = smov 24   ;;  %vm570_vm10 = vcmask 130112  }
  0x12   : > { %v1282_v11 = vsel %vm293_vm3, -1e+09, %v1011_v10  ;;  %vm708_vm11 = vcmask 195712   ;;  %vm846_vm12 = vcmask 261312   ;;  %vm897_vm13 = vcmask 257024  }
  0x13   : > { %v1015_v23 = vcombine.low %v277_v5, %v277_v5 }
  0x15   : > { %v1287_v19 = vld [vmem:[#allocation3] sm:$0xff] }
  0x82   : > { %v299_v2 = vpop.permute.xlu0 %298 }
  0x83   : > { %v305_v3 = vsel %vm300_vm1, %v299_v2, 0 }
  0x84   : > { %1041 = vmatpush3.bf16.xpose.msra.mxu0 %v305_v3 }
  0x85   : > { %1058 = vmatprep.subr.bf16.mxu0 %v1195_v0 }
  0x8b   : > { %1043 = vmatmul.mubr.msk.bf16.vlgmr.msra.gmra.mxu0 %vm300_vm1, %v277_v5 }
  0x8c   : > { %1060 = vmatprep.mubr.msk.bf16.mxu0 %vm1196_vm0, %v1195_v0 }
 0x14b   : > { %v341_v12 = vpop.f32.mrf.mxu0 }
 0x14c   : > { %v342_v13 = vadd.f32 %v341_v12, %v1282_v11 }
 0x14d   : > { %v1044_v14 = vpop.f32.mrf.mxu0 }
 0x14e   : > { %v348_v15 = vsel %vm300_vm1, %v342_v13, -inf }
 0x14f   : > { %349 = vmax.xlane.f32.xlu0 %v348_v15  ;;  %v344_v16 = vpop.f32.mrf.mxu0 }
 0x151   : > { %v1045_v17 = vpop.f32.mrf.mxu0 }
 0x1d8   : > { %v350_v20 = vpop.xlane.xlu0 %349 }
 0x1d9   : > { %v1290_v21 = vmax.f32 %v1287_v19, %v350_v20 }
 0x1db   : > { %v352_v22 = vsub.f32 %v1287_v19, %v1290_v21  ;;  %371 = vst.msk [vmem:[#allocation3] sm:$0xff] %vm369_vm4, %v1290_v21  ;;  %357 = vperm.xlu1 %1133, %v1290_v21  }
 0x1dd   : > { %v353_v15 = vmul.f32 1.442695, %v352_v22 }
 0x1df   : > { %380 = vrot.lane.b32.xlu1 %v1266_v1, %s1200_s27 }
 0x1e0   : > { %1135 = vset.pattern.permute.xlu1 %v1208_v63 }
 0x1e2   : > { %v1340_v3 = vld [vmem:[#allocation3] sm:$0xff] }
 0x1e3   : > { %436 = vrot.lane.b32.xlu1 %v1266_v1, %s1201_s28 }
 0x1e7   : > { %434 = vrot.lane.b32.xlu1 %v1015_v23, %s1202_s29 }
 0x1eb   : > { %574 = vrot.lane.b32.xlu1 %v1266_v1, %s1203_s30 }
 0x1ef   : > { %572 = vrot.lane.b32.xlu1 %v1015_v23, %s1204_s4 }
 0x1f3   : > { %712 = vrot.lane.b32.xlu1 %v1266_v1, %s1205_s5 }
 0x1f7   : > { %710 = vrot.lane.b32.xlu1 %v1015_v23, %s1206_s6 }
 0x256   : > { %v358_v24 = vpop.permute.xlu1 %357 }
 0x257   : > { %v360_v25 = vsub.f32 %v342_v13, %v358_v24 }
 0x259   : > { %v361_v26 = vmul.f32 1.442695, %v360_v25 }
 0x25a   : > { %v381_v27 = vpop.permute.xlu1 %380 }
 0x25b   : > { %1147 = vpow2.f32 %v361_v26  ;;  %v387_v28 = vsel %vm385_vm5, %v381_v27, 0 }
 0x25c   : > { %1047 = vmatpush3.bf16.msra.mxu1 %v387_v28  ;;  %1149 = vpow2.f32 %v353_v15 }
 0x25d   : > { %1052 = vmatprep.subr.bf16.mxu1 %v1195_v0 }
 0x25e   : > { %v437_v29 = vpop.permute.xlu1 %436 }
 0x25f   : > { %v442_v32 = vsel %vm300_vm1, %v437_v29, 0 }
 0x262   : > { %v435_v30 = vpop.permute.xlu1 %434 }
 0x266   : > { %v575_v34 = vpop.permute.xlu1 %574 }
 0x267   : > { %v580_v36 = vsel %vm300_vm1, %v575_v34, 0 }
 0x268   : > { %v1303_v31 = vpop.eup %1147 }
 0x269   : > { %v379_v33 = vpack.c.bf16 %v1303_v31, %v1303_v31  ;;  %v365_v14 = vsel %vm300_vm1, %v1303_v31, 0.0  ;;  %v1150_v20 = vpop.eup %1149 }
 0x26a   : > { %v573_v35 = vpop.permute.xlu1 %572 }
 0x26b   : > { %1049 = vmatmul.mubr.msk.bf16.vlgmr.msra.gmra.mxu1 %vm300_vm1, %v379_v33 }
 0x26c   : > { %1053 = vmatpush3.bf16.xpose.msra.mxu1 %v442_v32  ;;  %1054 = vmatprep.mubr.msk.bf16.mxu1 %vm1196_vm0, %v1195_v0 }
 0x26d   : > { %1064 = vmatprep.subr.bf16.mxu1 %v1195_v0 }
 0x26e   : > { %v713_v37 = vpop.permute.xlu1 %712 }
 0x26f   : > { %v718_v38 = vsel %vm300_vm1, %v713_v37, 0 }
 0x272   : > { %v711_v39 = vpop.permute.xlu1 %710 }
 0x273   : > { %1055 = vmatmul.mubr.msk.bf16.vlgmr.msra.gmra.mxu1 %vm300_vm1, %v435_v30 }
 0x274   : > { %1065 = vmatpush3.bf16.xpose.msra.mxu1 %v580_v36  ;;  %1066 = vmatprep.mubr.msk.bf16.mxu1 %vm1196_vm0, %v1195_v0 }
 0x275   : > { %1076 = vmatprep.subr.bf16.mxu1 %v1195_v0 }
 0x27b   : > { %1067 = vmatmul.mubr.msk.bf16.vlgmr.msra.gmra.mxu1 %vm300_vm1, %v573_v35 }
 0x27c   : > { %1077 = vmatpush3.bf16.xpose.msra.mxu1 %v718_v38  ;;  %1078 = vmatprep.mubr.msk.bf16.mxu1 %vm1196_vm0, %v1195_v0 }
 0x283   : > { %1079 = vmatmul.mubr.msk.bf16.vlgmr.msra.gmra.mxu1 %vm300_vm1, %v711_v39 }
 0x32b   : > { %v1322_v40 = vpop.f32.mrf.mxu1 }
 0x32d   : > { %v1050_v41 = vpop.f32.mrf.mxu1 }
 0x32f   : > { %v426_v42 = vpop.f32.mrf.mxu1 }
 0x331   : > { %v1051_v43 = vpop.f32.mrf.mxu1 }
 0x333   : > { %v478_v44 = vpop.f32.mrf.mxu1 }
 0x334   : > { %v1325_v45 = vadd.f32 %v478_v44, %v1282_v11 }
 0x335   : > { %v1056_v46 = vpop.f32.mrf.mxu1 }
 0x336   : > { %v485_v47 = vsel %vm300_vm1, %v1325_v45, -inf }
 0x337   : > { %486 = vmax.xlane.f32.xlu1 %v485_v47  ;;  %v481_v48 = vpop.f32.mrf.mxu1  ;;  %v363_v47 = vld [vmem:[#allocation4] sm:$0xff] }
 0x338   : > { %v364_v48 = vmul.f32 %v1150_v20, %v363_v47 }
 0x339   : > { %v1057_v49 = vpop.f32.mrf.mxu1 }
 0x33b   : > { %v616_v50 = vpop.f32.mrf.mxu1 }
 0x33c   : > { %v1330_v51 = vadd.f32 %v616_v50, %v1282_v11  ;;  %v372_v50 = vld [vmem:[#allocation2] sm:$0xff] }
 0x33d   : > { %v1068_v52 = vpop.f32.mrf.mxu1 }
 0x33e   : > { %v623_v53 = vsel %vm300_vm1, %v1330_v51, -inf }
 0x33f   : > { %624 = vmax.xlane.f32.xlu0 %v623_v53  ;;  %v619_v54 = vpop.f32.mrf.mxu1 }
 0x341   : > { %v1069_v55 = vpop.f32.mrf.mxu1 }
 0x343   : > { %v754_v57 = vpop.f32.mrf.mxu1 }
 0x344   : > { %v1335_v58 = vadd.f32 %v754_v57, %v1282_v11 }
 0x345   : > { %v1080_v59 = vpop.f32.mrf.mxu1 }
 0x346   : > { %v761_v60 = vsel %vm300_vm1, %v1335_v58, -inf }
 0x347   : > { %v757_v61 = vpop.f32.mrf.mxu1  ;;  %762 = vmax.xlane.f32.xlu0 %v761_v60 }
 0x349   : > { %v1081_v62 = vpop.f32.mrf.mxu1 }
 0x3c0   : > { %v487_v2 = vpop.xlane.xlu1 %486 }
 0x3c1   : > { %v1343_v4 = vmax.f32 %v1340_v3, %v487_v2 }
 0x3c3   : > { %v489_v5 = vsub.f32 %v1340_v3, %v1343_v4  ;;  %508 = vst.msk [vmem:[#allocation3] sm:$0xff] %vm506_vm6, %v1343_v4  ;;  %494 = vperm.xlu0 %1134, %v1343_v4  }
 0x3c5   : > { %v490_v43 = vmul.f32 1.442695, %v489_v5 }
 0x3c7   : > { %1136 = vset.pattern.permute.xlu0 %v1209_v6 }
 0x3c8   : > { %v625_v7 = vpop.xlane.xlu0 %624 }
 0x3ca   : > { %v1351_v8 = vld [vmem:[#allocation3] sm:$0xff] }
 0x3cb   : > { %v1354_v9 = vmax.f32 %v1351_v8, %v625_v7 }
 0x3cd   : > { %v627_v10 = vsub.f32 %v1351_v8, %v1354_v9  ;;  %646 = vst.msk [vmem:[#allocation3] sm:$0xff] %vm644_vm7, %v1354_v9  ;;  %632 = vperm.xlu1 %1135, %v1354_v9  }
 0x3cf   : > { %v628_v54 = vmul.f32 1.442695, %v627_v10 }
 0x3d0   : > { %v763_v11 = vpop.xlane.xlu0 %762 }
 0x3d1   : > { %517 = vrot.lane.b32.xlu1 %v1266_v1, %s1210_s7 }
 0x3d2   : > { %1138 = vset.pattern.permute.xlu1 %v1207_v56 }
 0x3d4   : > { %v760_v12 = vld [vmem:[#allocation3] sm:$0xff] }
 0x3d5   : > { %v764_v13 = vmax.f32 %v760_v12, %v763_v11  ;;  %655 = vrot.lane.b32.xlu1 %v1266_v1, %s1211_s8 }
 0x3d7   : > { %784 = vst.msk [vmem:[#allocation3] sm:$0xff] %vm782_vm8, %v764_v13  ;;  %770 = vperm.xlu0 %1136, %v764_v13   ;;  %v765_v16 = vsub.f32 %v760_v12, %v764_v13 }
 0x3d9   : > { %793 = vrot.lane.b32.xlu1 %v1266_v1, %s1212_s9  ;;  %v766_v17 = vmul.f32 1.442695, %v765_v16 }
 0x3db   : > { %1137 = vset.pattern.permute.xlu0 %v1199_v18  ;;  %1151 = vpow2.f32 %v766_v17 }
 0x3e8   : > { %v1372_v1 = vpop.eup %1151 }
 0x3f6   : > { %366 = vadd.xlane.f32.xlu0 %v365_v14 }
 0x40c   : > { %375 = vperm.xlu0 %1137, %v1150_v20  }
 0x410   : > { %1140 = vset.pattern.permute.xlu0 %v1209_v6 }
 0x411   : > { %788 = vperm.xlu0 %1140, %v1372_v1  }
 0x415   : > { %1142 = vset.pattern.permute.xlu0 %v1207_v56 }
 0x43e   : > { %v495_v23 = vpop.permute.xlu0 %494 }
 0x43f   : > { %v497_v19 = vsub.f32 %v1325_v45, %v495_v23 }
 0x441   : > { %v498_v21 = vmul.f32 1.442695, %v497_v19 }
 0x443   : > { %1153 = vpow2.f32 %v498_v21 }
 0x448   : > { %v633_v22 = vpop.permute.xlu1 %632 }
 0x449   : > { %v635_v24 = vsub.f32 %v1330_v51, %v633_v22 }
 0x44b   : > { %v636_v25 = vmul.f32 1.442695, %v635_v24 }
 0x44c   : > { %v518_v26 = vpop.permute.xlu1 %517 }
 0x44d   : > { %1155 = vpow2.f32 %v636_v25  ;;  %v523_v27 = vsel %vm385_vm5, %v518_v26, 0 }
 0x44e   : > { %1059 = vmatpush3.bf16.msra.mxu0 %v523_v27 }
 0x44f   : > { %1070 = vmatprep.subr.bf16.mxu0 %v1195_v0 }
 0x450   : > { %v1154_v28 = vpop.eup %1153  ;;  %v656_v29 = vpop.permute.xlu1 %655 }
 0x451   : > { %v502_v30 = vsel %vm300_vm1, %v1154_v28, 0.0  ;;  %v516_v31 = vpack.c.bf16 %v1154_v28, %v1154_v28  ;;  %v661_v32 = vsel %vm385_vm5, %v656_v29, 0 }
 0x452   : > { %503 = vadd.xlane.f32.xlu1 %v502_v30  ;;  %v771_v33 = vpop.permute.xlu0 %770 }
 0x453   : > { %v773_v34 = vsub.f32 %v1335_v58, %v771_v33  ;;  %1061 = vmatmul.mubr.msk.bf16.vlgmr.msra.gmra.mxu0 %vm300_vm1, %v516_v31 }
 0x454   : > { %1071 = vmatpush3.bf16.msra.mxu0 %v661_v32  ;;  %1072 = vmatprep.mubr.msk.bf16.mxu0 %vm1196_vm0, %v1195_v0  ;;  %v794_v36 = vpop.permute.xlu1 %793 }
 0x455   : > { %v774_v35 = vmul.f32 1.442695, %v773_v34  ;;  %1082 = vmatprep.subr.bf16.mxu0 %v1195_v0  ;;  %v799_v41 = vsel %vm385_vm5, %v794_v36, 0 }
 0x457   : > { %1157 = vpow2.f32 %v774_v35 }
 0x458   : > { %1159 = vpow2.f32 %v490_v43 }
 0x459   : > { %1161 = vpow2.f32 %v628_v54 }
 0x45a   : > { %v1156_v37 = vpop.eup %1155 }
 0x45b   : > { %v640_v38 = vsel %vm300_vm1, %v1156_v37, 0.0  ;;  %v654_v39 = vpack.c.bf16 %v1156_v37, %v1156_v37 }
 0x45c   : > { %641 = vadd.xlane.f32.xlu1 %v640_v38 }
 0x45d   : > { %1073 = vmatmul.mubr.msk.bf16.vlgmr.msra.gmra.mxu0 %vm300_vm1, %v654_v39 }
 0x45e   : > { %1083 = vmatpush3.bf16.msra.mxu0 %v799_v41  ;;  %1084 = vmatprep.mubr.msk.bf16.mxu0 %vm1196_vm0, %v1195_v0 }
 0x464   : > { %v1158_v42 = vpop.eup %1157 }
 0x465   : > { %v778_v44 = vsel %vm300_vm1, %v1158_v42, 0.0  ;;  %v792_v45 = vpack.c.bf16 %v1158_v42, %v1158_v42  ;;  %v1160_v46 = vpop.eup %1159 }
 0x466   : > { %779 = vadd.xlane.f32.xlu1 %v778_v44  ;;  %v1162_v59 = vpop.eup %1161 }
 0x467   : > { %1085 = vmatmul.mubr.msk.bf16.vlgmr.msra.gmra.mxu0 %vm300_vm1, %v792_v45 }
 0x477   : > { %512 = vperm.xlu1 %1138, %v1160_v46  }
 0x47b   : > { %1139 = vset.pattern.permute.xlu1 %v1208_v63 }
 0x47f   : > { %v367_v49 = vpop.xlane.xlu0 %366 }
 0x480   : > { %v368_v0 = vadd.f32 %v367_v49, %v364_v48 }
 0x482   : > { %370 = vst.msk [vmem:[#allocation4] sm:$0xff] %vm369_vm4, %v368_v0 }
 0x487   : > { %v376_v51 = vpop.permute.xlu0 %375 }
 0x488   : > { %v378_v52 = vmul.f32 %v376_v51, %v372_v50 }
 0x489   : > { %v500_v55 = vld [vmem:[#allocation4] sm:$0xff] }
 0x48a   : > { %v429_v53 = vadd.f32 %v1322_v40, %v378_v52  ;;  %v501_v56 = vmul.f32 %v1160_v46, %v500_v55 }
 0x48c   : > { %430 = vst.msk [vmem:[#allocation2] sm:$0xff] %vm300_vm1, %v429_v53 }
 0x493   : > { %v509_v23 = vld [vmem:[#allocation2] sm:$0xff] }
 0x4db   : > { %v504_v57 = vpop.xlane.xlu1 %503 }
 0x4dc   : > { %v505_v58 = vadd.f32 %v504_v57, %v501_v56 }
 0x4de   : > { %507 = vst.msk [vmem:[#allocation4] sm:$0xff] %vm506_vm6, %v505_v58 }
 0x4e5   : > { %v638_v60 = vld [vmem:[#allocation4] sm:$0xff]  ;;  %v642_v62 = vpop.xlane.xlu1 %641 }
 0x4e6   : > { %v639_v61 = vmul.f32 %v1162_v59, %v638_v60 }
 0x4e8   : > { %v643_v2 = vadd.f32 %v642_v62, %v639_v61 }
 0x4ea   : > { %645 = vst.msk [vmem:[#allocation4] sm:$0xff] %vm644_vm7, %v643_v2 }
 0x4ef   : > { %v780_v4 = vpop.xlane.xlu1 %779 }
 0x4f1   : > { %v776_v40 = vld [vmem:[#allocation4] sm:$0xff] }
 0x4f2   : > { %v777_v3 = vmul.f32 %v1372_v1, %v776_v40 }
 0x4f4   : > { %v781_v5 = vadd.f32 %v780_v4, %v777_v3 }
 0x4f6   : > { %783 = vst.msk [vmem:[#allocation4] sm:$0xff] %vm782_vm8, %v781_v5 }
 0x4fd   : > { %v863_v7 = vld [vmem:[#allocation4] sm:$0xff] }
 0x4fe   : > { %866 = vperm.xlu0 %1142, %v863_v7  }
 0x502   : > { %1145 = vset.pattern.permute.xlu0 %v1209_v6 }
 0x513   : > { %v559_v8 = vpop.f32.mrf.mxu0 }
 0x514   : > { %566 = vrot.lane.b32.xlu1 %v559_v8, %s1213_s10 }
 0x515   : > { %v1062_v9 = vpop.f32.mrf.mxu0 }
 0x517   : > { %v562_v10 = vpop.f32.mrf.mxu0 }
 0x518   : > { %650 = vperm.xlu1 %1139, %v1162_v59  }
 0x519   : > { %v1063_v11 = vpop.f32.mrf.mxu0 }
 0x51c   : > { %1141 = vset.pattern.permute.xlu1 %v1199_v18  ;;  %v513_v18 = vpop.permute.xlu1 %512 }
 0x51d   : > { %v697_v12 = vpop.f32.mrf.mxu0  ;;  %v515_v19 = vmul.f32 %v513_v18, %v509_v23 }
 0x51e   : > { %704 = vrot.lane.b32.xlu1 %v697_v12, %s1214_s11 }
 0x51f   : > { %v1074_v13 = vpop.f32.mrf.mxu0 }
 0x521   : > { %v700_v14 = vpop.f32.mrf.mxu0 }
 0x523   : > { %v1075_v15 = vpop.f32.mrf.mxu0 }
 0x527   : > { %v835_v16 = vpop.f32.mrf.mxu0 }
 0x528   : > { %842 = vrot.lane.b32.xlu1 %v835_v16, %s1215_s12 }
 0x529   : > { %v1086_v17 = vpop.f32.mrf.mxu0 }
 0x52b   : > { %v838_v20 = vpop.f32.mrf.mxu0 }
 0x52c   : > { %855 = vperm.xlu1 %1141, %v863_v7  }
 0x52d   : > { %v1087_v1 = vpop.f32.mrf.mxu0 }
 0x530   : > { %1143 = vset.pattern.permute.xlu1 %v1208_v63  ;;  %v789_v63 = vpop.permute.xlu0 %788 }
 0x531   : > { %877 = vperm.xlu1 %1143, %v863_v7  }
 0x535   : > { %1144 = vset.pattern.permute.xlu1 %v1209_v6 }
 0x536   : > { %888 = vperm.xlu1 %1144, %v863_v7  }
 0x579   : > { %v867_v33 = vpop.permute.xlu0 %866 }
 0x586   : > { %v567_v21 = vpop.permute.xlu1 %566 }
 0x587   : > { %v569_v22 = vadd.f32 %v567_v21, %v515_v19 }
 0x589   : > { %571 = vst.msk [vmem:[#allocation2] sm:$0xff] %vm570_vm10, %v569_v22 }
 0x590   : > { %v647_v25 = vld [vmem:[#allocation2] sm:$0xff] }
 0x593   : > { %v651_v24 = vpop.permute.xlu1 %650 }
 0x594   : > { %v653_v26 = vmul.f32 %v651_v24, %v647_v25 }
 0x597   : > { %v705_v27 = vpop.permute.xlu1 %704 }
 0x598   : > { %v707_v28 = vadd.f32 %v705_v27, %v653_v26 }
 0x59a   : > { %709 = vst.msk [vmem:[#allocation2] sm:$0xff] %vm708_vm11, %v707_v28 }
 0x59b   : > { %v843_v30 = vpop.permute.xlu1 %842 }
 0x5a1   : > { %v785_v29 = vld [vmem:[#allocation2] sm:$0xff] }
 0x5a2   : > { %v791_v6 = vmul.f32 %v789_v63, %v785_v29 }
 0x5a4   : > { %v845_v31 = vadd.f32 %v843_v30, %v791_v6 }
 0x5a6   : > { %847 = vst.msk [vmem:[#allocation2] sm:$0xff] %vm846_vm12, %v845_v31 }
 0x5a7   : > { %v856_v32 = vpop.permute.xlu1 %855 }
 0x5a8   : > { %1163 = vrcp.f32 %v856_v32 }
 0x5a9   : > { %1165 = vrcp.f32 %v867_v33 }
 0x5ac   : > { %v878_v37 = vpop.permute.xlu1 %877 }
 0x5ad   : > { %v851_v35 = vld [vmem:[#allocation2] sm:$0xff]  ;;  %1167 = vrcp.f32 %v878_v37 }
 0x5b1   : > { %v889_v42 = vpop.permute.xlu1 %888 }
 0x5b2   : > { %1169 = vrcp.f32 %v889_v42 }
 0x5b5   : > { %v1164_v34 = vpop.eup %1163 }
 0x5b6   : > { %v859_v36 = vmul.f32 %v1164_v34, %v851_v35  ;;  %v1166_v38 = vpop.eup %1165 }
 0x5b8   : > { %861 = vst.msk [vmem:[#allocation2] sm:$0xff] %vm300_vm1, %v859_v36 }
 0x5ba   : > { %v1168_v43 = vpop.eup %1167 }
 0x5bf   : > { %v862_v39 = vld [vmem:[#allocation2] sm:$0xff]  ;;  %v1170_v46 = vpop.eup %1169 }
 0x5c0   : > { %v870_v41 = vmul.f32 %v1166_v38, %v862_v39 }
 0x5c2   : > { %872 = vst.msk [vmem:[#allocation2] sm:$0xff] %vm570_vm10, %v870_v41 }
 0x5c9   : > { %v873_v44 = vld [vmem:[#allocation2] sm:$0xff] }
 0x5ca   : > { %v881_v45 = vmul.f32 %v1168_v43, %v873_v44 }
 0x5cc   : > { %883 = vst.msk [vmem:[#allocation2] sm:$0xff] %vm708_vm11, %v881_v45 }
 0x5d3   : > { %v884_v47 = vld [vmem:[#allocation2] sm:$0xff] }
 0x5d4   : > { %v892_v48 = vmul.f32 %v1170_v46, %v884_v47 }
 0x5d6   : > { %894 = vst.msk [vmem:[#allocation2] sm:$0xff] %vm846_vm12, %v892_v48 }
 0x5dd   : > { %v895_v49 = vld [vmem:[#allocation2] sm:$0xff] }
 0x5de   : > { %v896_v0 = vpack.c.bf16 %v895_v49, %v895_v49 }
 0x5e0   : > { %898 = vst.msk [vmem:[%s256_s19] sm:$0xf] %vm897_vm13, %v896_v0 }
 0x5e1 PF: > { %s13_s14 = sadd.s32 1, %s1193_s14   ;;  %s1436_s12 = smov %s1189_s13 }
 0x5e2   : > { %p10_p5 = scmp.ge.s32.totalorder %s13_s14, 4   ;;  %s1437_s13 = smov %s1439_s15 }
 0x5e4   :  { %12 = sbr.rel (!%p10_p5) target bundleno = 2 (0x2), region = 80 }

// kernel: transformer_forward.63
= control target key start
LH: loop header
LB: loop body
LE: loop exit
PB: predicated region body
PF: predicated region fallthrough
CT: control target
= control target key end

     0   :  { %s1204_s12 = smov 0   ;;  %s1206_s13 = smov 0   ;;  %s1394_s0 = inlined_call_operand.vmem [shape: bf16[2,8,32], index: 0, kind: input, shape index: {}]   ;;  %s1395_s1 = inlined_call_operand.vmem [shape: bf16[2,8,64], index: 1, kind: input, shape index: {}]   ;;  %s1396_s2 = inlined_call_operand.vmem [shape: f32[2,1,8], index: 2, kind: input, shape index: {}]   ;;  %s1397_s3 = inlined_call_operand.vmem [shape: bf16[2,8,32], index: 3, kind: output, shape index: {}]  }
   0x1   :  { %s1208_s14 = smov 0  }
   0x2 LB: > { %s32_s15 = sadd.s32 1, %s1161_s13  ;;  %p984_p0 = scmp.ge.s32.totalorder %s1165_s14, 1  ;;  %s1165_s14 = sphi %s1208_s14, %s13_s14   ;;  %s1161_s13 = sphi %s1206_s13, %s1399_s13   ;;  %s1157_s12 = sphi %s1204_s12, %s1398_s12  }
   0x3   : > { %p34_p1 = scmp.ge.s32.totalorder %s32_s15, 2  ;;  %p189_p2 = scmp.lt.s32.totalorder %s1165_s14, 3 }
   0x5   : > { %s1401_s15 = smov (%p34_p1, %s32_s15), 0  ;;  %p190_p3 = pnand %p984_p0, %p189_p2 }
   0x6   : > { %p230_p4 = scmp.lt.s32.totalorder (!%p190_p3), %s1157_s12, 1  ;;  %s1171_s26 = smov (!%p190_p3), 96  }
   0x7   : > { %193 = sbr.rel (%p190_p3) target bundleno = 1390 (0x56e), region = 32  ;;  %s1172_s27 = smov (!%p190_p3), 120  }
   0x8   : > { %s1173_s28 = smov (!%p190_p3), 112   ;;  %s1174_s29 = smov (!%p190_p3), 104  }
   0x9   : > { %s1177_s30 = smov (!%p190_p3), 88   ;;  %s1179_s4 = smov (!%p190_p3), 80  }
   0xa   : > { %s1180_s5 = smov (!%p190_p3), 72   ;;  %s1181_s6 = smov (!%p190_p3), 8  }
   0xb   : > { %s1182_s7 = smov (!%p190_p3), 16   ;;  %s1183_s8 = smov (!%p190_p3), 24  }
   0xc   : > { %v1167_v0 = vmov 0.0   ;;  %vm1168_vm0 = vmmov 0   ;;  %s1403_s12 = smov (!%p230_p4, %s1157_s12), 1  ;;  %vm278_vm1 = vcmask 64512   ;;  %vm265_vm2 = vcmask 31744  }
   0xd   : > { %1017 = vmatprep.subr.bf16.mxu0 %v1167_v0  ;;  %1019 = vmatprep.mubr.msk.bf16.mxu0 %vm1168_vm0, %v1167_v0  ;;  %s1228_s16 = sshll.u32 %s1403_s12, 2  ;;  %v1169_v5 = vmov -1e+09   ;;  %267 = vst.msk [vmem:[#allocation4] sm:$0xff] %vm265_vm2, %v1167_v0  ;;  %s249_s25 = scalar_lea.vmem %s1396_s2, %s1403_s12  ;;  %v1170_v13 = vmov 0   ;;  %vm347_vm3 = vcmask 7168  }
   0xe   : > { %1023 = vmatprep.subr.bf16.mxu1 %v1167_v0  ;;  %1025 = vmatprep.mubr.msk.bf16.mxu1 %vm1168_vm0, %v1167_v0  ;;  %s236_s19 = scalar_lea.vmem %s1394_s0, %s1228_s16  ;;  %s243_s22 = scalar_lea.vmem %s1395_s1, %s1228_s16  ;;  %266 = vst.msk [vmem:[#allocation3] sm:$0xff] %vm265_vm2, %v1169_v5  ;;  %v1247_v6 = vld [vmem:[%s249_s25] ss:$0 sm:$0xff]  ;;  %vm366_vm4 = vcmask 1043456   ;;  %v1175_v52 = vmov 1   ;;  %v1176_v59 = vmov 2  }
   0xf   : > { %v269_v1 = vld [vmem:[%s243_s22] sm:$0xf]  ;;  %1106 = vset.pattern.permute.xlu0 %v1170_v13  ;;  %1107 = vset.pattern.permute.xlu1 %v1175_v52  ;;  %vm487_vm5 = vcmask 15368   ;;  %vm625_vm6 = vcmask 23568   ;;  %vm763_vm7 = vcmask 31768   ;;  %vm263_vm8 = vcmask 261120   ;;  %s256_s11 = scalar_lea.vmem %s1397_s3, %s1228_s16 }
  0x10   : > { %v283_v2 = vsel %vm278_vm1, %v269_v1, 0  ;;  %v268_v3 = vld [vmem:[%s236_s19] sm:$0xf]  ;;  %v1252_v14 = vcombine.low %v269_v1, %v269_v1  ;;  %v1178_v1 = vmov 3   ;;  %264 = vst.msk [vmem:[#allocation2] sm:$0xff] %vm263_vm8, %v1167_v0  ;;  %vm551_vm9 = vcmask 130112  }
  0x11   : > { %1018 = vmatpush3.bf16.xpose.msra.mxu0 %v283_v2  ;;  %v270_v4 = vmul.bf16 1052065461, %v268_v3  ;;  %vm689_vm10 = vcmask 195712   ;;  %vm827_vm11 = vcmask 261312   ;;  %vm874_vm12 = vcmask 257024  }
  0x12   : > { %1035 = vmatprep.subr.bf16.mxu0 %v1167_v0  ;;  %361 = vrot.lane.b32.xlu1 %v1252_v14, %s1171_s26 }
  0x13   : > { %v992_v15 = vcombine.low %v270_v4, %v270_v4 }
  0x15   : > { %v1258_v16 = vld [vmem:[#allocation3] sm:$0xff] }
  0x16   : > { %417 = vrot.lane.b32.xlu1 %v1252_v14, %s1172_s27 }
  0x18   : > { %1020 = vmatmul.mubr.msk.bf16.vlgmr.msra.gmra.mxu0 %vm278_vm1, %v270_v4 }
  0x19   : > { %1037 = vmatprep.mubr.msk.bf16.mxu0 %vm1168_vm0, %v1167_v0 }
  0x1a   : > { %415 = vrot.lane.b32.xlu1 %v992_v15, %s1172_s27 }
  0x1e   : > { %555 = vrot.lane.b32.xlu1 %v1252_v14, %s1173_s28 }
  0x22   : > { %553 = vrot.lane.b32.xlu1 %v992_v15, %s1173_s28 }
  0x26   : > { %693 = vrot.lane.b32.xlu1 %v1252_v14, %s1174_s29 }
  0x2a   : > { %691 = vrot.lane.b32.xlu1 %v992_v15, %s1174_s29 }
  0x84   : > { %v362_v20 = vpop.permute.xlu1 %361 }
  0x85   : > { %v368_v21 = vsel %vm366_vm4, %v362_v20, 0 }
  0x86   : > { %1024 = vmatpush3.bf16.msra.mxu1 %v368_v21 }
  0x87   : > { %1029 = vmatprep.subr.bf16.mxu1 %v1167_v0 }
  0x88   : > { %v418_v25 = vpop.permute.xlu1 %417 }
  0x89   : > { %v423_v28 = vsel %vm278_vm1, %v418_v25, 0 }
  0x8c   : > { %v416_v26 = vpop.permute.xlu1 %415 }
  0x90   : > { %v556_v30 = vpop.permute.xlu1 %555 }
  0x91   : > { %v561_v32 = vsel %vm278_vm1, %v556_v30, 0 }
  0x94   : > { %v554_v31 = vpop.permute.xlu1 %553 }
  0x98   : > { %v694_v33 = vpop.permute.xlu1 %693 }
  0x99   : > { %v699_v34 = vsel %vm278_vm1, %v694_v33, 0 }
  0x9c   : > { %v692_v35 = vpop.permute.xlu1 %691 }
  0xd8   : > { %v319_v7 = vpop.f32.mrf.mxu0 }
  0xd9   : > { %v320_v8 = vadd.f32 %v1247_v6, %v319_v7 }
  0xda   : > { %v1021_v9 = vpop.f32.mrf.mxu0 }
  0xdb   : > { %v326_v10 = vsel %vm278_vm1, %v320_v8, -inf }
  0xdc   : > { %327 = vmax.xlane.f32.xlu0 %v326_v10  ;;  %v322_v11 = vpop.f32.mrf.mxu0 }
  0xde   : > { %v1022_v12 = vpop.f32.mrf.mxu0 }
 0x165   : > { %v328_v17 = vpop.xlane.xlu0 %327 }
 0x166   : > { %v1261_v18 = vmax.f32 %v1258_v16, %v328_v17 }
 0x168   : > { %v330_v19 = vsub.f32 %v1258_v16, %v1261_v18  ;;  %349 = vst.msk [vmem:[#allocation3] sm:$0xff] %vm347_vm3, %v1261_v18  ;;  %335 = vperm.xlu0 %1106, %v1261_v18  }
 0x16a   : > { %v331_v10 = vmul.f32 1.442695, %v330_v19 }
 0x16c   : > { %1108 = vset.pattern.permute.xlu0 %v1176_v59 }
 0x16f   : > { %v1308_v61 = vld [vmem:[#allocation3] sm:$0xff] }
 0x1e3   : > { %v336_v22 = vpop.permute.xlu0 %335 }
 0x1e4   : > { %v338_v23 = vsub.f32 %v320_v8, %v336_v22 }
 0x1e6   : > { %v339_v24 = vmul.f32 1.442695, %v338_v23 }
 0x1e8   : > { %1119 = vpow2.f32 %v339_v24 }
 0x1e9   : > { %1121 = vpow2.f32 %v331_v10 }
 0x1f5   : > { %v1270_v27 = vpop.eup %1119 }
 0x1f6   : > { %v357_v29 = vpack.c.bf16 %v1270_v27, %v1270_v27  ;;  %v343_v11 = vsel %vm278_vm1, %v1270_v27, 0.0  ;;  %v1122_v12 = vpop.eup %1121 }
 0x1f8   : > { %1026 = vmatmul.mubr.msk.bf16.vlgmr.msra.gmra.mxu1 %vm278_vm1, %v357_v29 }
 0x1f9   : > { %1030 = vmatpush3.bf16.xpose.msra.mxu1 %v423_v28  ;;  %1031 = vmatprep.mubr.msk.bf16.mxu1 %vm1168_vm0, %v1167_v0 }
 0x1fa   : > { %1041 = vmatprep.subr.bf16.mxu1 %v1167_v0 }
 0x200   : > { %1032 = vmatmul.mubr.msk.bf16.vlgmr.msra.gmra.mxu1 %vm278_vm1, %v416_v26 }
 0x201   : > { %1042 = vmatpush3.bf16.xpose.msra.mxu1 %v561_v32  ;;  %1043 = vmatprep.mubr.msk.bf16.mxu1 %vm1168_vm0, %v1167_v0 }
 0x202   : > { %1053 = vmatprep.subr.bf16.mxu1 %v1167_v0 }
 0x208   : > { %1044 = vmatmul.mubr.msk.bf16.vlgmr.msra.gmra.mxu1 %vm278_vm1, %v554_v31 }
 0x209   : > { %1054 = vmatpush3.bf16.xpose.msra.mxu1 %v699_v34  ;;  %1055 = vmatprep.mubr.msk.bf16.mxu1 %vm1168_vm0, %v1167_v0 }
 0x210   : > { %1056 = vmatmul.mubr.msk.bf16.vlgmr.msra.gmra.mxu1 %vm278_vm1, %v692_v35 }
 0x2b8   : > { %v1289_v36 = vpop.f32.mrf.mxu1 }
 0x2ba   : > { %v1027_v37 = vpop.f32.mrf.mxu1 }
 0x2bc   : > { %v407_v38 = vpop.f32.mrf.mxu1 }
 0x2be   : > { %v1028_v39 = vpop.f32.mrf.mxu1 }
 0x2c0   : > { %v459_v40 = vpop.f32.mrf.mxu1 }
 0x2c1   : > { %v1292_v41 = vadd.f32 %v1247_v6, %v459_v40 }
 0x2c2   : > { %v1033_v42 = vpop.f32.mrf.mxu1 }
 0x2c3   : > { %v466_v43 = vsel %vm278_vm1, %v1292_v41, -inf }
 0x2c4   : > { %467 = vmax.xlane.f32.xlu1 %v466_v43  ;;  %v462_v44 = vpop.f32.mrf.mxu1  ;;  %v341_v43 = vld [vmem:[#allocation4] sm:$0xff] }
 0x2c5   : > { %v342_v44 = vmul.f32 %v1122_v12, %v341_v43 }
 0x2c6   : > { %v1034_v45 = vpop.f32.mrf.mxu1 }
 0x2c8   : > { %v597_v46 = vpop.f32.mrf.mxu1 }
 0x2c9   : > { %v1297_v47 = vadd.f32 %v1247_v6, %v597_v46 }
 0x2ca   : > { %v1045_v48 = vpop.f32.mrf.mxu1 }
 0x2cb   : > { %v604_v49 = vsel %vm278_vm1, %v1297_v47, -inf }
 0x2cc   : > { %605 = vmax.xlane.f32.xlu0 %v604_v49  ;;  %v600_v50 = vpop.f32.mrf.mxu1 }
 0x2ce   : > { %v1046_v51 = vpop.f32.mrf.mxu1 }
 0x2d0   : > { %v735_v53 = vpop.f32.mrf.mxu1 }
 0x2d1   : > { %v1303_v54 = vadd.f32 %v1247_v6, %v735_v53 }
 0x2d2   : > { %v1057_v55 = vpop.f32.mrf.mxu1 }
 0x2d3   : > { %v742_v56 = vsel %vm278_vm1, %v1303_v54, -inf }
 0x2d4   : > { %v738_v57 = vpop.f32.mrf.mxu1  ;;  %743 = vmax.xlane.f32.xlu1 %v742_v56 }
 0x2d6   : > { %v1058_v58 = vpop.f32.mrf.mxu1 }
 0x34d   : > { %v468_v60 = vpop.xlane.xlu1 %467 }
 0x34e   : > { %v1311_v62 = vmax.f32 %v1308_v61, %v468_v60 }
 0x350   : > { %v470_v63 = vsub.f32 %v1308_v61, %v1311_v62  ;;  %489 = vst.msk [vmem:[#allocation3] sm:$0xff] %vm487_vm5, %v1311_v62  ;;  %475 = vperm.xlu1 %1107, %v1311_v62  }
 0x352   : > { %v471_v34 = vmul.f32 1.442695, %v470_v63 }
 0x354   : > { %498 = vrot.lane.b32.xlu1 %v1252_v14, %s1177_s30 }
 0x355   : > { %1109 = vset.pattern.permute.xlu1 %v1178_v1  ;;  %v606_v2 = vpop.xlane.xlu0 %605 }
 0x357   : > { %v1320_v3 = vld [vmem:[#allocation3] sm:$0xff] }
 0x358   : > { %v1323_v4 = vmax.f32 %v1320_v3, %v606_v2 }
 0x35a   : > { %v608_v5 = vsub.f32 %v1320_v3, %v1323_v4  ;;  %627 = vst.msk [vmem:[#allocation3] sm:$0xff] %vm625_vm6, %v1323_v4  ;;  %613 = vperm.xlu0 %1108, %v1323_v4  }
 0x35c   : > { %v609_v37 = vmul.f32 1.442695, %v608_v5 }
 0x35d   : > { %v744_v6 = vpop.xlane.xlu1 %743 }
 0x35e   : > { %1111 = vset.pattern.permute.xlu0 %v1175_v52 }
 0x361   : > { %v741_v7 = vld [vmem:[#allocation3] sm:$0xff] }
 0x362   : > { %v745_v8 = vmax.f32 %v741_v7, %v744_v6 }
 0x364   : > { %v746_v9 = vsub.f32 %v741_v7, %v745_v8  ;;  %765 = vst.msk [vmem:[#allocation3] sm:$0xff] %vm763_vm7, %v745_v8  ;;  %751 = vperm.xlu1 %1109, %v745_v8  }
 0x366   : > { %v747_v40 = vmul.f32 1.442695, %v746_v9 }
 0x368   : > { %636 = vrot.lane.b32.xlu1 %v1252_v14, %s1179_s4 }
 0x369   : > { %1110 = vset.pattern.permute.xlu1 %v1170_v13 }
 0x36c   : > { %774 = vrot.lane.b32.xlu1 %v1252_v14, %s1180_s5 }
 0x390   : > { %344 = vadd.xlane.f32.xlu1 %v343_v11 }
 0x3a1   : > { %353 = vperm.xlu1 %1110, %v1122_v12  }
 0x3cb   : > { %v476_v15 = vpop.permute.xlu1 %475 }
 0x3cc   : > { %v478_v13 = vsub.f32 %v1292_v41, %v476_v15 }
 0x3ce   : > { %v479_v17 = vmul.f32 1.442695, %v478_v13 }
 0x3cf   : > { %v499_v20 = vpop.permute.xlu1 %498 }
 0x3d0   : > { %1123 = vpow2.f32 %v479_v17  ;;  %v504_v14 = vsel %vm366_vm4, %v499_v20, 0 }
 0x3d1   : > { %1036 = vmatpush3.bf16.msra.mxu0 %v504_v14 }
 0x3d2   : > { %1047 = vmatprep.subr.bf16.mxu0 %v1167_v0 }
 0x3d5   : > { %v614_v16 = vpop.permute.xlu0 %613 }
 0x3d6   : > { %v616_v18 = vsub.f32 %v1297_v47, %v614_v16  ;;  %v350_v47 = vld [vmem:[#allocation2] sm:$0xff] }
 0x3d8   : > { %v617_v19 = vmul.f32 1.442695, %v616_v18 }
 0x3da   : > { %1125 = vpow2.f32 %v617_v19 }
 0x3dd   : > { %v1124_v21 = vpop.eup %1123 }
 0x3de   : > { %v483_v22 = vsel %vm278_vm1, %v1124_v21, 0.0  ;;  %v497_v23 = vpack.c.bf16 %v1124_v21, %v1124_v21 }
 0x3df   : > { %484 = vadd.xlane.f32.xlu0 %v483_v22  ;;  %v752_v24 = vpop.permute.xlu1 %751 }
 0x3e0   : > { %v754_v25 = vsub.f32 %v1303_v54, %v752_v24  ;;  %1038 = vmatmul.mubr.msk.bf16.vlgmr.msra.gmra.mxu0 %vm278_vm1, %v497_v23 }
 0x3e1   : > { %1049 = vmatprep.mubr.msk.bf16.mxu0 %vm1168_vm0, %v1167_v0 }
 0x3e2   : > { %v755_v26 = vmul.f32 1.442695, %v754_v25 }
 0x3e3   : > { %v637_v27 = vpop.permute.xlu1 %636 }
 0x3e4   : > { %1127 = vpow2.f32 %v755_v26  ;;  %v642_v28 = vsel %vm366_vm4, %v637_v27, 0 }
 0x3e5   : > { %1048 = vmatpush3.bf16.msra.mxu0 %v642_v28  ;;  %1129 = vpow2.f32 %v471_v34 }
 0x3e6   : > { %1059 = vmatprep.subr.bf16.mxu0 %v1167_v0  ;;  %1131 = vpow2.f32 %v609_v37 }
 0x3e7   : > { %v1126_v29 = vpop.eup %1125  ;;  %v775_v30 = vpop.permute.xlu1 %774  ;;  %1133 = vpow2.f32 %v747_v40 }
 0x3e8   : > { %v621_v31 = vsel %vm278_vm1, %v1126_v29, 0.0  ;;  %v635_v32 = vpack.c.bf16 %v1126_v29, %v1126_v29  ;;  %v780_v33 = vsel %vm366_vm4, %v775_v30, 0 }
 0x3e9   : > { %622 = vadd.xlane.f32.xlu0 %v621_v31 }
 0x3ea   : > { %1050 = vmatmul.mubr.msk.bf16.vlgmr.msra.gmra.mxu0 %vm278_vm1, %v635_v32 }
 0x3eb   : > { %1060 = vmatpush3.bf16.msra.mxu0 %v780_v33  ;;  %1061 = vmatprep.mubr.msk.bf16.mxu0 %vm1168_vm0, %v1167_v0 }
 0x3f1   : > { %v1128_v35 = vpop.eup %1127 }
 0x3f2   : > { %v759_v38 = vsel %vm278_vm1, %v1128_v35, 0.0  ;;  %v773_v39 = vpack.c.bf16 %v1128_v35, %v1128_v35  ;;  %v1130_v41 = vpop.eup %1129 }
 0x3f3   : > { %760 = vadd.xlane.f32.xlu1 %v759_v38  ;;  %v1132_v42 = vpop.eup %1131 }
 0x3f4   : > { %1062 = vmatmul.mubr.msk.bf16.vlgmr.msra.gmra.mxu0 %vm278_vm1, %v773_v39  ;;  %v1134_v0 = vpop.eup %1133 }
 0x3ff   : > { %493 = vperm.xlu0 %1111, %v1130_v41  }
 0x403   : > { %1112 = vset.pattern.permute.xlu0 %v1176_v59 }
 0x404   : > { %631 = vperm.xlu0 %1112, %v1132_v42  }
 0x408   : > { %1113 = vset.pattern.permute.xlu0 %v1178_v1 }
 0x409   : > { %769 = vperm.xlu0 %1113, %v1134_v0  }
 0x40d   : > { %1114 = vset.pattern.permute.xlu0 %v1175_v52 }
 0x419   : > { %v345_v45 = vpop.xlane.xlu1 %344 }
 0x41a   : > { %v346_v46 = vadd.f32 %v345_v45, %v342_v44 }
 0x41c   : > { %348 = vst.msk [vmem:[#allocation4] sm:$0xff] %vm347_vm3, %v346_v46 }
 0x41d   : > { %v354_v48 = vpop.permute.xlu1 %353 }
 0x41e   : > { %v356_v49 = vmul.f32 %v354_v48, %v350_v47 }
 0x420   : > { %v410_v50 = vadd.f32 %v1289_v36, %v356_v49 }
 0x422   : > { %411 = vst.msk [vmem:[#allocation2] sm:$0xff] %vm278_vm1, %v410_v50 }
 0x423   : > { %v481_v51 = vld [vmem:[#allocation4] sm:$0xff] }
 0x424   : > { %v482_v53 = vmul.f32 %v1130_v41, %v481_v51 }
 0x429   : > { %v490_v17 = vld [vmem:[#allocation2] sm:$0xff] }
 0x468   : > { %v485_v54 = vpop.xlane.xlu0 %484 }
 0x469   : > { %v486_v55 = vadd.f32 %v485_v54, %v482_v53 }
 0x46b   : > { %488 = vst.msk [vmem:[#allocation4] sm:$0xff] %vm487_vm5, %v486_v55 }
 0x472   : > { %v619_v52 = vld [vmem:[#allocation4] sm:$0xff]  ;;  %v623_v57 = vpop.xlane.xlu0 %622 }
 0x473   : > { %v620_v56 = vmul.f32 %v1132_v42, %v619_v52 }
 0x475   : > { %v624_v58 = vadd.f32 %v623_v57, %v620_v56 }
 0x477   : > { %626 = vst.msk [vmem:[#allocation4] sm:$0xff] %vm625_vm6, %v624_v58 }
 0x47a   : > { %v494_v13 = vpop.permute.xlu0 %493 }
 0x47b   : > { %v496_v20 = vmul.f32 %v494_v13, %v490_v17 }
 0x47c   : > { %v761_v62 = vpop.xlane.xlu1 %760 }
 0x47e   : > { %v757_v60 = vld [vmem:[#allocation4] sm:$0xff] }
 0x47f   : > { %v758_v61 = vmul.f32 %v1134_v0, %v757_v60  ;;  %v632_v18 = vpop.permute.xlu0 %631 }
 0x481   : > { %v762_v63 = vadd.f32 %v761_v62, %v758_v61 }
 0x483   : > { %764 = vst.msk [vmem:[#allocation4] sm:$0xff] %vm763_vm7, %v762_v63 }
 0x48a   : > { %v843_v36 = vld [vmem:[#allocation4] sm:$0xff] }
 0x48b   : > { %846 = vperm.xlu0 %1114, %v843_v36  }
 0x48f   : > { %1117 = vset.pattern.permute.xlu0 %v1178_v1 }
 0x4a0   : > { %v540_v2 = vpop.f32.mrf.mxu0 }
 0x4a1   : > { %547 = vrot.lane.b32.xlu1 %v540_v2, %s1181_s6 }
 0x4a2   : > { %v1039_v3 = vpop.f32.mrf.mxu0 }
 0x4a4   : > { %v543_v4 = vpop.f32.mrf.mxu0 }
 0x4a6   : > { %v1040_v5 = vpop.f32.mrf.mxu0 }
 0x4aa   : > { %v678_v6 = vpop.f32.mrf.mxu0 }
 0x4ab   : > { %685 = vrot.lane.b32.xlu1 %v678_v6, %s1182_s7 }
 0x4ac   : > { %v1051_v7 = vpop.f32.mrf.mxu0 }
 0x4ae   : > { %v681_v8 = vpop.f32.mrf.mxu0 }
 0x4b0   : > { %v1052_v9 = vpop.f32.mrf.mxu0 }
 0x4b4   : > { %v816_v10 = vpop.f32.mrf.mxu0 }
 0x4b5   : > { %823 = vrot.lane.b32.xlu1 %v816_v10, %s1183_s8 }
 0x4b6   : > { %v1063_v11 = vpop.f32.mrf.mxu0 }
 0x4b8   : > { %v819_v12 = vpop.f32.mrf.mxu0 }
 0x4b9   : > { %836 = vperm.xlu1 %1110, %v843_v36  }
 0x4ba   : > { %v1064_v15 = vpop.f32.mrf.mxu0 }
 0x4bd   : > { %1115 = vset.pattern.permute.xlu1 %v1176_v59  ;;  %v770_v59 = vpop.permute.xlu0 %769 }
 0x4be   : > { %856 = vperm.xlu1 %1115, %v843_v36  }
 0x4c2   : > { %1116 = vset.pattern.permute.xlu1 %v1178_v1 }
 0x4c3   : > { %866 = vperm.xlu1 %1116, %v843_v36  }
 0x506   : > { %v847_v28 = vpop.permute.xlu0 %846 }
 0x513   : > { %v548_v14 = vpop.permute.xlu1 %547 }
 0x514   : > { %v550_v16 = vadd.f32 %v548_v14, %v496_v20 }
 0x516   : > { %552 = vst.msk [vmem:[#allocation2] sm:$0xff] %vm551_vm9, %v550_v16 }
 0x51d   : > { %v628_v19 = vld [vmem:[#allocation2] sm:$0xff]  ;;  %v686_v22 = vpop.permute.xlu1 %685 }
 0x51e   : > { %v634_v21 = vmul.f32 %v632_v18, %v628_v19 }
 0x520   : > { %v688_v23 = vadd.f32 %v686_v22, %v634_v21 }
 0x522   : > { %690 = vst.msk [vmem:[#allocation2] sm:$0xff] %vm689_vm10, %v688_v23 }
 0x527   : > { %v824_v25 = vpop.permute.xlu1 %823 }
 0x529   : > { %v766_v24 = vld [vmem:[#allocation2] sm:$0xff] }
 0x52a   : > { %v772_v1 = vmul.f32 %v770_v59, %v766_v24 }
 0x52c   : > { %v826_v26 = vadd.f32 %v824_v25, %v772_v1 }
 0x52e   : > { %828 = vst.msk [vmem:[#allocation2] sm:$0xff] %vm827_vm11, %v826_v26 }
 0x534   : > { %v837_v27 = vpop.permute.xlu1 %836 }
 0x535   : > { %1135 = vrcp.f32 %v837_v27  ;;  %v832_v30 = vld [vmem:[#allocation2] sm:$0xff] }
 0x536   : > { %1137 = vrcp.f32 %v847_v28 }
 0x539   : > { %v857_v32 = vpop.permute.xlu1 %856 }
 0x53a   : > { %1139 = vrcp.f32 %v857_v32 }
 0x53e   : > { %v867_v37 = vpop.permute.xlu1 %866 }
 0x53f   : > { %1141 = vrcp.f32 %v867_v37 }
 0x542   : > { %v1136_v29 = vpop.eup %1135 }
 0x543   : > { %v840_v31 = vmul.f32 %v1136_v29, %v832_v30  ;;  %v1138_v33 = vpop.eup %1137 }
 0x545   : > { %841 = vst.msk [vmem:[#allocation2] sm:$0xff] %vm278_vm1, %v840_v31 }
 0x547   : > { %v1140_v38 = vpop.eup %1139 }
 0x54c   : > { %v842_v34 = vld [vmem:[#allocation2] sm:$0xff]  ;;  %v1142_v41 = vpop.eup %1141 }
 0x54d   : > { %v850_v35 = vmul.f32 %v1138_v33, %v842_v34 }
 0x54f   : > { %851 = vst.msk [vmem:[#allocation2] sm:$0xff] %vm551_vm9, %v850_v35 }
 0x556   : > { %v852_v39 = vld [vmem:[#allocation2] sm:$0xff] }
 0x557   : > { %v860_v40 = vmul.f32 %v1140_v38, %v852_v39 }
 0x559   : > { %861 = vst.msk [vmem:[#allocation2] sm:$0xff] %vm689_vm10, %v860_v40 }
 0x560   : > { %v862_v42 = vld [vmem:[#allocation2] sm:$0xff] }
 0x561   : > { %v870_v0 = vmul.f32 %v1142_v41, %v862_v42 }
 0x563   : > { %871 = vst.msk [vmem:[#allocation2] sm:$0xff] %vm827_vm11, %v870_v0 }
 0x56a   : > { %v872_v43 = vld [vmem:[#allocation2] sm:$0xff] }
 0x56b   : > { %v873_v44 = vpack.c.bf16 %v872_v43, %v872_v43 }
 0x56d   : > { %875 = vst.msk [vmem:[%s256_s11] sm:$0xf] %vm874_vm12, %v873_v44 }
 0x56e PF: > { %s13_s14 = sadd.s32 1, %s1165_s14   ;;  %s1398_s12 = smov %s1161_s13 }
 0x56f   : > { %p10_p5 = scmp.ge.s32.totalorder %s13_s14, 4   ;;  %s1399_s13 = smov %s1401_s15 }
 0x571   :  { %12 = sbr.rel (!%p10_p5) target bundleno = 2 (0x2), region = 76 }

</bundles_post_ra>
